<compile_context>
chip_gen: v7x
topology: tpu7x:2x2x1
jax: 0.10.0
libtpu: 0.0.40
codegen_flags: <defaults>
</compile_context>

<pallas_src>
import jax
import jax.numpy as jnp
from jax.experimental import pallas as pl
from jax.experimental.pallas import tpu as pltpu

IN_DIM = 784
HID_DIM = 512
OUT_DIM = 10
OUT_PAD = 128        # lane-dense padded logits width
NEG_BIG = -1e30      # fill for padded logit columns -> exp() == 0


def mlp_kernel(x_ref, w1_ref, b1_ref, w2_ref, b2_ref, o_ref):
    # layer_1: Linear(784, 512) + ReLU.  bf16 operands, f32 MXU accumulate.
    x = x_ref[...].astype(jnp.bfloat16)
    h = jnp.dot(x, w1_ref[...], preferred_element_type=jnp.float32)
    h = jnp.maximum(h + b1_ref[...], 0.0)

    # layer_2: Linear(512, 128-padded).  Padded columns: zero weight column +
    # NEG_BIG bias, so they contribute exactly 0 after the softmax exp().
    logits = jnp.dot(h.astype(jnp.bfloat16), w2_ref[...],
                     preferred_element_type=jnp.float32)
    logits = logits + b2_ref[...]

    # softmax over the lane-dense 128-wide last axis (exact normalization)
    m = jnp.max(logits, axis=-1, keepdims=True)
    e = jnp.exp(logits - m)
    denom = jnp.sum(e, axis=-1, keepdims=True)
    o_ref[...] = (e / denom).astype(o_ref.dtype)


def prepare_params(w1, b1, w2, b2):
    """One-time parameter preparation: bf16 weights, lane-dense padded layer 2."""
    w1_bf = w1.astype(jnp.bfloat16)
    w2p = (jnp.zeros((HID_DIM, OUT_PAD), jnp.bfloat16)
           .at[:, :OUT_DIM].set(w2.astype(jnp.bfloat16)))
    b1r = b1.reshape(1, HID_DIM).astype(jnp.float32)
    b2p = (jnp.full((1, OUT_PAD), NEG_BIG, dtype=jnp.float32)
           .at[0, :OUT_DIM].set(b2.astype(jnp.float32)))
    return w1_bf, b1r, w2p, b2p


def mlp_forward(x, params, *, tile_b=256):
    """x: [B, 784] f32; params from prepare_params(). Returns [B, 10] f32."""
    w1_bf, b1r, w2p, b2p = params
    B = x.shape[0]
    # Keep the batch block a multiple of 8 (sublane) without exceeding need.
    tile_b = min(tile_b, max(8, ((B + 7) // 8) * 8))
    grid = (pl.cdiv(B, tile_b),)

    out = pl.pallas_call(
        mlp_kernel,
        out_shape=jax.ShapeDtypeStruct((B, OUT_PAD), jnp.float32),
        grid_spec=pltpu.PrefetchScalarGridSpec(
            num_scalar_prefetch=0,
            grid=grid,
            in_specs=[
                # x tile: pipelined (default double-buffer) over the batch grid
                pl.BlockSpec((tile_b, IN_DIM), lambda i: (i, 0)),
                # resident weights/biases: constant index -> single-buffered
                pl.BlockSpec((IN_DIM, HID_DIM), lambda i: (0, 0),
                             pipeline_mode=pl.Buffered(1)),
                pl.BlockSpec((1, HID_DIM), lambda i: (0, 0),
                             pipeline_mode=pl.Buffered(1)),
                pl.BlockSpec((HID_DIM, OUT_PAD), lambda i: (0, 0),
                             pipeline_mode=pl.Buffered(1)),
                pl.BlockSpec((1, OUT_PAD), lambda i: (0, 0),
                             pipeline_mode=pl.Buffered(1)),
            ],
            out_specs=pl.BlockSpec((tile_b, OUT_PAD), lambda i: (i, 0)),
        ),
        compiler_params=pltpu.CompilerParams(
            dimension_semantics=("parallel",),
        ),
    )(x, w1_bf, b1r, w2p, b2p)

    return out[:, :OUT_DIM]


def reference_forward(x, w1, b1, w2, b2):
    h = jnp.maximum(x @ w1 + b1, 0.0)
    logits = h @ w2 + b2
    return jax.nn.softmax(logits, axis=-1)


if __name__ == "__main__":
    key = jax.random.PRNGKey(0)
    k_x, k_w1, k_b1, k_w2, k_b2 = jax.random.split(key, 5)

    B = 256  # single grid step at tile_b=256
    x = jax.random.normal(k_x, (B, IN_DIM), dtype=jnp.float32)

    # Deterministic init mimicking nn.Linear's uniform(-1/sqrt(fan_in), ...)
    lim1 = 1.0 / (IN_DIM ** 0.5)
    lim2 = 1.0 / (HID_DIM ** 0.5)
    w1 = jax.random.uniform(k_w1, (IN_DIM, HID_DIM), jnp.float32, -lim1, lim1)
    b1 = jax.random.uniform(k_b1, (HID_DIM,), jnp.float32, -lim1, lim1)
    w2 = jax.random.uniform(k_w2, (HID_DIM, OUT_DIM), jnp.float32, -lim2, lim2)
    b2 = jax.random.uniform(k_b2, (OUT_DIM,), jnp.float32, -lim2, lim2)

    params = prepare_params(w1, b1, w2, b2)
    out = mlp_forward(x, params, tile_b=256)
    out = jax.block_until_ready(out)

    ref = reference_forward(x, w1, b1, w2, b2)
    assert out.shape == (B, OUT_DIM)
    # Tolerance accounts for bf16 matmul operands (f32 accumulate) vs the f32
    # reference.
    assert jnp.allclose(out, ref, atol=2e-2, rtol=2e-2), "mismatch vs reference"
    # Exact divide in-kernel -> rows sum to 1 up to f32 rounding.
    assert jnp.allclose(jnp.sum(out, axis=-1), 1.0, atol=1e-3), \
        "softmax rows must sum to 1"

    print("KERNEL_OK")
</pallas_src>

<mosaic_0001>
module attributes {stable_mosaic.version = 11 : i64} {
  func.func @mlp_kernel(%arg0: i32, %arg1: memref<256x784xf32, #tpu.memory_space<vmem>>, %arg2: memref<784x512xbf16, #tpu.memory_space<vmem>>, %arg3: memref<1x512xf32, #tpu.memory_space<vmem>>, %arg4: memref<512x128xbf16, #tpu.memory_space<vmem>>, %arg5: memref<1x128xf32, #tpu.memory_space<vmem>>, %arg6: memref<256x128xf32, #tpu.memory_space<vmem>>) attributes {dimension_semantics = [#tpu.dimension_semantics<parallel>], iteration_bounds = array<i64: 1>, scalar_prefetch = 0 : i64, scratch_operands = 0 : i64, tpu.core_type = #tpu.core_type<tc>, window_params = [{transform_indices = @transform_0, window_bounds = array<i64: 256, 784>}, {pipeline_mode = #tpu.pipeline_mode<synchronous>, transform_indices = @transform_1, window_bounds = array<i64: 784, 512>}, {pipeline_mode = #tpu.pipeline_mode<synchronous>, transform_indices = @transform_2, window_bounds = array<i64: 1, 512>}, {pipeline_mode = #tpu.pipeline_mode<synchronous>, transform_indices = @transform_3, window_bounds = array<i64: 512, 128>}, {pipeline_mode = #tpu.pipeline_mode<synchronous>, transform_indices = @transform_4, window_bounds = array<i64: 1, 128>}, {transform_indices = @transform_5, window_bounds = array<i64: 256, 128>}]} {
    %c0 = arith.constant 0 : index
    %c0_0 = arith.constant 0 : index
    %0 = vector.load %arg1[%c0, %c0_0] : memref<256x784xf32, #tpu.memory_space<vmem>>, vector<256x784xf32>
    %1 = arith.truncf %0 : vector<256x784xf32> to vector<256x784xbf16>
    %c0_1 = arith.constant 0 : index
    %c0_2 = arith.constant 0 : index
    %2 = vector.load %arg2[%c0_1, %c0_2] : memref<784x512xbf16, #tpu.memory_space<vmem>>, vector<784x512xbf16>
    %cst = arith.constant dense<0.000000e+00> : vector<256x512xf32>
    %3 = tpu.matmul %1, %2, %cst {dimension_numbers = #tpu.dot_dimension_numbers<[1], [0], [0], [1], [0, 0, 1, 1], [], []>} : vector<256x784xbf16>, vector<784x512xbf16>, vector<256x512xf32> -> vector<256x512xf32>
    %c0_3 = arith.constant 0 : index
    %c0_4 = arith.constant 0 : index
    %4 = vector.load %arg3[%c0_3, %c0_4] : memref<1x512xf32, #tpu.memory_space<vmem>>, vector<1x512xf32>
    %5 = vector.broadcast %4 : vector<1x512xf32> to vector<256x512xf32>
    %6 = arith.addf %3, %5 : vector<256x512xf32>
    %cst_5 = arith.constant 0.000000e+00 : f32
    %7 = vector.broadcast %cst_5 : f32 to vector<256x512xf32>
    %8 = arith.maximumf %6, %7 : vector<256x512xf32>
    %9 = arith.truncf %8 : vector<256x512xf32> to vector<256x512xbf16>
    %c0_6 = arith.constant 0 : index
    %c0_7 = arith.constant 0 : index
    %10 = vector.load %arg4[%c0_6, %c0_7] : memref<512x128xbf16, #tpu.memory_space<vmem>>, vector<512x128xbf16>
    %cst_8 = arith.constant dense<0.000000e+00> : vector<256x128xf32>
    %11 = tpu.matmul %9, %10, %cst_8 {dimension_numbers = #tpu.dot_dimension_numbers<[1], [0], [0], [1], [0, 0, 1, 1], [], []>} : vector<256x512xbf16>, vector<512x128xbf16>, vector<256x128xf32> -> vector<256x128xf32>
    %c0_9 = arith.constant 0 : index
    %c0_10 = arith.constant 0 : index
    %12 = vector.load %arg5[%c0_9, %c0_10] : memref<1x128xf32, #tpu.memory_space<vmem>>, vector<1x128xf32>
    %13 = vector.broadcast %12 : vector<1x128xf32> to vector<256x128xf32>
    %14 = arith.addf %11, %13 : vector<256x128xf32>
    %cst_11 = arith.constant dense<0xFF800000> : vector<256xf32>
    %15 = vector.multi_reduction <maximumf>, %14, %cst_11 [1] : vector<256x128xf32> to vector<256xf32>
    %16 = vector.shape_cast %15 : vector<256xf32> to vector<256x1xf32>
    %17 = vector.broadcast %16 : vector<256x1xf32> to vector<256x128xf32>
    %18 = arith.subf %14, %17 : vector<256x128xf32>
    %19 = math.exp %18 : vector<256x128xf32>
    %cst_12 = arith.constant dense<0.000000e+00> : vector<256xf32>
    %20 = vector.multi_reduction <add>, %19, %cst_12 [1] : vector<256x128xf32> to vector<256xf32>
    %21 = vector.shape_cast %20 : vector<256xf32> to vector<256x1xf32>
    %22 = vector.broadcast %21 : vector<256x1xf32> to vector<256x128xf32>
    %23 = arith.divf %19, %22 : vector<256x128xf32>
    %c0_13 = arith.constant 0 : index
    %c0_14 = arith.constant 0 : index
    %24 = vector.load %arg6[%c0_13, %c0_14] : memref<256x128xf32, #tpu.memory_space<vmem>>, vector<256x128xf32>
    tpu.vector_store %arg6[%c0_13, %c0_14], %23 {strides = array<i32>} : memref<256x128xf32, #tpu.memory_space<vmem>>, vector<256x128xf32>,
    return
  }
  func.func @transform_0(%arg0: i32) -> (i32, i32) {
    %c0_i32 = arith.constant 0 : i32
    %c0_i32_0 = arith.constant 0 : i32
    return %arg0, %c0_i32 : i32, i32
  }
  func.func @transform_1(%arg0: i32) -> (i32, i32) {
    %c0_i32 = arith.constant 0 : i32
    %c0_i32_0 = arith.constant 0 : i32
    %c0_i32_1 = arith.constant 0 : i32
    return %c0_i32, %c0_i32_0 : i32, i32
  }
  func.func @transform_2(%arg0: i32) -> (i32, i32) {
    %c0_i32 = arith.constant 0 : i32
    %c0_i32_0 = arith.constant 0 : i32
    %c0_i32_1 = arith.constant 0 : i32
    return %c0_i32, %c0_i32_0 : i32, i32
  }
  func.func @transform_3(%arg0: i32) -> (i32, i32) {
    %c0_i32 = arith.constant 0 : i32
    %c0_i32_0 = arith.constant 0 : i32
    %c0_i32_1 = arith.constant 0 : i32
    return %c0_i32, %c0_i32_0 : i32, i32
  }
  func.func @transform_4(%arg0: i32) -> (i32, i32) {
    %c0_i32 = arith.constant 0 : i32
    %c0_i32_0 = arith.constant 0 : i32
    %c0_i32_1 = arith.constant 0 : i32
    return %c0_i32, %c0_i32_0 : i32, i32
  }
  func.func @transform_5(%arg0: i32) -> (i32, i32) {
    %c0_i32 = arith.constant 0 : i32
    %c0_i32_0 = arith.constant 0 : i32
    return %arg0, %c0_i32 : i32, i32
  }
}

</mosaic_0001>

<bundles_post_ra>
// kernel: tpu_custom_call.1
= control target key start
LH: loop header
LB: loop body
LE: loop exit
PB: predicated region body
PF: predicated region fallthrough
CT: control target
= control target key end

     0   :  { %s7639_s0 = inlined_call_operand.vmem [shape: f32[256,784], index: 0, kind: input, shape index: {}]   ;;  %s7640_s1 = inlined_call_operand.vmem [shape: bf16[784,512], index: 1, kind: input, shape index: {}]   ;;  %s7641_s2 = inlined_call_operand.vmem [shape: f32[1,512], index: 2, kind: input, shape index: {}]   ;;  %s7642_s3 = inlined_call_operand.vmem [shape: bf16[512,128], index: 3, kind: input, shape index: {}]   ;;  %s7643_s4 = inlined_call_operand.vmem [shape: f32[1,128], index: 4, kind: input, shape index: {}]   ;;  %s7644_s5 = inlined_call_operand.hbm [shape: f32[256,128], index: 5, kind: output, shape index: {}]  }
   0x1   :  { %v5263_v0 = vld [vmem:[%s7640_s1 + $0x4] ss:$16 sps:$4 sm:$0xff]   ;;  %v5265_v1 = vld [vmem:[%s7640_s1 + $0xc] ss:$16 sps:$4 sm:$0xff]   ;;  %v5267_v2 = vld [vmem:[%s7640_s1] ss:$16 sps:$4 sm:$0xff]  }
   0x2   :  { %1605 = vmatprep.subr.bf16.mxu0 %v5263_v0  ;;  %v5268_v3 = vld [vmem:[%s7640_s1 + $0x8] ss:$16 sps:$4 sm:$0xff]   ;;  %2377 = vmatprep.subr.bf16.mxu1 %v5265_v1  ;;  %v5269_v4 = vld [vmem:[%s7640_s1 + $0x24] ss:$16 sps:$4 sm:$0xff]   ;;  %v5271_v5 = vld [vmem:[%s7640_s1 + $0x2c] ss:$16 sps:$4 sm:$0xff]  }
   0x3   :  { %1606 = vmatpush1.bf16.msra.mxu0 %v5267_v2  ;;  %2378 = vmatpush1.bf16.msra.mxu1 %v5268_v3  ;;  %v5273_v6 = vld [vmem:[%s7640_s1 + $0x20] ss:$16 sps:$4 sm:$0xff]   ;;  %v5274_v7 = vld [vmem:[%s7640_s1 + $0x28] ss:$16 sps:$4 sm:$0xff]   ;;  %v5275_v8 = vld [vmem:[%s7640_s1 + $0x44] ss:$16 sps:$4 sm:$0xff]  }
   0x4   :  { %1607 = vmatprep.subr.bf16.mxu0 %v5269_v4  ;;  %2379 = vmatprep.subr.bf16.mxu1 %v5271_v5  ;;  %v5277_v9 = vld [vmem:[%s7640_s1 + $0x4c] ss:$16 sps:$4 sm:$0xff]   ;;  %v5279_v10 = vld [vmem:[%s7640_s1 + $0x40] ss:$16 sps:$4 sm:$0xff]   ;;  %v5280_v11 = vld [vmem:[%s7640_s1 + $0x48] ss:$16 sps:$4 sm:$0xff]  }
   0x5   :  { %v5281_v12 = vld [vmem:[%s7640_s1 + $0x64] ss:$16 sps:$4 sm:$0xff]   ;;  %v5283_v13 = vld [vmem:[%s7640_s1 + $0x6c] ss:$16 sps:$4 sm:$0xff]   ;;  %v5285_v14 = vld [vmem:[%s7640_s1 + $0x60] ss:$16 sps:$4 sm:$0xff]  }
   0x6   :  { %v5286_v15 = vld [vmem:[%s7640_s1 + $0x68] ss:$16 sps:$4 sm:$0xff]   ;;  %v5287_v16 = vld [vmem:[%s7640_s1 + $0x84] ss:$16 sps:$4 sm:$0xff]   ;;  %v5289_v17 = vld [vmem:[%s7640_s1 + $0x8c] ss:$16 sps:$4 sm:$0xff]  }
   0x7   :  { %1608 = vmatpush1.bf16.msra.mxu0 %v5273_v6  ;;  %2380 = vmatpush1.bf16.msra.mxu1 %v5274_v7  ;;  %v5291_v18 = vld [vmem:[%s7640_s1 + $0x80] ss:$16 sps:$4 sm:$0xff]   ;;  %v5292_v19 = vld [vmem:[%s7640_s1 + $0x88] ss:$16 sps:$4 sm:$0xff]   ;;  %v5293_v20 = vld [vmem:[%s7640_s1 + $0xa4] ss:$16 sps:$4 sm:$0xff]  }
   0x8   :  { %1609 = vmatprep.subr.bf16.mxu0 %v5275_v8  ;;  %2381 = vmatprep.subr.bf16.mxu1 %v5277_v9  ;;  %v5295_v21 = vld [vmem:[%s7640_s1 + $0xac] ss:$16 sps:$4 sm:$0xff]   ;;  %v5297_v22 = vld [vmem:[%s7640_s1 + $0xa0] ss:$16 sps:$4 sm:$0xff]   ;;  %v5298_v23 = vld [vmem:[%s7640_s1 + $0xa8] ss:$16 sps:$4 sm:$0xff]  }
   0x9   :  { %v5299_v24 = vld [vmem:[%s7640_s1 + $0xc4] ss:$16 sps:$4 sm:$0xff]   ;;  %v5301_v25 = vld [vmem:[%s7640_s1 + $0xcc] ss:$16 sps:$4 sm:$0xff]   ;;  %v5303_v26 = vld [vmem:[%s7640_s1 + $0xc0] ss:$16 sps:$4 sm:$0xff]  }
   0xa   :  { %v5304_v27 = vld [vmem:[%s7640_s1 + $0xc8] ss:$16 sps:$4 sm:$0xff]   ;;  %v5305_v28 = vld [vmem:[%s7640_s1 + $0xe4] ss:$16 sps:$4 sm:$0xff]   ;;  %v5307_v29 = vld [vmem:[%s7640_s1 + $0xec] ss:$16 sps:$4 sm:$0xff]  }
   0xb   :  { %1610 = vmatpush1.bf16.msra.mxu0 %v5279_v10  ;;  %2382 = vmatpush1.bf16.msra.mxu1 %v5280_v11  ;;  %v5309_v30 = vld [vmem:[%s7640_s1 + $0xe0] ss:$16 sps:$4 sm:$0xff]   ;;  %v5310_v31 = vld [vmem:[%s7640_s1 + $0xe8] ss:$16 sps:$4 sm:$0xff]   ;;  %v5311_v32 = vld [vmem:[%s7640_s1 + $0x104] ss:$16 sps:$4 sm:$0xff]  }
   0xc   :  { %1611 = vmatprep.subr.bf16.mxu0 %v5281_v12  ;;  %2383 = vmatprep.subr.bf16.mxu1 %v5283_v13  ;;  %v5313_v33 = vld [vmem:[%s7640_s1 + $0x10c] ss:$16 sps:$4 sm:$0xff]   ;;  %v5315_v34 = vld [vmem:[%s7640_s1 + $0x100] ss:$16 sps:$4 sm:$0xff]   ;;  %v5316_v35 = vld [vmem:[%s7640_s1 + $0x108] ss:$16 sps:$4 sm:$0xff]  }
   0xd   :  { %v5317_v36 = vld [vmem:[%s7640_s1 + $0x124] ss:$16 sps:$4 sm:$0xff]   ;;  %v5319_v37 = vld [vmem:[%s7640_s1 + $0x12c] ss:$16 sps:$4 sm:$0xff]   ;;  %v5321_v38 = vld [vmem:[%s7640_s1 + $0x120] ss:$16 sps:$4 sm:$0xff]  }
   0xe   :  { %v5322_v39 = vld [vmem:[%s7640_s1 + $0x128] ss:$16 sps:$4 sm:$0xff]   ;;  %v5323_v40 = vld [vmem:[%s7640_s1 + $0x144] ss:$16 sps:$4 sm:$0xff]   ;;  %v5325_v41 = vld [vmem:[%s7640_s1 + $0x14c] ss:$16 sps:$4 sm:$0xff]  }
   0xf   :  { %1612 = vmatpush1.bf16.msra.mxu0 %v5285_v14  ;;  %2384 = vmatpush1.bf16.msra.mxu1 %v5286_v15  ;;  %v5327_v42 = vld [vmem:[%s7640_s1 + $0x140] ss:$16 sps:$4 sm:$0xff]   ;;  %v5328_v43 = vld [vmem:[%s7640_s1 + $0x148] ss:$16 sps:$4 sm:$0xff]   ;;  %v5329_v44 = vld [vmem:[%s7640_s1 + $0x164] ss:$16 sps:$4 sm:$0xff]  }
  0x10   :  { %1613 = vmatprep.subr.bf16.mxu0 %v5287_v16  ;;  %2385 = vmatprep.subr.bf16.mxu1 %v5289_v17  ;;  %v5331_v45 = vld [vmem:[%s7640_s1 + $0x16c] ss:$16 sps:$4 sm:$0xff]   ;;  %v5333_v47 = vld [vmem:[%s7640_s1 + $0x160] ss:$16 sps:$4 sm:$0xff]   ;;  %v5334_v48 = vld [vmem:[%s7640_s1 + $0x168] ss:$16 sps:$4 sm:$0xff]  }
  0x11   :  { %v23_v46 = vld [vmem:[%s7639_s0 + $0x8] sm:$0xff]  ;;  %v30_v49 = vld [vmem:[%s7639_s0 + $0x40] sm:$0xff]  ;;  %v29_v4 = vld [vmem:[%s7639_s0 + $0x38] sm:$0xff] }
  0x12   :  { %v5335_v50 = vld [vmem:[%s7640_s1 + $0x184] ss:$16 sps:$4 sm:$0xff]   ;;  %v247_v51 = vpack.c.bf16 %v30_v49, %v23_v46  ;;  %v5337_v52 = vld [vmem:[%s7640_s1 + $0x18c] ss:$16 sps:$4 sm:$0xff]   ;;  %v5339_v53 = vld [vmem:[%s7640_s1 + $0x180] ss:$16 sps:$4 sm:$0xff]  }
  0x13   :  { %1614 = vmatpush1.bf16.msra.mxu0 %v5291_v18  ;;  %2386 = vmatpush1.bf16.msra.mxu1 %v5292_v19  ;;  %v5340_v54 = vld [vmem:[%s7640_s1 + $0x188] ss:$16 sps:$4 sm:$0xff]   ;;  %v5341_v55 = vld [vmem:[%s7640_s1 + $0x1a4] ss:$16 sps:$4 sm:$0xff]   ;;  %v5343_v56 = vld [vmem:[%s7640_s1 + $0x1ac] ss:$16 sps:$4 sm:$0xff]  }
  0x14   :  { %1615 = vmatprep.subr.bf16.mxu0 %v5293_v20  ;;  %2387 = vmatprep.subr.bf16.mxu1 %v5295_v21  ;;  %v5345_v57 = vld [vmem:[%s7640_s1 + $0x1a0] ss:$16 sps:$4 sm:$0xff]   ;;  %v5346_v58 = vld [vmem:[%s7640_s1 + $0x1a8] ss:$16 sps:$4 sm:$0xff]   ;;  %v5347_v59 = vld [vmem:[%s7640_s1 + $0x1c4] ss:$16 sps:$4 sm:$0xff]  }
  0x15   :  { %1637 = vmatprep.mubr.bf16.mxu0 %v247_v51  ;;  %2409 = vmatprep.mubr.bf16.mxu1 %v247_v51  ;;  %v5349_v60 = vld [vmem:[%s7640_s1 + $0x1cc] ss:$16 sps:$4 sm:$0xff]   ;;  %v5351_v61 = vld [vmem:[%s7640_s1 + $0x1c0] ss:$16 sps:$4 sm:$0xff]   ;;  %v5352_v62 = vld [vmem:[%s7640_s1 + $0x1c8] ss:$16 sps:$4 sm:$0xff]  }
  0x16   :  { %v5353_v63 = vld [vmem:[%s7640_s1 + $0x1e4] ss:$16 sps:$4 sm:$0xff]   ;;  %v5355_v0 = vld [vmem:[%s7640_s1 + $0x1ec] ss:$16 sps:$4 sm:$0xff]   ;;  %v5357_v1 = vld [vmem:[%s7640_s1 + $0x1e0] ss:$16 sps:$4 sm:$0xff]  }
  0x17   :  { %1616 = vmatpush1.bf16.msra.mxu0 %v5297_v22  ;;  %2388 = vmatpush1.bf16.msra.mxu1 %v5298_v23  ;;  %v5358_v2 = vld [vmem:[%s7640_s1 + $0x1e8] ss:$16 sps:$4 sm:$0xff]   ;;  %v22_v3 = vld [vmem:[%s7639_s0] sm:$0xff]  ;;  %v5364_v6 = vld [vmem:[%s7640_s1 + $0x20c] ss:$16 sps:$4 sm:$0xff]  }
  0x18   :  { %1617 = vmatprep.subr.bf16.mxu0 %v5299_v24  ;;  %2389 = vmatprep.subr.bf16.mxu1 %v5301_v25  ;;  %v5361_v5 = vld [vmem:[%s7640_s1 + $0x204] ss:$16 sps:$4 sm:$0xff]   ;;  %v37_v7 = vld [vmem:[%s7639_s0 + $0x78] sm:$0xff]  ;;  %v246_v9 = vpack.c.bf16 %v29_v4, %v22_v3  ;;  %v5359_v10 = vld [vmem:[%s7640_s1 + $0x200] ss:$16 sps:$4 sm:$0xff]  }
  0x19   :  { %v44_v8 = vld [vmem:[%s7639_s0 + $0xb0] sm:$0xff]  ;;  %v5362_v11 = vld [vmem:[%s7640_s1 + $0x208] ss:$16 sps:$4 sm:$0xff]   ;;  %v5370_v17 = vld [vmem:[%s7640_s1 + $0x22c] ss:$16 sps:$4 sm:$0xff]  }
  0x1a   :  { %v254_v12 = vpack.c.bf16 %v44_v8, %v37_v7  ;;  %v36_v13 = vld [vmem:[%s7639_s0 + $0x70] sm:$0xff]  ;;  %v43_v14 = vld [vmem:[%s7639_s0 + $0xa8] sm:$0xff]  ;;  %v58_v20 = vld [vmem:[%s7639_s0 + $0x120] sm:$0xff] }
  0x1b   :  { %1618 = vmatpush1.bf16.msra.mxu0 %v5303_v26  ;;  %2390 = vmatpush1.bf16.msra.mxu1 %v5304_v27  ;;  %v5365_v15 = vld [vmem:[%s7640_s1 + $0x220] ss:$16 sps:$4 sm:$0xff]   ;;  %v5367_v16 = vld [vmem:[%s7640_s1 + $0x224] ss:$16 sps:$4 sm:$0xff]   ;;  %v5368_v18 = vld [vmem:[%s7640_s1 + $0x228] ss:$16 sps:$4 sm:$0xff]   ;;  %v253_v23 = vpack.c.bf16 %v43_v14, %v36_v13 }
  0x1c   :  { %1619 = vmatprep.subr.bf16.mxu0 %v5305_v28  ;;  %2391 = vmatprep.subr.bf16.mxu1 %v5307_v29  ;;  %v51_v19 = vld [vmem:[%s7639_s0 + $0xe8] sm:$0xff]  ;;  %v5373_v21 = vld [vmem:[%s7640_s1 + $0x244] ss:$16 sps:$4 sm:$0xff]   ;;  %v5371_v25 = vld [vmem:[%s7640_s1 + $0x240] ss:$16 sps:$4 sm:$0xff]  }
  0x1d   :  { %v5376_v22 = vld [vmem:[%s7640_s1 + $0x24c] ss:$16 sps:$4 sm:$0xff]   ;;  %v261_v24 = vpack.c.bf16 %v58_v20, %v51_v19  ;;  %v5374_v26 = vld [vmem:[%s7640_s1 + $0x248] ss:$16 sps:$4 sm:$0xff]   ;;  %v50_v27 = vld [vmem:[%s7639_s0 + $0xe0] sm:$0xff] }
  0x1e   :  { %v5379_v28 = vld [vmem:[%s7640_s1 + $0x264] ss:$16 sps:$4 sm:$0xff]   ;;  %v5382_v29 = vld [vmem:[%s7640_s1 + $0x26c] ss:$16 sps:$4 sm:$0xff]   ;;  %v5407_v3 = vld [vmem:[%s7640_s1 + $0x300] ss:$16 sps:$4 sm:$0xff]  }
  0x1f   :  { %1620 = vmatpush1.bf16.msra.mxu0 %v5309_v30  ;;  %2392 = vmatpush1.bf16.msra.mxu1 %v5310_v31  ;;  %v57_v30 = vld [vmem:[%s7639_s0 + $0x118] sm:$0xff]  ;;  %v86_v46 = vld [vmem:[%s7639_s0 + $0x200] sm:$0xff]  ;;  %v99_v8 = vld [vmem:[%s7639_s0 + $0x268] sm:$0xff] }
  0x20   :  { %1621 = vmatprep.subr.bf16.mxu0 %v5311_v32  ;;  %2393 = vmatprep.subr.bf16.mxu1 %v5313_v33  ;;  %v65_v31 = vld [vmem:[%s7639_s0 + $0x158] sm:$0xff]  ;;  %v72_v32 = vld [vmem:[%s7639_s0 + $0x190] sm:$0xff]  ;;  %v106_v19 = vld [vmem:[%s7639_s0 + $0x2a0] sm:$0xff] }
  0x21   :  { %v5377_v33 = vld [vmem:[%s7640_s1 + $0x260] ss:$16 sps:$4 sm:$0xff]   ;;  %v5397_v49 = vld [vmem:[%s7640_s1 + $0x2c4] ss:$16 sps:$4 sm:$0xff]   ;;  %v5410_v4 = vld [vmem:[%s7640_s1 + $0x308] ss:$16 sps:$4 sm:$0xff]  }
  0x22   :  { %v5418_v7 = vld [vmem:[%s7640_s1 + $0x32c] ss:$16 sps:$4 sm:$0xff]   ;;  %v5421_v13 = vld [vmem:[%s7640_s1 + $0x344] ss:$16 sps:$4 sm:$0xff]  }
  0x23   :  { %1622 = vmatpush1.bf16.msra.mxu0 %v5315_v34  ;;  %2394 = vmatpush1.bf16.msra.mxu1 %v5316_v35  ;;  %v5380_v34 = vld [vmem:[%s7640_s1 + $0x268] ss:$16 sps:$4 sm:$0xff]   ;;  %v5385_v35 = vld [vmem:[%s7640_s1 + $0x284] ss:$16 sps:$4 sm:$0xff]   ;;  %v5424_v14 = vld [vmem:[%s7640_s1 + $0x34c] ss:$16 sps:$4 sm:$0xff]  }
  0x24   :  { %1623 = vmatprep.subr.bf16.mxu0 %v5317_v36  ;;  %2395 = vmatprep.subr.bf16.mxu1 %v5319_v37  ;;  %v5388_v36 = vld [vmem:[%s7640_s1 + $0x28c] ss:$16 sps:$4 sm:$0xff]   ;;  %v260_v37 = vpack.c.bf16 %v57_v30, %v50_v27  ;;  %v5427_v20 = vld [vmem:[%s7640_s1 + $0x364] ss:$16 sps:$4 sm:$0xff]  }
  0x25   :  { %v5433_v27 = vld [vmem:[%s7640_s1 + $0x384] ss:$16 sps:$4 sm:$0xff]  }
  0x27   :  { %1624 = vmatpush1.bf16.msra.mxu0 %v5321_v38  ;;  %2396 = vmatpush1.bf16.msra.mxu1 %v5322_v39  ;;  %v268_v38 = vpack.c.bf16 %v72_v32, %v65_v31  ;;  %v5383_v39 = vld [vmem:[%s7640_s1 + $0x280] ss:$16 sps:$4 sm:$0xff]   ;;  %v5434_v32 = vld [vmem:[%s7640_s1 + $0x388] ss:$16 sps:$4 sm:$0xff]  }
  0x28   :  { %1625 = vmatprep.subr.bf16.mxu0 %v5323_v40  ;;  %2397 = vmatprep.subr.bf16.mxu1 %v5325_v41  ;;  %v5386_v40 = vld [vmem:[%s7640_s1 + $0x288] ss:$16 sps:$4 sm:$0xff]   ;;  %v64_v41 = vld [vmem:[%s7639_s0 + $0x150] sm:$0xff] }
  0x29   :  { %v5431_v31 = vld [vmem:[%s7640_s1 + $0x380] ss:$16 sps:$4 sm:$0xff]  }
  0x2b   :  { %1626 = vmatpush1.bf16.msra.mxu0 %v5327_v42  ;;  %2398 = vmatpush1.bf16.msra.mxu1 %v5328_v43  ;;  %v5391_v42 = vld [vmem:[%s7640_s1 + $0x2a4] ss:$16 sps:$4 sm:$0xff]   ;;  %v5394_v43 = vld [vmem:[%s7640_s1 + $0x2ac] ss:$16 sps:$4 sm:$0xff]  }
  0x2c   :  { %1627 = vmatprep.subr.bf16.mxu0 %v5329_v44  ;;  %2399 = vmatprep.subr.bf16.mxu1 %v5331_v45  ;;  %v71_v44 = vld [vmem:[%s7639_s0 + $0x188] sm:$0xff] }
  0x2d   :  { %v79_v45 = vld [vmem:[%s7639_s0 + $0x1c8] sm:$0xff]  ;;  %v267_v51 = vpack.c.bf16 %v71_v44, %v64_v41  ;;  %v5445_v41 = vld [vmem:[%s7640_s1 + $0x3c4] ss:$16 sps:$4 sm:$0xff]  }
  0x2f   :  { %1628 = vmatpush1.bf16.msra.mxu0 %v5333_v47  ;;  %2400 = vmatpush1.bf16.msra.mxu1 %v5334_v48  ;;  %v5389_v47 = vld [vmem:[%s7640_s1 + $0x2a0] ss:$16 sps:$4 sm:$0xff]   ;;  %v5392_v48 = vld [vmem:[%s7640_s1 + $0x2a8] ss:$16 sps:$4 sm:$0xff]  }
  0x30   :  { %1629 = vmatprep.subr.bf16.mxu0 %v5335_v50  ;;  %2401 = vmatprep.subr.bf16.mxu1 %v5337_v52  ;;  %v5400_v50 = vld [vmem:[%s7640_s1 + $0x2cc] ss:$16 sps:$4 sm:$0xff]   ;;  %v275_v52 = vpack.c.bf16 %v86_v46, %v79_v45  ;;  %v5443_v45 = vld [vmem:[%s7640_s1 + $0x3c0] ss:$16 sps:$4 sm:$0xff]   ;;  %v5446_v46 = vld [vmem:[%s7640_s1 + $0x3c8] ss:$16 sps:$4 sm:$0xff]  }
  0x33   :  { %1630 = vmatpush1.bf16.msra.mxu0 %v5339_v53  ;;  %2402 = vmatpush1.bf16.msra.mxu1 %v5340_v54  ;;  %v5395_v53 = vld [vmem:[%s7640_s1 + $0x2c0] ss:$16 sps:$4 sm:$0xff]   ;;  %v5398_v54 = vld [vmem:[%s7640_s1 + $0x2c8] ss:$16 sps:$4 sm:$0xff]  }
  0x34   :  { %1631 = vmatprep.subr.bf16.mxu0 %v5341_v55  ;;  %2403 = vmatprep.subr.bf16.mxu1 %v5343_v56  ;;  %v78_v55 = vld [vmem:[%s7639_s0 + $0x1c0] sm:$0xff] }
  0x35   :  { %v5403_v56 = vld [vmem:[%s7640_s1 + $0x2e4] ss:$16 sps:$4 sm:$0xff]  }
  0x37   :  { %1632 = vmatpush1.bf16.msra.mxu0 %v5345_v57  ;;  %2404 = vmatpush1.bf16.msra.mxu1 %v5346_v58  ;;  %v5406_v57 = vld [vmem:[%s7640_s1 + $0x2ec] ss:$16 sps:$4 sm:$0xff]  }
  0x38   :  { %1633 = vmatprep.subr.bf16.mxu0 %v5347_v59  ;;  %2405 = vmatprep.subr.bf16.mxu1 %v5349_v60  ;;  %v85_v58 = vld [vmem:[%s7639_s0 + $0x1f8] sm:$0xff]  ;;  %v100_v60 = vld [vmem:[%s7639_s0 + $0x270] sm:$0xff] }
  0x39   :  { %v93_v59 = vld [vmem:[%s7639_s0 + $0x238] sm:$0xff] }
  0x3b   :  { %1634 = vmatpush1.bf16.msra.mxu0 %v5351_v61  ;;  %2406 = vmatpush1.bf16.msra.mxu1 %v5352_v62  ;;  %v5401_v61 = vld [vmem:[%s7640_s1 + $0x2e0] ss:$16 sps:$4 sm:$0xff]   ;;  %v5404_v62 = vld [vmem:[%s7640_s1 + $0x2e8] ss:$16 sps:$4 sm:$0xff]  }
  0x3c   :  { %1635 = vmatprep.subr.bf16.mxu0 %v5353_v63  ;;  %2407 = vmatprep.subr.bf16.mxu1 %v5355_v0  ;;  %v5409_v63 = vld [vmem:[%s7640_s1 + $0x304] ss:$16 sps:$4 sm:$0xff]   ;;  %v5412_v0 = vld [vmem:[%s7640_s1 + $0x30c] ss:$16 sps:$4 sm:$0xff]  }
  0x3f   :  { %1636 = vmatpush1.bf16.msra.mxu0 %v5357_v1  ;;  %2408 = vmatpush1.bf16.msra.mxu1 %v5358_v2  ;;  %v274_v1 = vpack.c.bf16 %v85_v58, %v78_v55  ;;  %v282_v2 = vpack.c.bf16 %v100_v60, %v93_v59  ;;  %v5457_v55 = vld [vmem:[%s7640_s1 + $0x404] ss:$16 sps:$4 sm:$0xff]   ;;  %v155_v60 = vld [vmem:[%s7639_s0 + $0x428] sm:$0xff] }
  0x40   :  { %1798 = vmatprep.subr.bf16.mxu0 %v5361_v5  ;;  %2570 = vmatprep.subr.bf16.mxu1 %v5364_v6  ;;  %v92_v5 = vld [vmem:[%s7639_s0 + $0x230] sm:$0xff] }
  0x41   :  { %v5415_v6 = vld [vmem:[%s7640_s1 + $0x324] ss:$16 sps:$4 sm:$0xff]  }
  0x42   :  { %1638 = vmatmul.mubr.bf16.vlgmr.msra.gmra.mrb[0].mxu0 %v246_v9  ;;  %2410 = vmatmul.mubr.bf16.vlgmr.msra.gmra.mrb[0].mxu1 %v246_v9  ;;  %v107_v9 = vld [vmem:[%s7639_s0 + $0x2a8] sm:$0xff]  ;;  %v148_v59 = vld [vmem:[%s7639_s0 + $0x3f0] sm:$0xff] }
  0x43   :  { %1799 = vmatpush1.bf16.msra.mxu0 %v5359_v10  ;;  %2571 = vmatpush1.bf16.msra.mxu1 %v5362_v11  ;;  %v114_v10 = vld [vmem:[%s7639_s0 + $0x2e0] sm:$0xff] }
  0x44   :  { %1647 = vmatprep.mubr.bf16.mxu0 %v254_v12  ;;  %2419 = vmatprep.mubr.bf16.mxu1 %v254_v12  ;;  %v5413_v11 = vld [vmem:[%s7640_s1 + $0x320] ss:$16 sps:$4 sm:$0xff]   ;;  %v5416_v12 = vld [vmem:[%s7640_s1 + $0x328] ss:$16 sps:$4 sm:$0xff]  }
  0x45   :  { %1800 = vmatprep.subr.bf16.mxu0 %v5367_v16  ;;  %2572 = vmatprep.subr.bf16.mxu1 %v5370_v17  ;;  %v289_v16 = vpack.c.bf16 %v114_v10, %v107_v9  ;;  %v5419_v17 = vld [vmem:[%s7640_s1 + $0x340] ss:$16 sps:$4 sm:$0xff]   ;;  %v191_v9 = vld [vmem:[%s7639_s0 + $0x548] sm:$0xff] }
  0x46   :  { %v198_v10 = vld [vmem:[%s7639_s0 + $0x580] sm:$0xff] }
  0x47   :  { %1801 = vmatpush1.bf16.msra.mxu0 %v5365_v15  ;;  %2573 = vmatpush1.bf16.msra.mxu1 %v5368_v18  ;;  %v281_v15 = vpack.c.bf16 %v99_v8, %v92_v5  ;;  %v5422_v18 = vld [vmem:[%s7640_s1 + $0x348] ss:$16 sps:$4 sm:$0xff]  }
  0x48   :  { %1802 = vmatprep.subr.bf16.mxu0 %v5373_v21  ;;  %2574 = vmatprep.subr.bf16.mxu1 %v5376_v22  ;;  %v5430_v21 = vld [vmem:[%s7640_s1 + $0x36c] ss:$16 sps:$4 sm:$0xff]  }
  0x49   :  { %v113_v22 = vld [vmem:[%s7639_s0 + $0x2d8] sm:$0xff]  ;;  %v183_v8 = vld [vmem:[%s7639_s0 + $0x508] sm:$0xff] }
  0x4a   :  { %1648 = vmatmul.mubr.bf16.gmra.mrb[4].mxu0 %v253_v23  ;;  %2420 = vmatmul.mubr.bf16.gmra.mrb[4].mxu1 %v253_v23  ;;  %v121_v23 = vld [vmem:[%s7639_s0 + $0x318] sm:$0xff] }
  0x4b   :  { %1657 = vmatprep.mubr.bf16.mxu0 %v261_v24  ;;  %2429 = vmatprep.mubr.bf16.mxu1 %v261_v24  ;;  %v128_v24 = vld [vmem:[%s7639_s0 + $0x350] sm:$0xff] }
  0x4c   :  { %1803 = vmatpush1.bf16.msra.mxu0 %v5371_v25  ;;  %2575 = vmatpush1.bf16.msra.mxu1 %v5374_v26  ;;  %v5425_v25 = vld [vmem:[%s7640_s1 + $0x360] ss:$16 sps:$4 sm:$0xff]   ;;  %v5428_v26 = vld [vmem:[%s7640_s1 + $0x368] ss:$16 sps:$4 sm:$0xff]   ;;  %v296_v30 = vpack.c.bf16 %v128_v24, %v121_v23 }
  0x4d   :  { %1804 = vmatprep.subr.bf16.mxu0 %v5379_v28  ;;  %2576 = vmatprep.subr.bf16.mxu1 %v5382_v29  ;;  %v5436_v28 = vld [vmem:[%s7640_s1 + $0x38c] ss:$16 sps:$4 sm:$0xff]   ;;  %v288_v29 = vpack.c.bf16 %v113_v22, %v106_v19  ;;  %v204_v19 = vld [vmem:[%s7639_s0 + $0x5b0] sm:$0xff]  ;;  %v226_v22 = vld [vmem:[%s7639_s0 + $0x660] sm:$0xff] }
  0x50   :  { %1805 = vmatpush1.bf16.msra.mxu0 %v5377_v33  ;;  %2577 = vmatpush1.bf16.msra.mxu1 %v5380_v34  ;;  %v120_v33 = vld [vmem:[%s7639_s0 + $0x310] sm:$0xff] }
  0x51   :  { %1806 = vmatprep.subr.bf16.mxu0 %v5385_v35  ;;  %2578 = vmatprep.subr.bf16.mxu1 %v5388_v36  ;;  %v5439_v34 = vld [vmem:[%s7640_s1 + $0x3a4] ss:$16 sps:$4 sm:$0xff]   ;;  %v5442_v35 = vld [vmem:[%s7640_s1 + $0x3ac] ss:$16 sps:$4 sm:$0xff]  }
  0x52   :  { %1658 = vmatmul.mubr.bf16.gmra.mrb[8].mxu0 %v260_v37  ;;  %2430 = vmatmul.mubr.bf16.gmra.mrb[8].mxu1 %v260_v37  ;;  %v127_v36 = vld [vmem:[%s7639_s0 + $0x348] sm:$0xff] }
  0x53   :  { %1667 = vmatprep.mubr.bf16.mxu0 %v268_v38  ;;  %2439 = vmatprep.mubr.bf16.mxu1 %v268_v38  ;;  %v135_v37 = vld [vmem:[%s7639_s0 + $0x388] sm:$0xff]  ;;  %v142_v38 = vld [vmem:[%s7639_s0 + $0x3c0] sm:$0xff] }
  0x54   :  { %1807 = vmatpush1.bf16.msra.mxu0 %v5383_v39  ;;  %2579 = vmatpush1.bf16.msra.mxu1 %v5386_v40  ;;  %v5437_v39 = vld [vmem:[%s7640_s1 + $0x3a0] ss:$16 sps:$4 sm:$0xff]   ;;  %v5440_v40 = vld [vmem:[%s7640_s1 + $0x3a8] ss:$16 sps:$4 sm:$0xff]   ;;  %v303_v44 = vpack.c.bf16 %v142_v38, %v135_v37 }
  0x55   :  { %1808 = vmatprep.subr.bf16.mxu0 %v5391_v42  ;;  %2580 = vmatprep.subr.bf16.mxu1 %v5394_v43  ;;  %v5448_v42 = vld [vmem:[%s7640_s1 + $0x3cc] ss:$16 sps:$4 sm:$0xff]   ;;  %v295_v43 = vpack.c.bf16 %v127_v36, %v120_v33  ;;  %v24_v37 = vld [vmem:[%s7639_s0 + $0x10] sm:$0xff] }
  0x56   :  { %v25_v33 = vld [vmem:[%s7639_s0 + $0x18] sm:$0xff]  ;;  %v31_v38 = vld [vmem:[%s7639_s0 + $0x48] sm:$0xff] }
  0x58   :  { %1809 = vmatpush1.bf16.msra.mxu0 %v5389_v47  ;;  %2581 = vmatpush1.bf16.msra.mxu1 %v5392_v48  ;;  %v134_v47 = vld [vmem:[%s7639_s0 + $0x380] sm:$0xff] }
  0x59   :  { %1810 = vmatprep.subr.bf16.mxu0 %v5397_v49  ;;  %2582 = vmatprep.subr.bf16.mxu1 %v5400_v50  ;;  %v5451_v48 = vld [vmem:[%s7640_s1 + $0x3e4] ss:$16 sps:$4 sm:$0xff]   ;;  %v5454_v49 = vld [vmem:[%s7640_s1 + $0x3ec] ss:$16 sps:$4 sm:$0xff]  }
  0x5a   :  { %1668 = vmatmul.mubr.bf16.gmra.mrb[12].mxu0 %v267_v51  ;;  %2440 = vmatmul.mubr.bf16.gmra.mrb[12].mxu1 %v267_v51  ;;  %v141_v50 = vld [vmem:[%s7639_s0 + $0x3b8] sm:$0xff] }
  0x5b   :  { %1677 = vmatprep.mubr.bf16.mxu0 %v275_v52  ;;  %2449 = vmatprep.mubr.bf16.mxu1 %v275_v52  ;;  %v149_v51 = vld [vmem:[%s7639_s0 + $0x3f8] sm:$0xff]  ;;  %v156_v52 = vld [vmem:[%s7639_s0 + $0x430] sm:$0xff] }
  0x5c   :  { %1811 = vmatpush1.bf16.msra.mxu0 %v5395_v53  ;;  %2583 = vmatpush1.bf16.msra.mxu1 %v5398_v54  ;;  %v5449_v53 = vld [vmem:[%s7640_s1 + $0x3e0] ss:$16 sps:$4 sm:$0xff]   ;;  %v5452_v54 = vld [vmem:[%s7640_s1 + $0x3e8] ss:$16 sps:$4 sm:$0xff]   ;;  %v310_v58 = vpack.c.bf16 %v156_v52, %v149_v51 }
  0x5d   :  { %1812 = vmatprep.subr.bf16.mxu0 %v5403_v56  ;;  %2584 = vmatprep.subr.bf16.mxu1 %v5406_v57  ;;  %v5460_v56 = vld [vmem:[%s7640_s1 + $0x40c] ss:$16 sps:$4 sm:$0xff]   ;;  %v302_v57 = vpack.c.bf16 %v141_v50, %v134_v47 }
  0x60   :  { %1813 = vmatpush1.bf16.msra.mxu0 %v5401_v61  ;;  %2585 = vmatpush1.bf16.msra.mxu1 %v5404_v62  ;;  %v163_v61 = vld [vmem:[%s7639_s0 + $0x468] sm:$0xff]  ;;  %v170_v62 = vld [vmem:[%s7639_s0 + $0x4a0] sm:$0xff] }
  0x61   :  { %1814 = vmatprep.subr.bf16.mxu0 %v5409_v63  ;;  %2586 = vmatprep.subr.bf16.mxu1 %v5412_v0  ;;  %v309_v63 = vpack.c.bf16 %v155_v60, %v148_v59  ;;  %v317_v0 = vpack.c.bf16 %v170_v62, %v163_v61 }
  0x62   :  { %1678 = vmatmul.mubr.bf16.gmra.mrb[16].mxu0 %v274_v1  ;;  %2450 = vmatmul.mubr.bf16.gmra.mrb[16].mxu1 %v274_v1  ;;  %v162_v1 = vld [vmem:[%s7639_s0 + $0x460] sm:$0xff] }
  0x63   :  { %1687 = vmatprep.mubr.bf16.mxu0 %v282_v2  ;;  %2459 = vmatprep.mubr.bf16.mxu1 %v282_v2  ;;  %v169_v2 = vld [vmem:[%s7639_s0 + $0x498] sm:$0xff] }
  0x64   :  { %1815 = vmatpush1.bf16.msra.mxu0 %v5407_v3  ;;  %2587 = vmatpush1.bf16.msra.mxu1 %v5410_v4  ;;  %v177_v3 = vld [vmem:[%s7639_s0 + $0x4d8] sm:$0xff]  ;;  %v184_v4 = vld [vmem:[%s7639_s0 + $0x510] sm:$0xff]  ;;  %v316_v5 = vpack.c.bf16 %v169_v2, %v162_v1 }
  0x65   :  { %1816 = vmatprep.subr.bf16.mxu0 %v5415_v6  ;;  %2588 = vmatprep.subr.bf16.mxu1 %v5418_v7  ;;  %v324_v6 = vpack.c.bf16 %v184_v4, %v177_v3  ;;  %v176_v7 = vld [vmem:[%s7639_s0 + $0x4d0] sm:$0xff] }
  0x68   :  { %1817 = vmatpush1.bf16.msra.mxu0 %v5413_v11  ;;  %2589 = vmatpush1.bf16.msra.mxu1 %v5416_v12  ;;  %v323_v11 = vpack.c.bf16 %v183_v8, %v176_v7  ;;  %v331_v12 = vpack.c.bf16 %v198_v10, %v191_v9 }
  0x69   :  { %1818 = vmatprep.subr.bf16.mxu0 %v5421_v13  ;;  %2590 = vmatprep.subr.bf16.mxu1 %v5424_v14  ;;  %v190_v13 = vld [vmem:[%s7639_s0 + $0x540] sm:$0xff]  ;;  %v197_v14 = vld [vmem:[%s7639_s0 + $0x578] sm:$0xff] }
  0x6a   :  { %1688 = vmatmul.mubr.bf16.gmra.mrb[20].mxu0 %v281_v15  ;;  %2460 = vmatmul.mubr.bf16.gmra.mrb[20].mxu1 %v281_v15  ;;  %v205_v15 = vld [vmem:[%s7639_s0 + $0x5b8] sm:$0xff] }
  0x6b   :  { %1697 = vmatprep.mubr.bf16.mxu0 %v289_v16  ;;  %2469 = vmatprep.mubr.bf16.mxu1 %v289_v16  ;;  %v212_v16 = vld [vmem:[%s7639_s0 + $0x5f0] sm:$0xff] }
  0x6c   :  { %1819 = vmatpush1.bf16.msra.mxu0 %v5419_v17  ;;  %2591 = vmatpush1.bf16.msra.mxu1 %v5422_v18  ;;  %v330_v17 = vpack.c.bf16 %v197_v14, %v190_v13  ;;  %v338_v18 = vpack.c.bf16 %v212_v16, %v205_v15 }
  0x6d   :  { %1820 = vmatprep.subr.bf16.mxu0 %v5427_v20  ;;  %2592 = vmatprep.subr.bf16.mxu1 %v5430_v21  ;;  %v211_v20 = vld [vmem:[%s7639_s0 + $0x5e8] sm:$0xff] }
  0x6e   :  { %v219_v21 = vld [vmem:[%s7639_s0 + $0x628] sm:$0xff]  ;;  %v337_v23 = vpack.c.bf16 %v211_v20, %v204_v19 }
  0x6f   :  { %v345_v24 = vpack.c.bf16 %v226_v22, %v219_v21 }
  0x70   :  { %1821 = vmatpush1.bf16.msra.mxu0 %v5425_v25  ;;  %2593 = vmatpush1.bf16.msra.mxu1 %v5428_v26  ;;  %v218_v25 = vld [vmem:[%s7639_s0 + $0x620] sm:$0xff]  ;;  %v225_v26 = vld [vmem:[%s7639_s0 + $0x658] sm:$0xff] }
  0x71   :  { %1822 = vmatprep.subr.bf16.mxu0 %v5433_v27  ;;  %2594 = vmatprep.subr.bf16.mxu1 %v5436_v28  ;;  %v233_v27 = vld [vmem:[%s7639_s0 + $0x698] sm:$0xff]  ;;  %v240_v28 = vld [vmem:[%s7639_s0 + $0x6d0] sm:$0xff] }
  0x72   :  { %1698 = vmatmul.mubr.bf16.gmra.mrb[24].mxu0 %v288_v29  ;;  %2470 = vmatmul.mubr.bf16.gmra.mrb[24].mxu1 %v288_v29  ;;  %v344_v29 = vpack.c.bf16 %v225_v26, %v218_v25 }
  0x73   :  { %1707 = vmatprep.mubr.bf16.mxu0 %v296_v30  ;;  %2479 = vmatprep.mubr.bf16.mxu1 %v296_v30  ;;  %v352_v30 = vpack.c.bf16 %v240_v28, %v233_v27 }
  0x74   :  { %1823 = vmatpush1.bf16.msra.mxu0 %v5431_v31  ;;  %2595 = vmatpush1.bf16.msra.mxu1 %v5434_v32  ;;  %v232_v31 = vld [vmem:[%s7639_s0 + $0x690] sm:$0xff]  ;;  %v239_v32 = vld [vmem:[%s7639_s0 + $0x6c8] sm:$0xff] }
  0x75   :  { %1824 = vmatprep.subr.bf16.mxu0 %v5439_v34  ;;  %2596 = vmatprep.subr.bf16.mxu1 %v5442_v35  ;;  %v32_v34 = vld [vmem:[%s7639_s0 + $0x50] sm:$0xff]  ;;  %v351_v35 = vpack.c.bf16 %v239_v32, %v232_v31 }
  0x76   :  { %v249_v36 = vpack.c.bf16 %v32_v34, %v25_v33 }
  0x78   :  { %1825 = vmatpush1.bf16.msra.mxu0 %v5437_v39  ;;  %2597 = vmatpush1.bf16.msra.mxu1 %v5440_v40  ;;  %v39_v39 = vld [vmem:[%s7639_s0 + $0x88] sm:$0xff]  ;;  %v46_v40 = vld [vmem:[%s7639_s0 + $0xc0] sm:$0xff] }
  0x79   :  { %1826 = vmatprep.subr.bf16.mxu0 %v5445_v41  ;;  %2598 = vmatprep.subr.bf16.mxu1 %v5448_v42  ;;  %v5455_v41 = vld [vmem:[%s7640_s1 + $0x400] ss:$16 sps:$4 sm:$0xff]   ;;  %v5458_v42 = vld [vmem:[%s7640_s1 + $0x408] ss:$16 sps:$4 sm:$0xff]  }
  0x7a   :  { %1708 = vmatmul.mubr.bf16.gmra.mrb[28].mxu0 %v295_v43  ;;  %2480 = vmatmul.mubr.bf16.gmra.mrb[28].mxu1 %v295_v43  ;;  %v248_v43 = vpack.c.bf16 %v31_v38, %v24_v37 }
  0x7b   :  { %1717 = vmatprep.mubr.bf16.mxu0 %v303_v44  ;;  %2489 = vmatprep.mubr.bf16.mxu1 %v303_v44  ;;  %v5463_v44 = vld [vmem:[%s7640_s1 + $0x424] ss:$16 sps:$4 sm:$0xff]  }
  0x7c   :  { %1827 = vmatpush1.bf16.msra.mxu0 %v5443_v45  ;;  %2599 = vmatpush1.bf16.msra.mxu1 %v5446_v46  ;;  %v5466_v45 = vld [vmem:[%s7640_s1 + $0x42c] ss:$16 sps:$4 sm:$0xff]   ;;  %v256_v46 = vpack.c.bf16 %v46_v40, %v39_v39 }
  0x7d   :  { %1828 = vmatprep.subr.bf16.mxu0 %v5451_v48  ;;  %2600 = vmatprep.subr.bf16.mxu1 %v5454_v49 }
  0x80   :  { %1829 = vmatpush1.bf16.msra.mxu0 %v5449_v53  ;;  %2601 = vmatpush1.bf16.msra.mxu1 %v5452_v54 }
  0x81   :  { %1991 = vmatprep.subr.bf16.mxu0 %v5457_v55  ;;  %2763 = vmatprep.subr.bf16.mxu1 %v5460_v56 }
  0x82   :  { %1718 = vmatmul.mubr.bf16.gmra.mrb[32].mxu0 %v302_v57  ;;  %2490 = vmatmul.mubr.bf16.gmra.mrb[32].mxu1 %v302_v57 }
  0x83   :  { %1727 = vmatprep.mubr.bf16.mxu0 %v310_v58  ;;  %2499 = vmatprep.mubr.bf16.mxu1 %v310_v58 }
  0x8a   :  { %1728 = vmatmul.mubr.bf16.gmra.mrb[36].mxu0 %v309_v63  ;;  %2500 = vmatmul.mubr.bf16.gmra.mrb[36].mxu1 %v309_v63 }
  0x8b   :  { %1737 = vmatprep.mubr.bf16.mxu0 %v317_v0  ;;  %2509 = vmatprep.mubr.bf16.mxu1 %v317_v0 }
  0x92   :  { %1738 = vmatmul.mubr.bf16.gmra.mrb[40].mxu0 %v316_v5  ;;  %2510 = vmatmul.mubr.bf16.gmra.mrb[40].mxu1 %v316_v5 }
  0x93   :  { %1747 = vmatprep.mubr.bf16.mxu0 %v324_v6  ;;  %2519 = vmatprep.mubr.bf16.mxu1 %v324_v6 }
  0x9a   :  { %1748 = vmatmul.mubr.bf16.gmra.mrb[44].mxu0 %v323_v11  ;;  %2520 = vmatmul.mubr.bf16.gmra.mrb[44].mxu1 %v323_v11 }
  0x9b   :  { %1757 = vmatprep.mubr.bf16.mxu0 %v331_v12  ;;  %2529 = vmatprep.mubr.bf16.mxu1 %v331_v12 }
  0xa2   :  { %1758 = vmatmul.mubr.bf16.gmra.mrb[48].mxu0 %v330_v17  ;;  %2530 = vmatmul.mubr.bf16.gmra.mrb[48].mxu1 %v330_v17 }
  0xa3   :  { %1767 = vmatprep.mubr.bf16.mxu0 %v338_v18  ;;  %2539 = vmatprep.mubr.bf16.mxu1 %v338_v18 }
  0xaa   :  { %1768 = vmatmul.mubr.bf16.gmra.mrb[52].mxu0 %v337_v23  ;;  %2540 = vmatmul.mubr.bf16.gmra.mrb[52].mxu1 %v337_v23 }
  0xab   :  { %1777 = vmatprep.mubr.bf16.mxu0 %v345_v24  ;;  %2549 = vmatprep.mubr.bf16.mxu1 %v345_v24 }
  0xb2   :  { %1778 = vmatmul.mubr.bf16.gmra.mrb[56].mxu0 %v344_v29  ;;  %2550 = vmatmul.mubr.bf16.gmra.mrb[56].mxu1 %v344_v29 }
  0xb3   :  { %1787 = vmatprep.mubr.bf16.mxu0 %v352_v30  ;;  %2559 = vmatprep.mubr.bf16.mxu1 %v352_v30 }
  0xba   :  { %1788 = vmatmul.mubr.bf16.gmra.mrb[60].mxu0 %v351_v35  ;;  %2560 = vmatmul.mubr.bf16.gmra.mrb[60].mxu1 %v351_v35 }
  0xbb   :  { %1830 = vmatprep.mubr.bf16.mxu0 %v249_v36  ;;  %2602 = vmatprep.mubr.bf16.mxu1 %v249_v36 }
  0xbc   :  { %10 = vsyncpa [#allocation3], 0  ;;  %v38_v47 = vld [vmem:[%s7639_s0 + $0x80] sm:$0xff]  ;;  %v45_v48 = vld [vmem:[%s7639_s0 + $0xb8] sm:$0xff]  ;;  %vm1556_vm0 = vcmask 130048  }
  0xbd   :  { %v5461_v49 = vld [vmem:[%s7640_s1 + $0x420] ss:$16 sps:$4 sm:$0xff]   ;;  %v5464_v50 = vld [vmem:[%s7640_s1 + $0x428] ss:$16 sps:$4 sm:$0xff]   ;;  %v5469_v53 = vld [vmem:[%s7640_s1 + $0x444] ss:$16 sps:$4 sm:$0xff]   ;;  %v255_v55 = vpack.c.bf16 %v45_v48, %v38_v47 }
  0xbe   :  { %v53_v51 = vld [vmem:[%s7639_s0 + $0xf8] sm:$0xff]  ;;  %v60_v52 = vld [vmem:[%s7639_s0 + $0x130] sm:$0xff]  ;;  %v59_v62 = vld [vmem:[%s7639_s0 + $0x128] sm:$0xff] }
  0xbf   :  { %v5472_v54 = vld [vmem:[%s7640_s1 + $0x44c] ss:$16 sps:$4 sm:$0xff]   ;;  %v263_v56 = vpack.c.bf16 %v60_v52, %v53_v51  ;;  %v5467_v57 = vld [vmem:[%s7640_s1 + $0x440] ss:$16 sps:$4 sm:$0xff]   ;;  %v5470_v58 = vld [vmem:[%s7640_s1 + $0x448] ss:$16 sps:$4 sm:$0xff]  }
  0xc0   :  { %v5475_v59 = vld [vmem:[%s7640_s1 + $0x464] ss:$16 sps:$4 sm:$0xff]   ;;  %v5478_v60 = vld [vmem:[%s7640_s1 + $0x46c] ss:$16 sps:$4 sm:$0xff]   ;;  %v5473_v1 = vld [vmem:[%s7640_s1 + $0x460] ss:$16 sps:$4 sm:$0xff]  }
  0xc1   :  { %v52_v61 = vld [vmem:[%s7639_s0 + $0xf0] sm:$0xff]  ;;  %v67_v63 = vld [vmem:[%s7639_s0 + $0x168] sm:$0xff]  ;;  %v74_v0 = vld [vmem:[%s7639_s0 + $0x1a0] sm:$0xff] }
  0xc2   :  { %1831 = vmatmul.mubr.bf16.vlgmr.msra.gmra.mrb[0].mxu0 %v248_v43  ;;  %2603 = vmatmul.mubr.bf16.vlgmr.msra.gmra.mrb[0].mxu1 %v248_v43  ;;  %v5476_v2 = vld [vmem:[%s7640_s1 + $0x468] ss:$16 sps:$4 sm:$0xff]   ;;  %v5481_v3 = vld [vmem:[%s7640_s1 + $0x484] ss:$16 sps:$4 sm:$0xff]   ;;  %v5484_v4 = vld [vmem:[%s7640_s1 + $0x48c] ss:$16 sps:$4 sm:$0xff]   ;;  %v262_v5 = vpack.c.bf16 %v59_v62, %v52_v61  ;;  %v270_v6 = vpack.c.bf16 %v74_v0, %v67_v63 }
  0xc3   :  { %1992 = vmatpush1.bf16.msra.mxu0 %v5455_v41  ;;  %2764 = vmatpush1.bf16.msra.mxu1 %v5458_v42  ;;  %v5479_v7 = vld [vmem:[%s7640_s1 + $0x480] ss:$16 sps:$4 sm:$0xff]   ;;  %v5482_v8 = vld [vmem:[%s7640_s1 + $0x488] ss:$16 sps:$4 sm:$0xff]   ;;  %v5487_v9 = vld [vmem:[%s7640_s1 + $0x4a4] ss:$16 sps:$4 sm:$0xff]  }
  0xc4   :  { %1840 = vmatprep.mubr.bf16.mxu0 %v256_v46  ;;  %2612 = vmatprep.mubr.bf16.mxu1 %v256_v46  ;;  %v5490_v10 = vld [vmem:[%s7640_s1 + $0x4ac] ss:$16 sps:$4 sm:$0xff]   ;;  %v66_v11 = vld [vmem:[%s7639_s0 + $0x160] sm:$0xff]  ;;  %v88_v14 = vld [vmem:[%s7639_s0 + $0x210] sm:$0xff] }
  0xc5   :  { %1993 = vmatprep.subr.bf16.mxu0 %v5463_v44  ;;  %2765 = vmatprep.subr.bf16.mxu1 %v5466_v45  ;;  %v73_v12 = vld [vmem:[%s7639_s0 + $0x198] sm:$0xff]  ;;  %v5485_v15 = vld [vmem:[%s7640_s1 + $0x4a0] ss:$16 sps:$4 sm:$0xff]   ;;  %v5493_v17 = vld [vmem:[%s7640_s1 + $0x4c4] ss:$16 sps:$4 sm:$0xff]  }
  0xc6   :  { %v81_v13 = vld [vmem:[%s7639_s0 + $0x1d8] sm:$0xff]  ;;  %v269_v19 = vpack.c.bf16 %v73_v12, %v66_v11  ;;  %v5491_v21 = vld [vmem:[%s7640_s1 + $0x4c0] ss:$16 sps:$4 sm:$0xff]   ;;  %v5499_v23 = vld [vmem:[%s7640_s1 + $0x4e4] ss:$16 sps:$4 sm:$0xff]  }
  0xc7   :  { %1994 = vmatpush1.bf16.msra.mxu0 %v5461_v49  ;;  %2766 = vmatpush1.bf16.msra.mxu1 %v5464_v50  ;;  %v5488_v16 = vld [vmem:[%s7640_s1 + $0x4a8] ss:$16 sps:$4 sm:$0xff]   ;;  %v5496_v18 = vld [vmem:[%s7640_s1 + $0x4cc] ss:$16 sps:$4 sm:$0xff]   ;;  %v277_v20 = vpack.c.bf16 %v88_v14, %v81_v13  ;;  %v80_v25 = vld [vmem:[%s7639_s0 + $0x1d0] sm:$0xff] }
  0xc8   :  { %1995 = vmatprep.subr.bf16.mxu0 %v5469_v53  ;;  %2767 = vmatprep.subr.bf16.mxu1 %v5472_v54  ;;  %v5494_v22 = vld [vmem:[%s7640_s1 + $0x4c8] ss:$16 sps:$4 sm:$0xff]   ;;  %v5502_v24 = vld [vmem:[%s7640_s1 + $0x4ec] ss:$16 sps:$4 sm:$0xff]   ;;  %v102_v28 = vld [vmem:[%s7639_s0 + $0x280] sm:$0xff] }
  0xc9   :  { %v87_v26 = vld [vmem:[%s7639_s0 + $0x208] sm:$0xff]  ;;  %v5497_v29 = vld [vmem:[%s7640_s1 + $0x4e0] ss:$16 sps:$4 sm:$0xff]   ;;  %v5505_v31 = vld [vmem:[%s7640_s1 + $0x504] ss:$16 sps:$4 sm:$0xff]  }
  0xca   :  { %1841 = vmatmul.mubr.bf16.gmra.mrb[4].mxu0 %v255_v55  ;;  %2613 = vmatmul.mubr.bf16.gmra.mrb[4].mxu1 %v255_v55  ;;  %v95_v27 = vld [vmem:[%s7639_s0 + $0x248] sm:$0xff]  ;;  %v276_v33 = vpack.c.bf16 %v87_v26, %v80_v25  ;;  %v5503_v35 = vld [vmem:[%s7640_s1 + $0x500] ss:$16 sps:$4 sm:$0xff]   ;;  %v5511_v37 = vld [vmem:[%s7640_s1 + $0x524] ss:$16 sps:$4 sm:$0xff]  }
  0xcb   :  { %1850 = vmatprep.mubr.bf16.mxu0 %v263_v56  ;;  %2622 = vmatprep.mubr.bf16.mxu1 %v263_v56  ;;  %v5500_v30 = vld [vmem:[%s7640_s1 + $0x4e8] ss:$16 sps:$4 sm:$0xff]   ;;  %v5508_v32 = vld [vmem:[%s7640_s1 + $0x50c] ss:$16 sps:$4 sm:$0xff]   ;;  %v284_v34 = vpack.c.bf16 %v102_v28, %v95_v27  ;;  %v94_v39 = vld [vmem:[%s7639_s0 + $0x240] sm:$0xff] }
  0xcc   :  { %1996 = vmatpush1.bf16.msra.mxu0 %v5467_v57  ;;  %2768 = vmatpush1.bf16.msra.mxu1 %v5470_v58  ;;  %v5506_v36 = vld [vmem:[%s7640_s1 + $0x508] ss:$16 sps:$4 sm:$0xff]   ;;  %v5514_v38 = vld [vmem:[%s7640_s1 + $0x52c] ss:$16 sps:$4 sm:$0xff]   ;;  %v116_v42 = vld [vmem:[%s7639_s0 + $0x2f0] sm:$0xff] }
  0xcd   :  { %1997 = vmatprep.subr.bf16.mxu0 %v5475_v59  ;;  %2769 = vmatprep.subr.bf16.mxu1 %v5478_v60  ;;  %v101_v40 = vld [vmem:[%s7639_s0 + $0x278] sm:$0xff]  ;;  %v5509_v43 = vld [vmem:[%s7640_s1 + $0x520] ss:$16 sps:$4 sm:$0xff]   ;;  %v5517_v45 = vld [vmem:[%s7640_s1 + $0x544] ss:$16 sps:$4 sm:$0xff]  }
  0xce   :  { %v109_v41 = vld [vmem:[%s7639_s0 + $0x2b8] sm:$0xff]  ;;  %v283_v47 = vpack.c.bf16 %v101_v40, %v94_v39  ;;  %v5515_v49 = vld [vmem:[%s7640_s1 + $0x540] ss:$16 sps:$4 sm:$0xff]   ;;  %v5523_v51 = vld [vmem:[%s7640_s1 + $0x564] ss:$16 sps:$4 sm:$0xff]  }
  0xcf   :  { %v5512_v44 = vld [vmem:[%s7640_s1 + $0x528] ss:$16 sps:$4 sm:$0xff]   ;;  %v5520_v46 = vld [vmem:[%s7640_s1 + $0x54c] ss:$16 sps:$4 sm:$0xff]   ;;  %v291_v48 = vpack.c.bf16 %v116_v42, %v109_v41  ;;  %v108_v53 = vld [vmem:[%s7639_s0 + $0x2b0] sm:$0xff] }
  0xd0   :  { %1998 = vmatpush1.bf16.msra.mxu0 %v5473_v1  ;;  %2770 = vmatpush1.bf16.msra.mxu1 %v5476_v2  ;;  %v5518_v50 = vld [vmem:[%s7640_s1 + $0x548] ss:$16 sps:$4 sm:$0xff]   ;;  %v5526_v52 = vld [vmem:[%s7640_s1 + $0x56c] ss:$16 sps:$4 sm:$0xff]   ;;  %v130_v56 = vld [vmem:[%s7639_s0 + $0x360] sm:$0xff] }
  0xd1   :  { %1999 = vmatprep.subr.bf16.mxu0 %v5481_v3  ;;  %2771 = vmatprep.subr.bf16.mxu1 %v5484_v4  ;;  %v115_v54 = vld [vmem:[%s7639_s0 + $0x2e8] sm:$0xff]  ;;  %v5521_v57 = vld [vmem:[%s7640_s1 + $0x560] ss:$16 sps:$4 sm:$0xff]   ;;  %v5529_v59 = vld [vmem:[%s7640_s1 + $0x584] ss:$16 sps:$4 sm:$0xff]  }
  0xd2   :  { %1851 = vmatmul.mubr.bf16.gmra.mrb[8].mxu0 %v262_v5  ;;  %2623 = vmatmul.mubr.bf16.gmra.mrb[8].mxu1 %v262_v5  ;;  %v123_v55 = vld [vmem:[%s7639_s0 + $0x328] sm:$0xff]  ;;  %v290_v61 = vpack.c.bf16 %v115_v54, %v108_v53  ;;  %v5527_v63 = vld [vmem:[%s7640_s1 + $0x580] ss:$16 sps:$4 sm:$0xff]   ;;  %v5535_v1 = vld [vmem:[%s7640_s1 + $0x5a4] ss:$16 sps:$4 sm:$0xff]  }
  0xd3   :  { %1860 = vmatprep.mubr.bf16.mxu0 %v270_v6  ;;  %2632 = vmatprep.mubr.bf16.mxu1 %v270_v6  ;;  %v5524_v58 = vld [vmem:[%s7640_s1 + $0x568] ss:$16 sps:$4 sm:$0xff]   ;;  %v5532_v60 = vld [vmem:[%s7640_s1 + $0x58c] ss:$16 sps:$4 sm:$0xff]   ;;  %v298_v62 = vpack.c.bf16 %v130_v56, %v123_v55  ;;  %v122_v3 = vld [vmem:[%s7639_s0 + $0x320] sm:$0xff] }
  0xd4   :  { %2000 = vmatpush1.bf16.msra.mxu0 %v5479_v7  ;;  %2772 = vmatpush1.bf16.msra.mxu1 %v5482_v8  ;;  %v5530_v0 = vld [vmem:[%s7640_s1 + $0x588] ss:$16 sps:$4 sm:$0xff]   ;;  %v5538_v2 = vld [vmem:[%s7640_s1 + $0x5ac] ss:$16 sps:$4 sm:$0xff]   ;;  %v144_v6 = vld [vmem:[%s7639_s0 + $0x3d0] sm:$0xff] }
  0xd5   :  { %2001 = vmatprep.subr.bf16.mxu0 %v5487_v9  ;;  %2773 = vmatprep.subr.bf16.mxu1 %v5490_v10  ;;  %v129_v4 = vld [vmem:[%s7639_s0 + $0x358] sm:$0xff]  ;;  %v5533_v7 = vld [vmem:[%s7640_s1 + $0x5a0] ss:$16 sps:$4 sm:$0xff]   ;;  %v5541_v9 = vld [vmem:[%s7640_s1 + $0x5c4] ss:$16 sps:$4 sm:$0xff]  }
  0xd6   :  { %v137_v5 = vld [vmem:[%s7639_s0 + $0x398] sm:$0xff]  ;;  %v297_v11 = vpack.c.bf16 %v129_v4, %v122_v3  ;;  %v5539_v13 = vld [vmem:[%s7640_s1 + $0x5c0] ss:$16 sps:$4 sm:$0xff]  }
  0xd7   :  { %v5536_v8 = vld [vmem:[%s7640_s1 + $0x5a8] ss:$16 sps:$4 sm:$0xff]   ;;  %v5544_v10 = vld [vmem:[%s7640_s1 + $0x5cc] ss:$16 sps:$4 sm:$0xff]   ;;  %v305_v12 = vpack.c.bf16 %v144_v6, %v137_v5  ;;  %v150_v27 = vld [vmem:[%s7639_s0 + $0x400] sm:$0xff] }
  0xd8   :  { %2002 = vmatpush1.bf16.msra.mxu0 %v5485_v15  ;;  %2774 = vmatpush1.bf16.msra.mxu1 %v5488_v16  ;;  %v5542_v14 = vld [vmem:[%s7640_s1 + $0x5c8] ss:$16 sps:$4 sm:$0xff]   ;;  %v5547_v15 = vld [vmem:[%s7640_s1 + $0x5e4] ss:$16 sps:$4 sm:$0xff]   ;;  %v5550_v16 = vld [vmem:[%s7640_s1 + $0x5ec] ss:$16 sps:$4 sm:$0xff]  }
  0xd9   :  { %2003 = vmatprep.subr.bf16.mxu0 %v5493_v17  ;;  %2775 = vmatprep.subr.bf16.mxu1 %v5496_v18  ;;  %v136_v17 = vld [vmem:[%s7639_s0 + $0x390] sm:$0xff]  ;;  %v143_v18 = vld [vmem:[%s7639_s0 + $0x3c8] sm:$0xff]  ;;  %v157_v28 = vld [vmem:[%s7639_s0 + $0x438] sm:$0xff] }
  0xda   :  { %1861 = vmatmul.mubr.bf16.gmra.mrb[12].mxu0 %v269_v19  ;;  %2633 = vmatmul.mubr.bf16.gmra.mrb[12].mxu1 %v269_v19  ;;  %v151_v19 = vld [vmem:[%s7639_s0 + $0x408] sm:$0xff]  ;;  %v304_v25 = vpack.c.bf16 %v143_v18, %v136_v17  ;;  %v178_v39 = vld [vmem:[%s7639_s0 + $0x4e0] sm:$0xff]  ;;  %v185_v40 = vld [vmem:[%s7639_s0 + $0x518] sm:$0xff] }
  0xdb   :  { %1870 = vmatprep.mubr.bf16.mxu0 %v277_v20  ;;  %2642 = vmatprep.mubr.bf16.mxu1 %v277_v20  ;;  %v158_v20 = vld [vmem:[%s7639_s0 + $0x440] sm:$0xff]  ;;  %v193_v41 = vld [vmem:[%s7639_s0 + $0x558] sm:$0xff]  ;;  %v200_v42 = vld [vmem:[%s7639_s0 + $0x590] sm:$0xff] }
  0xdc   :  { %2004 = vmatpush1.bf16.msra.mxu0 %v5491_v21  ;;  %2776 = vmatpush1.bf16.msra.mxu1 %v5494_v22  ;;  %v5545_v21 = vld [vmem:[%s7640_s1 + $0x5e0] ss:$16 sps:$4 sm:$0xff]   ;;  %v5548_v22 = vld [vmem:[%s7640_s1 + $0x5e8] ss:$16 sps:$4 sm:$0xff]   ;;  %v312_v26 = vpack.c.bf16 %v158_v20, %v151_v19 }
  0xdd   :  { %2005 = vmatprep.subr.bf16.mxu0 %v5499_v23  ;;  %2777 = vmatprep.subr.bf16.mxu1 %v5502_v24  ;;  %v5553_v23 = vld [vmem:[%s7640_s1 + $0x604] ss:$16 sps:$4 sm:$0xff]   ;;  %v5556_v24 = vld [vmem:[%s7640_s1 + $0x60c] ss:$16 sps:$4 sm:$0xff]  }
  0xde   :  { %v221_v53 = vld [vmem:[%s7639_s0 + $0x638] sm:$0xff]  ;;  %v228_v54 = vld [vmem:[%s7639_s0 + $0x670] sm:$0xff]  ;;  %v26_v5 = vld [vmem:[%s7639_s0 + $0x20] sm:$0xff] }
  0xdf   :  { %v347_v56 = vpack.c.bf16 %v228_v54, %v221_v53  ;;  %v33_v6 = vld [vmem:[%s7639_s0 + $0x58] sm:$0xff]  ;;  %v54_v19 = vld [vmem:[%s7639_s0 + $0x100] sm:$0xff] }
  0xe0   :  { %2006 = vmatpush1.bf16.msra.mxu0 %v5497_v29  ;;  %2778 = vmatpush1.bf16.msra.mxu1 %v5500_v30  ;;  %v165_v29 = vld [vmem:[%s7639_s0 + $0x478] sm:$0xff]  ;;  %v172_v30 = vld [vmem:[%s7639_s0 + $0x4b0] sm:$0xff] }
  0xe1   :  { %2007 = vmatprep.subr.bf16.mxu0 %v5505_v31  ;;  %2779 = vmatprep.subr.bf16.mxu1 %v5508_v32  ;;  %v311_v31 = vpack.c.bf16 %v157_v28, %v150_v27  ;;  %v319_v32 = vpack.c.bf16 %v172_v30, %v165_v29  ;;  %v61_v20 = vld [vmem:[%s7639_s0 + $0x138] sm:$0xff]  ;;  %v83_v27 = vld [vmem:[%s7639_s0 + $0x1e8] sm:$0xff]  ;;  %v90_v28 = vld [vmem:[%s7639_s0 + $0x220] sm:$0xff] }
  0xe2   :  { %1871 = vmatmul.mubr.bf16.gmra.mrb[16].mxu0 %v276_v33  ;;  %2643 = vmatmul.mubr.bf16.gmra.mrb[16].mxu1 %v276_v33  ;;  %v164_v33 = vld [vmem:[%s7639_s0 + $0x470] sm:$0xff]  ;;  %v279_v30 = vpack.c.bf16 %v90_v28, %v83_v27 }
  0xe3   :  { %1880 = vmatprep.mubr.bf16.mxu0 %v284_v34  ;;  %2652 = vmatprep.mubr.bf16.mxu1 %v284_v34  ;;  %v171_v34 = vld [vmem:[%s7639_s0 + $0x4a8] sm:$0xff] }
  0xe4   :  { %2008 = vmatpush1.bf16.msra.mxu0 %v5503_v35  ;;  %2780 = vmatpush1.bf16.msra.mxu1 %v5506_v36  ;;  %v179_v35 = vld [vmem:[%s7639_s0 + $0x4e8] sm:$0xff]  ;;  %v186_v36 = vld [vmem:[%s7639_s0 + $0x520] sm:$0xff] }
  0xe5   :  { %2009 = vmatprep.subr.bf16.mxu0 %v5511_v37  ;;  %2781 = vmatprep.subr.bf16.mxu1 %v5514_v38  ;;  %v318_v37 = vpack.c.bf16 %v171_v34, %v164_v33  ;;  %v326_v38 = vpack.c.bf16 %v186_v36, %v179_v35  ;;  %v97_v33 = vld [vmem:[%s7639_s0 + $0x258] sm:$0xff]  ;;  %v104_v34 = vld [vmem:[%s7639_s0 + $0x290] sm:$0xff] }
  0xe6   :  { %v286_v36 = vpack.c.bf16 %v104_v34, %v97_v33 }
  0xe8   :  { %2010 = vmatpush1.bf16.msra.mxu0 %v5509_v43  ;;  %2782 = vmatpush1.bf16.msra.mxu1 %v5512_v44  ;;  %v325_v43 = vpack.c.bf16 %v185_v40, %v178_v39  ;;  %v333_v44 = vpack.c.bf16 %v200_v42, %v193_v41  ;;  %v111_v39 = vld [vmem:[%s7639_s0 + $0x2c8] sm:$0xff]  ;;  %v118_v40 = vld [vmem:[%s7639_s0 + $0x300] sm:$0xff] }
  0xe9   :  { %2011 = vmatprep.subr.bf16.mxu0 %v5517_v45  ;;  %2783 = vmatprep.subr.bf16.mxu1 %v5520_v46  ;;  %v192_v45 = vld [vmem:[%s7639_s0 + $0x550] sm:$0xff]  ;;  %v199_v46 = vld [vmem:[%s7639_s0 + $0x588] sm:$0xff]  ;;  %v293_v42 = vpack.c.bf16 %v118_v40, %v111_v39 }
  0xea   :  { %1881 = vmatmul.mubr.bf16.gmra.mrb[20].mxu0 %v283_v47  ;;  %2653 = vmatmul.mubr.bf16.gmra.mrb[20].mxu1 %v283_v47  ;;  %v207_v47 = vld [vmem:[%s7639_s0 + $0x5c8] sm:$0xff]  ;;  %v28_v39 = vld [vmem:[%s7639_s0 + $0x30] sm:$0xff] }
  0xeb   :  { %1890 = vmatprep.mubr.bf16.mxu0 %v291_v48  ;;  %2662 = vmatprep.mubr.bf16.mxu1 %v291_v48  ;;  %v214_v48 = vld [vmem:[%s7639_s0 + $0x600] sm:$0xff]  ;;  %v35_v40 = vld [vmem:[%s7639_s0 + $0x68] sm:$0xff] }
  0xec   :  { %2012 = vmatpush1.bf16.msra.mxu0 %v5515_v49  ;;  %2784 = vmatpush1.bf16.msra.mxu1 %v5518_v50  ;;  %v332_v49 = vpack.c.bf16 %v199_v46, %v192_v45  ;;  %v340_v50 = vpack.c.bf16 %v214_v48, %v207_v47  ;;  %v125_v45 = vld [vmem:[%s7639_s0 + $0x338] sm:$0xff]  ;;  %v132_v46 = vld [vmem:[%s7639_s0 + $0x370] sm:$0xff] }
  0xed   :  { %2013 = vmatprep.subr.bf16.mxu0 %v5523_v51  ;;  %2785 = vmatprep.subr.bf16.mxu1 %v5526_v52  ;;  %v206_v51 = vld [vmem:[%s7639_s0 + $0x5c0] sm:$0xff]  ;;  %v213_v52 = vld [vmem:[%s7639_s0 + $0x5f8] sm:$0xff]  ;;  %v300_v48 = vpack.c.bf16 %v132_v46, %v125_v45  ;;  %v5563_v45 = vld [vmem:[%s7642_s3 + $0xc8] sm:$0xff]  }
  0xee   :  { %v339_v55 = vpack.c.bf16 %v213_v52, %v206_v51  ;;  %v139_v51 = vld [vmem:[%s7639_s0 + $0x3a8] sm:$0xff]  ;;  %v146_v52 = vld [vmem:[%s7639_s0 + $0x3e0] sm:$0xff] }
  0xef   :  { %v307_v54 = vpack.c.bf16 %v146_v52, %v139_v51  ;;  %v42_v46 = vld [vmem:[%s7639_s0 + $0xa0] sm:$0xff]  ;;  %v5567_v51 = vld [vmem:[%s7642_s3 + $0xd0] sm:$0xff]  }
  0xf0   :  { %2014 = vmatpush1.bf16.msra.mxu0 %v5521_v57  ;;  %2786 = vmatpush1.bf16.msra.mxu1 %v5524_v58  ;;  %v220_v57 = vld [vmem:[%s7639_s0 + $0x630] sm:$0xff]  ;;  %v227_v58 = vld [vmem:[%s7639_s0 + $0x668] sm:$0xff] }
  0xf1   :  { %2015 = vmatprep.subr.bf16.mxu0 %v5529_v59  ;;  %2787 = vmatprep.subr.bf16.mxu1 %v5532_v60  ;;  %v235_v59 = vld [vmem:[%s7639_s0 + $0x6a8] sm:$0xff]  ;;  %v242_v60 = vld [vmem:[%s7639_s0 + $0x6e0] sm:$0xff] }
  0xf2   :  { %1891 = vmatmul.mubr.bf16.gmra.mrb[24].mxu0 %v290_v61  ;;  %2663 = vmatmul.mubr.bf16.gmra.mrb[24].mxu1 %v290_v61  ;;  %v346_v61 = vpack.c.bf16 %v227_v58, %v220_v57  ;;  %v153_v57 = vld [vmem:[%s7639_s0 + $0x418] sm:$0xff]  ;;  %v160_v58 = vld [vmem:[%s7639_s0 + $0x450] sm:$0xff] }
  0xf3   :  { %1900 = vmatprep.mubr.bf16.mxu0 %v298_v62  ;;  %2672 = vmatprep.mubr.bf16.mxu1 %v298_v62  ;;  %v354_v62 = vpack.c.bf16 %v242_v60, %v235_v59  ;;  %v314_v60 = vpack.c.bf16 %v160_v58, %v153_v57  ;;  %v56_v57 = vld [vmem:[%s7639_s0 + $0x110] sm:$0xff]  ;;  %v63_v58 = vld [vmem:[%s7639_s0 + $0x148] sm:$0xff] }
  0xf4   :  { %2016 = vmatpush1.bf16.msra.mxu0 %v5527_v63  ;;  %2788 = vmatpush1.bf16.msra.mxu1 %v5530_v0  ;;  %v234_v63 = vld [vmem:[%s7639_s0 + $0x6a0] sm:$0xff]  ;;  %v241_v0 = vld [vmem:[%s7639_s0 + $0x6d8] sm:$0xff] }
  0xf5   :  { %2017 = vmatprep.subr.bf16.mxu0 %v5535_v1  ;;  %2789 = vmatprep.subr.bf16.mxu1 %v5538_v2  ;;  %v27_v1 = vld [vmem:[%s7639_s0 + $0x28] sm:$0xff]  ;;  %v34_v2 = vld [vmem:[%s7639_s0 + $0x60] sm:$0xff]  ;;  %v353_v3 = vpack.c.bf16 %v241_v0, %v234_v63 }
  0xf6   :  { %v251_v4 = vpack.c.bf16 %v34_v2, %v27_v1  ;;  %v167_v63 = vld [vmem:[%s7639_s0 + $0x488] sm:$0xff]  ;;  %v174_v0 = vld [vmem:[%s7639_s0 + $0x4c0] sm:$0xff] }
  0xf7   :  { %v321_v2 = vpack.c.bf16 %v174_v0, %v167_v63  ;;  %v266_v63 = vpack.c.bf16 %v63_v58, %v56_v57  ;;  %v5574_v0 = vld [vmem:[%s7642_s3 + $0x20] sm:$0xff]  }
  0xf8   :  { %2018 = vmatpush1.bf16.msra.mxu0 %v5533_v7  ;;  %2790 = vmatpush1.bf16.msra.mxu1 %v5536_v8  ;;  %v41_v7 = vld [vmem:[%s7639_s0 + $0x98] sm:$0xff]  ;;  %v48_v8 = vld [vmem:[%s7639_s0 + $0xd0] sm:$0xff] }
  0xf9   :  { %2019 = vmatprep.subr.bf16.mxu0 %v5541_v9  ;;  %2791 = vmatprep.subr.bf16.mxu1 %v5544_v10  ;;  %v250_v9 = vpack.c.bf16 %v33_v6, %v26_v5  ;;  %v5551_v10 = vld [vmem:[%s7640_s1 + $0x600] ss:$16 sps:$4 sm:$0xff]   ;;  %v181_v5 = vld [vmem:[%s7639_s0 + $0x4f8] sm:$0xff] }
  0xfa   :  { %1901 = vmatmul.mubr.bf16.gmra.mrb[28].mxu0 %v297_v11  ;;  %2673 = vmatmul.mubr.bf16.gmra.mrb[28].mxu1 %v297_v11  ;;  %v5554_v11 = vld [vmem:[%s7640_s1 + $0x608] ss:$16 sps:$4 sm:$0xff]   ;;  %v188_v6 = vld [vmem:[%s7639_s0 + $0x530] sm:$0xff] }
  0xfb   :  { %1910 = vmatprep.mubr.bf16.mxu0 %v305_v12  ;;  %2682 = vmatprep.mubr.bf16.mxu1 %v305_v12  ;;  %v258_v12 = vpack.c.bf16 %v48_v8, %v41_v7  ;;  %v328_v8 = vpack.c.bf16 %v188_v6, %v181_v5  ;;  %v77_v5 = vld [vmem:[%s7639_s0 + $0x1b8] sm:$0xff]  ;;  %v5578_v6 = vld [vmem:[%s7642_s3 + $0x28] sm:$0xff]  }
  0xfc   :  { %2020 = vmatpush1.bf16.msra.mxu0 %v5539_v13  ;;  %2792 = vmatpush1.bf16.msra.mxu1 %v5542_v14  ;;  %v40_v13 = vld [vmem:[%s7639_s0 + $0x90] sm:$0xff]  ;;  %v47_v14 = vld [vmem:[%s7639_s0 + $0xc8] sm:$0xff] }
  0xfd   :  { %2021 = vmatprep.subr.bf16.mxu0 %v5547_v15  ;;  %2793 = vmatprep.subr.bf16.mxu1 %v5550_v16  ;;  %v55_v15 = vld [vmem:[%s7639_s0 + $0x108] sm:$0xff]  ;;  %v62_v16 = vld [vmem:[%s7639_s0 + $0x140] sm:$0xff]  ;;  %v257_v17 = vpack.c.bf16 %v47_v14, %v40_v13 }
  0xfe   :  { %v265_v18 = vpack.c.bf16 %v62_v16, %v55_v15  ;;  %v5557_v15 = vld [vmem:[%s7642_s3 + $0x40] sm:$0xff]  }
  0xff   :  { %v194_v16 = vld [vmem:[%s7639_s0 + $0x560] sm:$0xff] }
 0x100   :  { %2022 = vmatpush1.bf16.msra.mxu0 %v5545_v21  ;;  %2794 = vmatpush1.bf16.msra.mxu1 %v5548_v22  ;;  %v69_v21 = vld [vmem:[%s7639_s0 + $0x178] sm:$0xff]  ;;  %v76_v22 = vld [vmem:[%s7639_s0 + $0x1b0] sm:$0xff] }
 0x101   :  { %2184 = vmatprep.subr.bf16.mxu0 %v5553_v23  ;;  %2956 = vmatprep.subr.bf16.mxu1 %v5556_v24  ;;  %v264_v23 = vpack.c.bf16 %v61_v20, %v54_v19  ;;  %v272_v24 = vpack.c.bf16 %v76_v22, %v69_v21  ;;  %v216_v19 = vld [vmem:[%s7639_s0 + $0x610] sm:$0xff]  ;;  %v5559_v22 = vld [vmem:[%s7642_s3 + $0xc0] sm:$0xff]  }
 0x102   :  { %1911 = vmatmul.mubr.bf16.gmra.mrb[32].mxu0 %v304_v25  ;;  %2683 = vmatmul.mubr.bf16.gmra.mrb[32].mxu1 %v304_v25  ;;  %v68_v25 = vld [vmem:[%s7639_s0 + $0x170] sm:$0xff] }
 0x103   :  { %1920 = vmatprep.mubr.bf16.mxu0 %v312_v26  ;;  %2692 = vmatprep.mubr.bf16.mxu1 %v312_v26  ;;  %v75_v26 = vld [vmem:[%s7639_s0 + $0x1a8] sm:$0xff] }
 0x104   :  { %v271_v29 = vpack.c.bf16 %v75_v26, %v68_v25  ;;  %v223_v25 = vld [vmem:[%s7639_s0 + $0x648] sm:$0xff]  ;;  %v230_v26 = vld [vmem:[%s7639_s0 + $0x680] sm:$0xff] }
 0x105   :  { %v349_v28 = vpack.c.bf16 %v230_v26, %v223_v25  ;;  %v126_v26 = vld [vmem:[%s7639_s0 + $0x340] sm:$0xff] }
 0x10a   :  { %1921 = vmatmul.mubr.bf16.gmra.mrb[36].mxu0 %v311_v31  ;;  %2693 = vmatmul.mubr.bf16.gmra.mrb[36].mxu1 %v311_v31  ;;  %v82_v31 = vld [vmem:[%s7639_s0 + $0x1e0] sm:$0xff] }
 0x10b   :  { %1930 = vmatprep.mubr.bf16.mxu0 %v319_v32  ;;  %2702 = vmatprep.mubr.bf16.mxu1 %v319_v32  ;;  %v89_v32 = vld [vmem:[%s7639_s0 + $0x218] sm:$0xff] }
 0x10c   :  { %v278_v35 = vpack.c.bf16 %v89_v32, %v82_v31  ;;  %v237_v31 = vld [vmem:[%s7639_s0 + $0x6b8] sm:$0xff]  ;;  %v244_v32 = vld [vmem:[%s7639_s0 + $0x6f0] sm:$0xff] }
 0x10d   :  { %v356_v34 = vpack.c.bf16 %v244_v32, %v237_v31  ;;  %v154_v32 = vld [vmem:[%s7639_s0 + $0x420] sm:$0xff] }
 0x112   :  { %1931 = vmatmul.mubr.bf16.gmra.mrb[40].mxu0 %v318_v37  ;;  %2703 = vmatmul.mubr.bf16.gmra.mrb[40].mxu1 %v318_v37  ;;  %v96_v37 = vld [vmem:[%s7639_s0 + $0x250] sm:$0xff] }
 0x113   :  { %1940 = vmatprep.mubr.bf16.mxu0 %v326_v38  ;;  %2712 = vmatprep.mubr.bf16.mxu1 %v326_v38  ;;  %v103_v38 = vld [vmem:[%s7639_s0 + $0x288] sm:$0xff] }
 0x114   :  { %v285_v41 = vpack.c.bf16 %v103_v38, %v96_v37  ;;  %v5741_v38 = vmov 0  }
 0x11a   :  { %1941 = vmatmul.mubr.bf16.gmra.mrb[44].mxu0 %v325_v43  ;;  %2713 = vmatmul.mubr.bf16.gmra.mrb[44].mxu1 %v325_v43  ;;  %v110_v43 = vld [vmem:[%s7639_s0 + $0x2c0] sm:$0xff] }
 0x11b   :  { %1950 = vmatprep.mubr.bf16.mxu0 %v333_v44  ;;  %2722 = vmatprep.mubr.bf16.mxu1 %v333_v44  ;;  %v117_v44 = vld [vmem:[%s7639_s0 + $0x2f8] sm:$0xff] }
 0x11c   :  { %v292_v47 = vpack.c.bf16 %v117_v44, %v110_v43  ;;  %v5560_v43 = vld [vmem:[%s7642_s3 + $0x80] sm:$0xff]   ;;  %v5561_v44 = vld [vmem:[%s7642_s3 + $0x48] sm:$0xff]  }
 0x122   :  { %1951 = vmatmul.mubr.bf16.gmra.mrb[48].mxu0 %v332_v49  ;;  %2723 = vmatmul.mubr.bf16.gmra.mrb[48].mxu1 %v332_v49  ;;  %v124_v49 = vld [vmem:[%s7639_s0 + $0x330] sm:$0xff] }
 0x123   :  { %1960 = vmatprep.mubr.bf16.mxu0 %v340_v50  ;;  %2732 = vmatprep.mubr.bf16.mxu1 %v340_v50  ;;  %v131_v50 = vld [vmem:[%s7639_s0 + $0x368] sm:$0xff] }
 0x124   :  { %v299_v53 = vpack.c.bf16 %v131_v50, %v124_v49  ;;  %v5564_v49 = vld [vmem:[%s7642_s3 + $0x88] sm:$0xff]   ;;  %v5565_v50 = vld [vmem:[%s7642_s3 + $0x50] sm:$0xff]  }
 0x12a   :  { %1961 = vmatmul.mubr.bf16.gmra.mrb[52].mxu0 %v339_v55  ;;  %2733 = vmatmul.mubr.bf16.gmra.mrb[52].mxu1 %v339_v55  ;;  %v138_v55 = vld [vmem:[%s7639_s0 + $0x3a0] sm:$0xff] }
 0x12b   :  { %1970 = vmatprep.mubr.bf16.mxu0 %v347_v56  ;;  %2742 = vmatprep.mubr.bf16.mxu1 %v347_v56  ;;  %v145_v56 = vld [vmem:[%s7639_s0 + $0x3d8] sm:$0xff] }
 0x12c   :  { %v306_v59 = vpack.c.bf16 %v145_v56, %v138_v55  ;;  %v5569_v55 = vld [vmem:[%s7642_s3 + $0x58] sm:$0xff]  }
 0x12d   :  { %v5571_v56 = vld [vmem:[%s7642_s3 + $0xd8] sm:$0xff]  }
 0x132   :  { %1971 = vmatmul.mubr.bf16.gmra.mrb[56].mxu0 %v346_v61  ;;  %2743 = vmatmul.mubr.bf16.gmra.mrb[56].mxu1 %v346_v61  ;;  %v152_v61 = vld [vmem:[%s7639_s0 + $0x410] sm:$0xff] }
 0x133   :  { %1980 = vmatprep.mubr.bf16.mxu0 %v354_v62  ;;  %2752 = vmatprep.mubr.bf16.mxu1 %v354_v62  ;;  %v159_v62 = vld [vmem:[%s7639_s0 + $0x448] sm:$0xff] }
 0x134   :  { %v313_v1 = vpack.c.bf16 %v159_v62, %v152_v61  ;;  %v5573_v61 = vld [vmem:[%s7642_s3 + $0x60] sm:$0xff]  }
 0x135   :  { %v5575_v62 = vld [vmem:[%s7642_s3 + $0xe0] sm:$0xff]  }
 0x13a   :  { %1981 = vmatmul.mubr.bf16.gmra.mrb[60].mxu0 %v353_v3  ;;  %2753 = vmatmul.mubr.bf16.gmra.mrb[60].mxu1 %v353_v3  ;;  %v166_v3 = vld [vmem:[%s7639_s0 + $0x480] sm:$0xff] }
 0x13b   :  { %2023 = vmatprep.mubr.bf16.mxu0 %v251_v4  ;;  %2795 = vmatprep.mubr.bf16.mxu1 %v251_v4  ;;  %v173_v4 = vld [vmem:[%s7639_s0 + $0x4b8] sm:$0xff] }
 0x13c   :  { %v320_v7 = vpack.c.bf16 %v173_v4, %v166_v3  ;;  %v5579_v3 = vld [vmem:[%s7642_s3 + $0xe8] sm:$0xff]   ;;  %v70_v4 = vld [vmem:[%s7639_s0 + $0x180] sm:$0xff] }
 0x142   :  { %2024 = vmatmul.mubr.bf16.vlgmr.msra.gmra.mrb[0].mxu0 %v250_v9  ;;  %2796 = vmatmul.mubr.bf16.vlgmr.msra.gmra.mrb[0].mxu1 %v250_v9  ;;  %v180_v9 = vld [vmem:[%s7639_s0 + $0x4f0] sm:$0xff] }
 0x143   :  { %2185 = vmatpush1.bf16.msra.mxu0 %v5551_v10  ;;  %2957 = vmatpush1.bf16.msra.mxu1 %v5554_v11  ;;  %v187_v10 = vld [vmem:[%s7639_s0 + $0x528] sm:$0xff] }
 0x144   :  { %2033 = vmatprep.mubr.bf16.mxu0 %v258_v12  ;;  %2805 = vmatprep.mubr.bf16.mxu1 %v258_v12  ;;  %v195_v11 = vld [vmem:[%s7639_s0 + $0x568] sm:$0xff]  ;;  %v202_v12 = vld [vmem:[%s7639_s0 + $0x5a0] sm:$0xff]  ;;  %v327_v13 = vpack.c.bf16 %v187_v10, %v180_v9  ;;  %v5583_v9 = vld [vmem:[%s7642_s3 + $0xf0] sm:$0xff]   ;;  %v273_v10 = vpack.c.bf16 %v77_v5, %v70_v4 }
 0x145   :  { %v335_v14 = vpack.c.bf16 %v202_v12, %v195_v11  ;;  %4523 = vmatprep.subr.bf16.mxu0 %v5557_v15  ;;  %4635 = vmatprep.subr.bf16.mxu1 %v5559_v22  ;;  %v5582_v11 = vld [vmem:[%s7642_s3 + $0x30] sm:$0xff]  }
 0x146   :  { %v5584_v12 = vld [vmem:[%s7642_s3 + $0xb0] sm:$0xff]  }
 0x147   :  { %v84_v15 = vld [vmem:[%s7639_s0 + $0x1f0] sm:$0xff] }
 0x14a   :  { %2034 = vmatmul.mubr.bf16.gmra.mrb[4].mxu0 %v257_v17  ;;  %2806 = vmatmul.mubr.bf16.gmra.mrb[4].mxu1 %v257_v17  ;;  %v201_v17 = vld [vmem:[%s7639_s0 + $0x598] sm:$0xff] }
 0x14b   :  { %2043 = vmatprep.mubr.bf16.mxu0 %v265_v18  ;;  %2815 = vmatprep.mubr.bf16.mxu1 %v265_v18  ;;  %v209_v18 = vld [vmem:[%s7639_s0 + $0x5d8] sm:$0xff]  ;;  %v334_v20 = vpack.c.bf16 %v201_v17, %v194_v16  ;;  %v91_v16 = vld [vmem:[%s7639_s0 + $0x228] sm:$0xff] }
 0x14c   :  { %v342_v21 = vpack.c.bf16 %v216_v19, %v209_v18  ;;  %v5586_v17 = vld [vmem:[%s7642_s3 + $0x38] sm:$0xff]   ;;  %v280_v19 = vpack.c.bf16 %v91_v16, %v84_v15 }
 0x14d   :  { %v5588_v18 = vld [vmem:[%s7642_s3 + $0xb8] sm:$0xff]  }
 0x152   :  { %2044 = vmatmul.mubr.bf16.gmra.mrb[8].mxu0 %v264_v23  ;;  %2816 = vmatmul.mubr.bf16.gmra.mrb[8].mxu1 %v264_v23  ;;  %v208_v23 = vld [vmem:[%s7639_s0 + $0x5d0] sm:$0xff] }
 0x153   :  { %2053 = vmatprep.mubr.bf16.mxu0 %v272_v24  ;;  %2825 = vmatprep.mubr.bf16.mxu1 %v272_v24  ;;  %v215_v24 = vld [vmem:[%s7639_s0 + $0x608] sm:$0xff] }
 0x154   :  { %v341_v27 = vpack.c.bf16 %v215_v24, %v208_v23  ;;  %v112_v23 = vld [vmem:[%s7639_s0 + $0x2d0] sm:$0xff]  ;;  %v119_v24 = vld [vmem:[%s7639_s0 + $0x308] sm:$0xff] }
 0x155   :  { %v294_v25 = vpack.c.bf16 %v119_v24, %v112_v23 }
 0x15a   :  { %2054 = vmatmul.mubr.bf16.gmra.mrb[12].mxu0 %v271_v29  ;;  %2826 = vmatmul.mubr.bf16.gmra.mrb[12].mxu1 %v271_v29  ;;  %v222_v29 = vld [vmem:[%s7639_s0 + $0x640] sm:$0xff] }
 0x15b   :  { %2063 = vmatprep.mubr.bf16.mxu0 %v279_v30  ;;  %2835 = vmatprep.mubr.bf16.mxu1 %v279_v30  ;;  %v229_v30 = vld [vmem:[%s7639_s0 + $0x678] sm:$0xff] }
 0x15c   :  { %v348_v33 = vpack.c.bf16 %v229_v30, %v222_v29  ;;  %v140_v29 = vld [vmem:[%s7639_s0 + $0x3b0] sm:$0xff]  ;;  %v147_v30 = vld [vmem:[%s7639_s0 + $0x3e8] sm:$0xff] }
 0x15d   :  { %v308_v31 = vpack.c.bf16 %v147_v30, %v140_v29 }
 0x162   :  { %2064 = vmatmul.mubr.bf16.gmra.mrb[16].mxu0 %v278_v35  ;;  %2836 = vmatmul.mubr.bf16.gmra.mrb[16].mxu1 %v278_v35  ;;  %v236_v35 = vld [vmem:[%s7639_s0 + $0x6b0] sm:$0xff] }
 0x163   :  { %2073 = vmatprep.mubr.bf16.mxu0 %v286_v36  ;;  %2845 = vmatprep.mubr.bf16.mxu1 %v286_v36  ;;  %v243_v36 = vld [vmem:[%s7639_s0 + $0x6e8] sm:$0xff] }
 0x164   :  { %v355_v37 = vpack.c.bf16 %v243_v36, %v236_v35  ;;  %v168_v35 = vld [vmem:[%s7639_s0 + $0x490] sm:$0xff]  ;;  %v175_v36 = vld [vmem:[%s7639_s0 + $0x4c8] sm:$0xff] }
 0x16a   :  { %2074 = vmatmul.mubr.bf16.gmra.mrb[20].mxu0 %v285_v41  ;;  %2846 = vmatmul.mubr.bf16.gmra.mrb[20].mxu1 %v285_v41  ;;  %v252_v41 = vpack.c.bf16 %v35_v40, %v28_v39  ;;  %v182_v39 = vld [vmem:[%s7639_s0 + $0x500] sm:$0xff]  ;;  %v189_v40 = vld [vmem:[%s7639_s0 + $0x538] sm:$0xff] }
 0x16b   :  { %2083 = vmatprep.mubr.bf16.mxu0 %v293_v42  ;;  %2855 = vmatprep.mubr.bf16.mxu1 %v293_v42  ;;  %v5558_v42 = vld [vmem:[%s7642_s3] sm:$0xff]  }
 0x172   :  { %2084 = vmatmul.mubr.bf16.gmra.mrb[24].mxu0 %v292_v47  ;;  %2856 = vmatmul.mubr.bf16.gmra.mrb[24].mxu1 %v292_v47  ;;  %v49_v47 = vld [vmem:[%s7639_s0 + $0xd8] sm:$0xff] }
 0x173   :  { %2093 = vmatprep.mubr.bf16.mxu0 %v300_v48  ;;  %2865 = vmatprep.mubr.bf16.mxu1 %v300_v48  ;;  %v5562_v48 = vld [vmem:[%s7642_s3 + $0x8] sm:$0xff]   ;;  %v259_v52 = vpack.c.bf16 %v49_v47, %v42_v46  ;;  %v217_v46 = vld [vmem:[%s7639_s0 + $0x618] sm:$0xff] }
 0x17a   :  { %2094 = vmatmul.mubr.bf16.gmra.mrb[28].mxu0 %v299_v53  ;;  %2866 = vmatmul.mubr.bf16.gmra.mrb[28].mxu1 %v299_v53  ;;  %v5566_v53 = vld [vmem:[%s7642_s3 + $0x10] sm:$0xff]  }
 0x17b   :  { %2103 = vmatprep.mubr.bf16.mxu0 %v307_v54  ;;  %2875 = vmatprep.mubr.bf16.mxu1 %v307_v54  ;;  %v5568_v54 = vld [vmem:[%s7642_s3 + $0x90] sm:$0xff]  }
 0x182   :  { %2104 = vmatmul.mubr.bf16.gmra.mrb[32].mxu0 %v306_v59  ;;  %2876 = vmatmul.mubr.bf16.gmra.mrb[32].mxu1 %v306_v59  ;;  %v5570_v59 = vld [vmem:[%s7642_s3 + $0x18] sm:$0xff]  }
 0x183   :  { %2113 = vmatprep.mubr.bf16.mxu0 %v314_v60  ;;  %2885 = vmatprep.mubr.bf16.mxu1 %v314_v60  ;;  %v5572_v60 = vld [vmem:[%s7642_s3 + $0x98] sm:$0xff]  }
 0x18a   :  { %2114 = vmatmul.mubr.bf16.gmra.mrb[36].mxu0 %v313_v1  ;;  %2886 = vmatmul.mubr.bf16.gmra.mrb[36].mxu1 %v313_v1  ;;  %v5576_v1 = vld [vmem:[%s7642_s3 + $0xa0] sm:$0xff]  }
 0x18b   :  { %2123 = vmatprep.mubr.bf16.mxu0 %v321_v2  ;;  %2895 = vmatprep.mubr.bf16.mxu1 %v321_v2  ;;  %v5577_v2 = vld [vmem:[%s7642_s3 + $0x68] sm:$0xff]  }
 0x192   :  { %2124 = vmatmul.mubr.bf16.gmra.mrb[40].mxu0 %v320_v7  ;;  %2896 = vmatmul.mubr.bf16.gmra.mrb[40].mxu1 %v320_v7  ;;  %v5580_v7 = vld [vmem:[%s7642_s3 + $0xa8] sm:$0xff]  }
 0x193   :  { %2133 = vmatprep.mubr.bf16.mxu0 %v328_v8  ;;  %2905 = vmatprep.mubr.bf16.mxu1 %v328_v8  ;;  %v5581_v8 = vld [vmem:[%s7642_s3 + $0x70] sm:$0xff]  }
 0x19a   :  { %2134 = vmatmul.mubr.bf16.gmra.mrb[44].mxu0 %v327_v13  ;;  %2906 = vmatmul.mubr.bf16.gmra.mrb[44].mxu1 %v327_v13  ;;  %v5585_v13 = vld [vmem:[%s7642_s3 + $0x78] sm:$0xff]  }
 0x19b   :  { %2143 = vmatprep.mubr.bf16.mxu0 %v335_v14  ;;  %2915 = vmatprep.mubr.bf16.mxu1 %v335_v14  ;;  %v5587_v14 = vld [vmem:[%s7642_s3 + $0xf8] sm:$0xff]  }
 0x1a2   :  { %2144 = vmatmul.mubr.bf16.gmra.mrb[48].mxu0 %v334_v20  ;;  %2916 = vmatmul.mubr.bf16.gmra.mrb[48].mxu1 %v334_v20  ;;  %v98_v20 = vld [vmem:[%s7639_s0 + $0x260] sm:$0xff] }
 0x1a3   :  { %2153 = vmatprep.mubr.bf16.mxu0 %v342_v21  ;;  %2925 = vmatprep.mubr.bf16.mxu1 %v342_v21  ;;  %v105_v21 = vld [vmem:[%s7639_s0 + $0x298] sm:$0xff] }
 0x1a4   :  { %v287_v22 = vpack.c.bf16 %v105_v21, %v98_v20 }
 0x1aa   :  { %2154 = vmatmul.mubr.bf16.gmra.mrb[52].mxu0 %v341_v27  ;;  %2926 = vmatmul.mubr.bf16.gmra.mrb[52].mxu1 %v341_v27  ;;  %v133_v27 = vld [vmem:[%s7639_s0 + $0x378] sm:$0xff] }
 0x1ab   :  { %2163 = vmatprep.mubr.bf16.mxu0 %v349_v28  ;;  %2935 = vmatprep.mubr.bf16.mxu1 %v349_v28  ;;  %v301_v28 = vpack.c.bf16 %v133_v27, %v126_v26 }
 0x1b2   :  { %2164 = vmatmul.mubr.bf16.gmra.mrb[56].mxu0 %v348_v33  ;;  %2936 = vmatmul.mubr.bf16.gmra.mrb[56].mxu1 %v348_v33  ;;  %v161_v33 = vld [vmem:[%s7639_s0 + $0x458] sm:$0xff] }
 0x1b3   :  { %2173 = vmatprep.mubr.bf16.mxu0 %v356_v34  ;;  %2945 = vmatprep.mubr.bf16.mxu1 %v356_v34  ;;  %v315_v34 = vpack.c.bf16 %v161_v33, %v154_v32 }
 0x1ba   :  { %2174 = vmatmul.mubr.bf16.gmra.mrb[60].mxu0 %v355_v37  ;;  %2946 = vmatmul.mubr.bf16.gmra.mrb[60].mxu1 %v355_v37  ;;  %v322_v37 = vpack.c.bf16 %v175_v36, %v168_v35 }
 0x1bb   :  { %2216 = vmatprep.mubr.bf16.mxu0 %v5741_v38  ;;  %2988 = vmatprep.mubr.bf16.mxu1 %v5741_v38 }
 0x1c2   :  { %4458 = vmatmul.mubr.msk.bf16.vlgmr.msra.gmra.mrb[0].mxu0 %vm1556_vm0, %v252_v41  ;;  %4474 = vmatmul.mubr.msk.bf16.vlgmr.msra.gmra.mrb[0].mxu1 %vm1556_vm0, %v252_v41  ;;  %v329_v41 = vpack.c.bf16 %v189_v40, %v182_v39 }
 0x1c3   :  { %2226 = vmatprep.mubr.bf16.mxu0 %v5741_v38  ;;  %2998 = vmatprep.mubr.bf16.mxu1 %v5741_v38 }
 0x1c4   :  { %4524 = vmatpush3.bf16.msra.mxu0 %v5558_v42  ;;  %4636 = vmatpush3.bf16.msra.mxu1 %v5560_v43  ;;  %v196_v42 = vld [vmem:[%s7639_s0 + $0x570] sm:$0xff]  ;;  %v203_v43 = vld [vmem:[%s7639_s0 + $0x5a8] sm:$0xff] }
 0x1c5   :  { %4525 = vmatprep.subr.bf16.mxu0 %v5561_v44  ;;  %4637 = vmatprep.subr.bf16.mxu1 %v5563_v45  ;;  %v336_v44 = vpack.c.bf16 %v203_v43, %v196_v42  ;;  %v210_v45 = vld [vmem:[%s7639_s0 + $0x5e0] sm:$0xff] }
 0x1c6   :  { %v343_v47 = vpack.c.bf16 %v217_v46, %v210_v45 }
 0x1c8   :  { %4526 = vmatpush3.bf16.msra.mxu0 %v5562_v48  ;;  %4638 = vmatpush3.bf16.msra.mxu1 %v5564_v49  ;;  %v224_v48 = vld [vmem:[%s7639_s0 + $0x650] sm:$0xff]  ;;  %v231_v49 = vld [vmem:[%s7639_s0 + $0x688] sm:$0xff] }
 0x1c9   :  { %4527 = vmatprep.subr.bf16.mxu0 %v5565_v50  ;;  %4639 = vmatprep.subr.bf16.mxu1 %v5567_v51  ;;  %v350_v50 = vpack.c.bf16 %v231_v49, %v224_v48  ;;  %v238_v51 = vld [vmem:[%s7639_s0 + $0x6c0] sm:$0xff] }
 0x1ca   :  { %4459 = vmatmul.mubr.msk.bf16.gmra.mrb[4].mxu0 %vm1556_vm0, %v259_v52  ;;  %4475 = vmatmul.mubr.msk.bf16.gmra.mrb[4].mxu1 %vm1556_vm0, %v259_v52  ;;  %v245_v52 = vld [vmem:[%s7639_s0 + $0x6f8] sm:$0xff] }
 0x1cb   :  { %2236 = vmatprep.mubr.bf16.mxu0 %v5741_v38  ;;  %3008 = vmatprep.mubr.bf16.mxu1 %v5741_v38 }
 0x1cc   :  { %4528 = vmatpush3.bf16.msra.mxu0 %v5566_v53  ;;  %4640 = vmatpush3.bf16.msra.mxu1 %v5568_v54  ;;  %v357_v53 = vpack.c.bf16 %v245_v52, %v238_v51  ;;  %v556_v54 = vlaneseq }
 0x1cd   :  { %4529 = vmatprep.subr.bf16.mxu0 %v5569_v55  ;;  %4641 = vmatprep.subr.bf16.mxu1 %v5571_v56 }
 0x1ce   :  { %v557_v55 = vshrl.u32 %v556_v54, 7 }
 0x1d0   :  { %4530 = vmatpush3.bf16.msra.mxu0 %v5570_v59  ;;  %4642 = vmatpush3.bf16.msra.mxu1 %v5572_v60  ;;  %v558_v56 = vsub.s32 0, %v557_v55  ;;  %v566_v57 = vsub.s32 2, %v557_v55  ;;  %v562_v58 = vsub.s32 1, %v557_v55  ;;  %v570_v59 = vsub.s32 3, %v557_v55 }
 0x1d1   :  { %4531 = vmatprep.subr.bf16.mxu0 %v5573_v61  ;;  %4643 = vmatprep.subr.bf16.mxu1 %v5575_v62 }
 0x1d2   :  { %4460 = vmatmul.mubr.msk.bf16.gmra.mrb[8].mxu0 %vm1556_vm0, %v266_v63  ;;  %4476 = vmatmul.mubr.msk.bf16.gmra.mrb[8].mxu1 %vm1556_vm0, %v266_v63 }
 0x1d3   :  { %2246 = vmatprep.mubr.bf16.mxu0 %v5741_v38  ;;  %3018 = vmatprep.mubr.bf16.mxu1 %v5741_v38 }
 0x1d4   :  { %4532 = vmatpush3.bf16.msra.mxu0 %v5574_v0  ;;  %4644 = vmatpush3.bf16.msra.mxu1 %v5576_v1 }
 0x1d5   :  { %4533 = vmatprep.subr.bf16.mxu0 %v5577_v2  ;;  %4645 = vmatprep.subr.bf16.mxu1 %v5579_v3 }
 0x1d8   :  { %4534 = vmatpush3.bf16.msra.mxu0 %v5578_v6  ;;  %4646 = vmatpush3.bf16.msra.mxu1 %v5580_v7 }
 0x1d9   :  { %4535 = vmatprep.subr.bf16.mxu0 %v5581_v8  ;;  %4647 = vmatprep.subr.bf16.mxu1 %v5583_v9 }
 0x1da   :  { %4461 = vmatmul.mubr.msk.bf16.gmra.mrb[12].mxu0 %vm1556_vm0, %v273_v10  ;;  %4477 = vmatmul.mubr.msk.bf16.gmra.mrb[12].mxu1 %vm1556_vm0, %v273_v10 }
 0x1db   :  { %2256 = vmatprep.mubr.bf16.mxu0 %v5741_v38  ;;  %3028 = vmatprep.mubr.bf16.mxu1 %v5741_v38 }
 0x1dc   :  { %4536 = vmatpush3.bf16.msra.mxu0 %v5582_v11  ;;  %4648 = vmatpush3.bf16.msra.mxu1 %v5584_v12 }
 0x1dd   :  { %4537 = vmatprep.subr.bf16.mxu0 %v5585_v13  ;;  %4649 = vmatprep.subr.bf16.mxu1 %v5587_v14 }
 0x1e0   :  { %4538 = vmatpush3.bf16.msra.mxu0 %v5586_v17  ;;  %4650 = vmatpush3.bf16.msra.mxu1 %v5588_v18 }
 0x1e2   :  { %4462 = vmatmul.mubr.msk.bf16.gmra.mrb[16].mxu0 %vm1556_vm0, %v280_v19  ;;  %4478 = vmatmul.mubr.msk.bf16.gmra.mrb[16].mxu1 %vm1556_vm0, %v280_v19 }
 0x1e3   :  { %2266 = vmatprep.mubr.bf16.mxu0 %v5741_v38  ;;  %3038 = vmatprep.mubr.bf16.mxu1 %v5741_v38 }
 0x1ea   :  { %4463 = vmatmul.mubr.msk.bf16.gmra.mrb[20].mxu0 %vm1556_vm0, %v287_v22  ;;  %4479 = vmatmul.mubr.msk.bf16.gmra.mrb[20].mxu1 %vm1556_vm0, %v287_v22 }
 0x1eb   :  { %2276 = vmatprep.mubr.bf16.mxu0 %v5741_v38  ;;  %3048 = vmatprep.mubr.bf16.mxu1 %v5741_v38 }
 0x1f2   :  { %4464 = vmatmul.mubr.msk.bf16.gmra.mrb[24].mxu0 %vm1556_vm0, %v294_v25  ;;  %4480 = vmatmul.mubr.msk.bf16.gmra.mrb[24].mxu1 %vm1556_vm0, %v294_v25 }
 0x1f3   :  { %2286 = vmatprep.mubr.bf16.mxu0 %v5741_v38  ;;  %3058 = vmatprep.mubr.bf16.mxu1 %v5741_v38 }
 0x1fa   :  { %4465 = vmatmul.mubr.msk.bf16.gmra.mrb[28].mxu0 %vm1556_vm0, %v301_v28  ;;  %4481 = vmatmul.mubr.msk.bf16.gmra.mrb[28].mxu1 %vm1556_vm0, %v301_v28 }
 0x1fb   :  { %2296 = vmatprep.mubr.bf16.mxu0 %v5741_v38  ;;  %3068 = vmatprep.mubr.bf16.mxu1 %v5741_v38 }
 0x202   :  { %4466 = vmatmul.mubr.msk.bf16.gmra.mrb[32].mxu0 %vm1556_vm0, %v308_v31  ;;  %4482 = vmatmul.mubr.msk.bf16.gmra.mrb[32].mxu1 %vm1556_vm0, %v308_v31 }
 0x203   :  { %2306 = vmatprep.mubr.bf16.mxu0 %v5741_v38  ;;  %3078 = vmatprep.mubr.bf16.mxu1 %v5741_v38 }
 0x20a   :  { %4467 = vmatmul.mubr.msk.bf16.gmra.mrb[36].mxu0 %vm1556_vm0, %v315_v34  ;;  %4483 = vmatmul.mubr.msk.bf16.gmra.mrb[36].mxu1 %vm1556_vm0, %v315_v34 }
 0x20b   :  { %2316 = vmatprep.mubr.bf16.mxu0 %v5741_v38  ;;  %3088 = vmatprep.mubr.bf16.mxu1 %v5741_v38 }
 0x212   :  { %4468 = vmatmul.mubr.msk.bf16.gmra.mrb[40].mxu0 %vm1556_vm0, %v322_v37  ;;  %4484 = vmatmul.mubr.msk.bf16.gmra.mrb[40].mxu1 %vm1556_vm0, %v322_v37 }
 0x213   :  { %2326 = vmatprep.mubr.bf16.mxu0 %v5741_v38  ;;  %3098 = vmatprep.mubr.bf16.mxu1 %v5741_v38 }
 0x21a   :  { %4469 = vmatmul.mubr.msk.bf16.gmra.mrb[44].mxu0 %vm1556_vm0, %v329_v41  ;;  %4485 = vmatmul.mubr.msk.bf16.gmra.mrb[44].mxu1 %vm1556_vm0, %v329_v41 }
 0x21b   :  { %2336 = vmatprep.mubr.bf16.mxu0 %v5741_v38  ;;  %3108 = vmatprep.mubr.bf16.mxu1 %v5741_v38 }
 0x222   :  { %4470 = vmatmul.mubr.msk.bf16.gmra.mrb[48].mxu0 %vm1556_vm0, %v336_v44  ;;  %4486 = vmatmul.mubr.msk.bf16.gmra.mrb[48].mxu1 %vm1556_vm0, %v336_v44 }
 0x223   :  { %2346 = vmatprep.mubr.bf16.mxu0 %v5741_v38  ;;  %3118 = vmatprep.mubr.bf16.mxu1 %v5741_v38 }
 0x22a   :  { %4471 = vmatmul.mubr.msk.bf16.gmra.mrb[52].mxu0 %vm1556_vm0, %v343_v47  ;;  %4487 = vmatmul.mubr.msk.bf16.gmra.mrb[52].mxu1 %vm1556_vm0, %v343_v47 }
 0x22b   :  { %2356 = vmatprep.mubr.bf16.mxu0 %v5741_v38  ;;  %3128 = vmatprep.mubr.bf16.mxu1 %v5741_v38 }
 0x232   :  { %4472 = vmatmul.mubr.msk.bf16.gmra.mrb[56].mxu0 %vm1556_vm0, %v350_v50  ;;  %4488 = vmatmul.mubr.msk.bf16.gmra.mrb[56].mxu1 %vm1556_vm0, %v350_v50 }
 0x233   :  { %2366 = vmatprep.mubr.bf16.mxu0 %v5741_v38  ;;  %3138 = vmatprep.mubr.bf16.mxu1 %v5741_v38  ;;  %v554_v38 = vld [vmem:[%s7641_s2] sm:$0xf] }
 0x234   :  { %v7198_v60 = vrot.slane %v554_v38, %v558_v56  ;;  %v7200_v61 = vrot.slane %v554_v38, %v566_v57  ;;  %v7202_v62 = vrot.slane %v554_v38, %v562_v58  ;;  %v7204_v63 = vrot.slane %v554_v38, %v570_v59 }
 0x23a   :  { %4473 = vmatmul.mubr.msk.bf16.gmra.mrb[60].mxu0 %vm1556_vm0, %v357_v53  ;;  %4489 = vmatmul.mubr.msk.bf16.gmra.mrb[60].mxu1 %vm1556_vm0, %v357_v53 }
 0x295   :  { %v2218_v0 = vpop.f32.mrb[0].mxu0  ;;  %v2990_v1 = vpop.f32.mrb[0].mxu1 }
 0x296   :  { %v4747_v2 = vadd.f32 %v2218_v0, %v7198_v60  ;;  %v4811_v3 = vadd.f32 %v2990_v1, %v7200_v61  ;;  %v2220_v4 = vpop.f32.mrb[1].mxu0  ;;  %v2992_v5 = vpop.f32.mrb[1].mxu1 }
 0x297   :  { %v4748_v6 = vadd.f32 %v2220_v4, %v7202_v62  ;;  %v4812_v7 = vadd.f32 %v2992_v5, %v7204_v63  ;;  %v2222_v8 = vpop.f32.mrb[2].mxu0  ;;  %v2994_v9 = vpop.f32.mrb[2].mxu1 }
 0x298   :  { %v4749_v10 = vadd.f32 %v2222_v8, %v7198_v60  ;;  %v4813_v11 = vadd.f32 %v2994_v9, %v7200_v61  ;;  %v2224_v12 = vpop.f32.mrb[3].mxu0  ;;  %v2996_v13 = vpop.f32.mrb[3].mxu1  ;;  %v3149_v16 = vmax.f32 %v4747_v2, 0.0  ;;  %v3151_v17 = vmax.f32 %v4811_v3, 0.0 }
 0x299   :  { %v4750_v14 = vadd.f32 %v2224_v12, %v7202_v62  ;;  %v4814_v15 = vadd.f32 %v2996_v13, %v7204_v63  ;;  %v3150_v20 = vmax.f32 %v4748_v6, 0.0  ;;  %v3152_v21 = vmax.f32 %v4812_v7, 0.0 }
 0x29a   :  { %v3153_v18 = vmax.f32 %v4749_v10, 0.0  ;;  %v3155_v19 = vmax.f32 %v4813_v11, 0.0 }
 0x29b   :  { %v3154_v22 = vmax.f32 %v4750_v14, 0.0  ;;  %v3156_v23 = vmax.f32 %v4814_v15, 0.0 }
 0x29c   :  { %v3277_v24 = vpack.c.bf16 %v3153_v18, %v3149_v16  ;;  %v3279_v25 = vpack.c.bf16 %v3155_v19, %v3151_v17 }
 0x29d   :  { %v3278_v26 = vpack.c.bf16 %v3154_v22, %v3150_v20  ;;  %v3280_v27 = vpack.c.bf16 %v3156_v23, %v3152_v21  ;;  %v2228_v28 = vpop.f32.mrb[4].mxu0  ;;  %v3000_v29 = vpop.f32.mrb[4].mxu1 }
 0x29e   :  { %v4751_v30 = vadd.f32 %v2228_v28, %v7198_v60  ;;  %v4815_v31 = vadd.f32 %v3000_v29, %v7200_v61  ;;  %v2230_v32 = vpop.f32.mrb[5].mxu0  ;;  %v3002_v33 = vpop.f32.mrb[5].mxu1 }
 0x29f   :  { %v4752_v34 = vadd.f32 %v2230_v32, %v7202_v62  ;;  %v4816_v35 = vadd.f32 %v3002_v33, %v7204_v63  ;;  %v2232_v36 = vpop.f32.mrb[6].mxu0  ;;  %v3004_v37 = vpop.f32.mrb[6].mxu1  ;;  %3636 = vmatprep.mubr.bf16.mxu0 %v3278_v26  ;;  %3797 = vmatprep.mubr.bf16.mxu1 %v3280_v27 }
 0x2a0   :  { %v4753_v39 = vadd.f32 %v2232_v36, %v7198_v60  ;;  %v4817_v40 = vadd.f32 %v3004_v37, %v7200_v61  ;;  %v2234_v41 = vpop.f32.mrb[7].mxu0  ;;  %v3006_v42 = vpop.f32.mrb[7].mxu1  ;;  %3637 = vmatmul.mubr.bf16.vlgmr.msra.gmra.mrb[64].mxu0 %v3277_v24  ;;  %3798 = vmatmul.mubr.bf16.vlgmr.msra.gmra.mrb[64].mxu1 %v3279_v25  ;;  %v3157_v45 = vmax.f32 %v4751_v30, 0.0  ;;  %v3159_v46 = vmax.f32 %v4815_v31, 0.0 }
 0x2a1   :  { %v4754_v43 = vadd.f32 %v2234_v41, %v7202_v62  ;;  %v4818_v44 = vadd.f32 %v3006_v42, %v7204_v63  ;;  %v3158_v49 = vmax.f32 %v4752_v34, 0.0  ;;  %v3160_v50 = vmax.f32 %v4816_v35, 0.0 }
 0x2a2   :  { %v3161_v47 = vmax.f32 %v4753_v39, 0.0  ;;  %v3163_v48 = vmax.f32 %v4817_v40, 0.0 }
 0x2a3   :  { %v3162_v51 = vmax.f32 %v4754_v43, 0.0  ;;  %v3164_v52 = vmax.f32 %v4818_v44, 0.0 }
 0x2a4   :  { %v3281_v53 = vpack.c.bf16 %v3161_v47, %v3157_v45  ;;  %v3283_v54 = vpack.c.bf16 %v3163_v48, %v3159_v46 }
 0x2a5   :  { %v3282_v55 = vpack.c.bf16 %v3162_v51, %v3158_v49  ;;  %v3284_v56 = vpack.c.bf16 %v3164_v52, %v3160_v50  ;;  %v2238_v57 = vpop.f32.mrb[8].mxu0  ;;  %v3010_v38 = vpop.f32.mrb[8].mxu1 }
 0x2a6   :  { %v4755_v58 = vadd.f32 %v2238_v57, %v7198_v60  ;;  %v4819_v59 = vadd.f32 %v3010_v38, %v7200_v61  ;;  %v2240_v0 = vpop.f32.mrb[9].mxu0  ;;  %v3012_v1 = vpop.f32.mrb[9].mxu1 }
 0x2a7   :  { %v4756_v2 = vadd.f32 %v2240_v0, %v7202_v62  ;;  %v4820_v3 = vadd.f32 %v3012_v1, %v7204_v63  ;;  %v2242_v4 = vpop.f32.mrb[10].mxu0  ;;  %v3014_v5 = vpop.f32.mrb[10].mxu1  ;;  %3644 = vmatprep.mubr.bf16.mxu0 %v3282_v55  ;;  %3805 = vmatprep.mubr.bf16.mxu1 %v3284_v56 }
 0x2a8   :  { %v4757_v6 = vadd.f32 %v2242_v4, %v7198_v60  ;;  %v4821_v7 = vadd.f32 %v3014_v5, %v7200_v61  ;;  %v2244_v8 = vpop.f32.mrb[11].mxu0  ;;  %v3016_v9 = vpop.f32.mrb[11].mxu1  ;;  %3645 = vmatmul.mubr.bf16.gmra.mrb[68].mxu0 %v3281_v53  ;;  %3806 = vmatmul.mubr.bf16.gmra.mrb[68].mxu1 %v3283_v54  ;;  %v3165_v12 = vmax.f32 %v4755_v58, 0.0  ;;  %v3167_v13 = vmax.f32 %v4819_v59, 0.0 }
 0x2a9   :  { %v4758_v10 = vadd.f32 %v2244_v8, %v7202_v62  ;;  %v4822_v11 = vadd.f32 %v3016_v9, %v7204_v63  ;;  %v3166_v16 = vmax.f32 %v4756_v2, 0.0  ;;  %v3168_v17 = vmax.f32 %v4820_v3, 0.0 }
 0x2aa   :  { %v3169_v14 = vmax.f32 %v4757_v6, 0.0  ;;  %v3171_v15 = vmax.f32 %v4821_v7, 0.0 }
 0x2ab   :  { %v3170_v18 = vmax.f32 %v4758_v10, 0.0  ;;  %v3172_v19 = vmax.f32 %v4822_v11, 0.0 }
 0x2ac   :  { %v3285_v20 = vpack.c.bf16 %v3169_v14, %v3165_v12  ;;  %v3287_v21 = vpack.c.bf16 %v3171_v15, %v3167_v13 }
 0x2ad   :  { %v3286_v22 = vpack.c.bf16 %v3170_v18, %v3166_v16  ;;  %v3288_v23 = vpack.c.bf16 %v3172_v19, %v3168_v17  ;;  %v2248_v24 = vpop.f32.mrb[12].mxu0  ;;  %v3020_v25 = vpop.f32.mrb[12].mxu1 }
 0x2ae   :  { %v4759_v26 = vadd.f32 %v2248_v24, %v7198_v60  ;;  %v4823_v27 = vadd.f32 %v3020_v25, %v7200_v61  ;;  %v2250_v28 = vpop.f32.mrb[13].mxu0  ;;  %v3022_v29 = vpop.f32.mrb[13].mxu1 }
 0x2af   :  { %v4760_v30 = vadd.f32 %v2250_v28, %v7202_v62  ;;  %v4824_v31 = vadd.f32 %v3022_v29, %v7204_v63  ;;  %v2252_v32 = vpop.f32.mrb[14].mxu0  ;;  %v3024_v33 = vpop.f32.mrb[14].mxu1  ;;  %3652 = vmatprep.mubr.bf16.mxu0 %v3286_v22  ;;  %3813 = vmatprep.mubr.bf16.mxu1 %v3288_v23 }
 0x2b0   :  { %v4761_v34 = vadd.f32 %v2252_v32, %v7198_v60  ;;  %v4825_v35 = vadd.f32 %v3024_v33, %v7200_v61  ;;  %v2254_v36 = vpop.f32.mrb[15].mxu0  ;;  %v3026_v37 = vpop.f32.mrb[15].mxu1  ;;  %3653 = vmatmul.mubr.bf16.gmra.mrb[72].mxu0 %v3285_v20  ;;  %3814 = vmatmul.mubr.bf16.gmra.mrb[72].mxu1 %v3287_v21  ;;  %v3173_v41 = vmax.f32 %v4759_v26, 0.0  ;;  %v3175_v42 = vmax.f32 %v4823_v27, 0.0 }
 0x2b1   :  { %v4762_v39 = vadd.f32 %v2254_v36, %v7202_v62  ;;  %v4826_v40 = vadd.f32 %v3026_v37, %v7204_v63  ;;  %v3174_v45 = vmax.f32 %v4760_v30, 0.0  ;;  %v3176_v46 = vmax.f32 %v4824_v31, 0.0 }
 0x2b2   :  { %v3177_v43 = vmax.f32 %v4761_v34, 0.0  ;;  %v3179_v44 = vmax.f32 %v4825_v35, 0.0 }
 0x2b3   :  { %v3178_v47 = vmax.f32 %v4762_v39, 0.0  ;;  %v3180_v48 = vmax.f32 %v4826_v40, 0.0 }
 0x2b4   :  { %v3289_v49 = vpack.c.bf16 %v3177_v43, %v3173_v41  ;;  %v3291_v50 = vpack.c.bf16 %v3179_v44, %v3175_v42 }
 0x2b5   :  { %v3290_v51 = vpack.c.bf16 %v3178_v47, %v3174_v45  ;;  %v3292_v52 = vpack.c.bf16 %v3180_v48, %v3176_v46  ;;  %v2258_v53 = vpop.f32.mrb[16].mxu0  ;;  %v3030_v54 = vpop.f32.mrb[16].mxu1 }
 0x2b6   :  { %v4763_v55 = vadd.f32 %v2258_v53, %v7198_v60  ;;  %v4827_v56 = vadd.f32 %v3030_v54, %v7200_v61  ;;  %v2260_v57 = vpop.f32.mrb[17].mxu0  ;;  %v3032_v38 = vpop.f32.mrb[17].mxu1 }
 0x2b7   :  { %v4764_v58 = vadd.f32 %v2260_v57, %v7202_v62  ;;  %v4828_v59 = vadd.f32 %v3032_v38, %v7204_v63  ;;  %v2262_v0 = vpop.f32.mrb[18].mxu0  ;;  %v3034_v1 = vpop.f32.mrb[18].mxu1  ;;  %3660 = vmatprep.mubr.bf16.mxu0 %v3290_v51  ;;  %3821 = vmatprep.mubr.bf16.mxu1 %v3292_v52 }
 0x2b8   :  { %v4765_v2 = vadd.f32 %v2262_v0, %v7198_v60  ;;  %v4829_v3 = vadd.f32 %v3034_v1, %v7200_v61  ;;  %v2264_v4 = vpop.f32.mrb[19].mxu0  ;;  %v3036_v5 = vpop.f32.mrb[19].mxu1  ;;  %3661 = vmatmul.mubr.bf16.gmra.mrb[76].mxu0 %v3289_v49  ;;  %3822 = vmatmul.mubr.bf16.gmra.mrb[76].mxu1 %v3291_v50  ;;  %v3181_v8 = vmax.f32 %v4763_v55, 0.0  ;;  %v3183_v9 = vmax.f32 %v4827_v56, 0.0 }
 0x2b9   :  { %v4766_v6 = vadd.f32 %v2264_v4, %v7202_v62  ;;  %v4830_v7 = vadd.f32 %v3036_v5, %v7204_v63  ;;  %v3182_v12 = vmax.f32 %v4764_v58, 0.0  ;;  %v3184_v13 = vmax.f32 %v4828_v59, 0.0 }
 0x2ba   :  { %v3185_v10 = vmax.f32 %v4765_v2, 0.0  ;;  %v3187_v11 = vmax.f32 %v4829_v3, 0.0 }
 0x2bb   :  { %v3186_v14 = vmax.f32 %v4766_v6, 0.0  ;;  %v3188_v15 = vmax.f32 %v4830_v7, 0.0 }
 0x2bc   :  { %v3293_v16 = vpack.c.bf16 %v3185_v10, %v3181_v8  ;;  %v3295_v17 = vpack.c.bf16 %v3187_v11, %v3183_v9 }
 0x2bd   :  { %v3294_v18 = vpack.c.bf16 %v3186_v14, %v3182_v12  ;;  %v3296_v19 = vpack.c.bf16 %v3188_v15, %v3184_v13  ;;  %v2268_v20 = vpop.f32.mrb[20].mxu0  ;;  %v3040_v21 = vpop.f32.mrb[20].mxu1 }
 0x2be   :  { %v4767_v22 = vadd.f32 %v2268_v20, %v7198_v60  ;;  %v4831_v23 = vadd.f32 %v3040_v21, %v7200_v61  ;;  %v2270_v24 = vpop.f32.mrb[21].mxu0  ;;  %v3042_v25 = vpop.f32.mrb[21].mxu1 }
 0x2bf   :  { %v4768_v26 = vadd.f32 %v2270_v24, %v7202_v62  ;;  %v4832_v27 = vadd.f32 %v3042_v25, %v7204_v63  ;;  %v2272_v28 = vpop.f32.mrb[22].mxu0  ;;  %v3044_v29 = vpop.f32.mrb[22].mxu1  ;;  %3668 = vmatprep.mubr.bf16.mxu0 %v3294_v18  ;;  %3829 = vmatprep.mubr.bf16.mxu1 %v3296_v19 }
 0x2c0   :  { %v4769_v30 = vadd.f32 %v2272_v28, %v7198_v60  ;;  %v4833_v31 = vadd.f32 %v3044_v29, %v7200_v61  ;;  %v2274_v32 = vpop.f32.mrb[23].mxu0  ;;  %v3046_v33 = vpop.f32.mrb[23].mxu1  ;;  %3669 = vmatmul.mubr.bf16.gmra.mrb[80].mxu0 %v3293_v16  ;;  %3830 = vmatmul.mubr.bf16.gmra.mrb[80].mxu1 %v3295_v17  ;;  %v3189_v36 = vmax.f32 %v4767_v22, 0.0  ;;  %v3191_v37 = vmax.f32 %v4831_v23, 0.0 }
 0x2c1   :  { %v4770_v34 = vadd.f32 %v2274_v32, %v7202_v62  ;;  %v4834_v35 = vadd.f32 %v3046_v33, %v7204_v63  ;;  %v3190_v41 = vmax.f32 %v4768_v26, 0.0  ;;  %v3192_v42 = vmax.f32 %v4832_v27, 0.0 }
 0x2c2   :  { %v3193_v39 = vmax.f32 %v4769_v30, 0.0  ;;  %v3195_v40 = vmax.f32 %v4833_v31, 0.0 }
 0x2c3   :  { %v3194_v43 = vmax.f32 %v4770_v34, 0.0  ;;  %v3196_v44 = vmax.f32 %v4834_v35, 0.0 }
 0x2c4   :  { %v3297_v45 = vpack.c.bf16 %v3193_v39, %v3189_v36  ;;  %v3299_v46 = vpack.c.bf16 %v3195_v40, %v3191_v37 }
 0x2c5   :  { %v3298_v47 = vpack.c.bf16 %v3194_v43, %v3190_v41  ;;  %v3300_v48 = vpack.c.bf16 %v3196_v44, %v3192_v42  ;;  %v2278_v49 = vpop.f32.mrb[24].mxu0  ;;  %v3050_v50 = vpop.f32.mrb[24].mxu1 }
 0x2c6   :  { %v4771_v51 = vadd.f32 %v2278_v49, %v7198_v60  ;;  %v4835_v52 = vadd.f32 %v3050_v50, %v7200_v61  ;;  %v2280_v53 = vpop.f32.mrb[25].mxu0  ;;  %v3052_v54 = vpop.f32.mrb[25].mxu1 }
 0x2c7   :  { %v4772_v55 = vadd.f32 %v2280_v53, %v7202_v62  ;;  %v4836_v56 = vadd.f32 %v3052_v54, %v7204_v63  ;;  %v2282_v57 = vpop.f32.mrb[26].mxu0  ;;  %v3054_v38 = vpop.f32.mrb[26].mxu1  ;;  %3676 = vmatprep.mubr.bf16.mxu0 %v3298_v47  ;;  %3837 = vmatprep.mubr.bf16.mxu1 %v3300_v48 }
 0x2c8   :  { %v4773_v58 = vadd.f32 %v2282_v57, %v7198_v60  ;;  %v4837_v59 = vadd.f32 %v3054_v38, %v7200_v61  ;;  %v2284_v0 = vpop.f32.mrb[27].mxu0  ;;  %v3056_v1 = vpop.f32.mrb[27].mxu1  ;;  %3677 = vmatmul.mubr.bf16.gmra.mrb[84].mxu0 %v3297_v45  ;;  %3838 = vmatmul.mubr.bf16.gmra.mrb[84].mxu1 %v3299_v46  ;;  %v3197_v4 = vmax.f32 %v4771_v51, 0.0  ;;  %v3199_v5 = vmax.f32 %v4835_v52, 0.0 }
 0x2c9   :  { %v4774_v2 = vadd.f32 %v2284_v0, %v7202_v62  ;;  %v4838_v3 = vadd.f32 %v3056_v1, %v7204_v63  ;;  %v3198_v8 = vmax.f32 %v4772_v55, 0.0  ;;  %v3200_v9 = vmax.f32 %v4836_v56, 0.0 }
 0x2ca   :  { %v3201_v6 = vmax.f32 %v4773_v58, 0.0  ;;  %v3203_v7 = vmax.f32 %v4837_v59, 0.0 }
 0x2cb   :  { %v3202_v10 = vmax.f32 %v4774_v2, 0.0  ;;  %v3204_v11 = vmax.f32 %v4838_v3, 0.0 }
 0x2cc   :  { %v3301_v12 = vpack.c.bf16 %v3201_v6, %v3197_v4  ;;  %v3303_v13 = vpack.c.bf16 %v3203_v7, %v3199_v5 }
 0x2cd   :  { %v3302_v14 = vpack.c.bf16 %v3202_v10, %v3198_v8  ;;  %v3304_v15 = vpack.c.bf16 %v3204_v11, %v3200_v9  ;;  %v2288_v16 = vpop.f32.mrb[28].mxu0  ;;  %v3060_v17 = vpop.f32.mrb[28].mxu1 }
 0x2ce   :  { %v4775_v18 = vadd.f32 %v2288_v16, %v7198_v60  ;;  %v4839_v19 = vadd.f32 %v3060_v17, %v7200_v61  ;;  %v2290_v20 = vpop.f32.mrb[29].mxu0  ;;  %v3062_v21 = vpop.f32.mrb[29].mxu1 }
 0x2cf   :  { %v4776_v22 = vadd.f32 %v2290_v20, %v7202_v62  ;;  %v4840_v23 = vadd.f32 %v3062_v21, %v7204_v63  ;;  %v2292_v24 = vpop.f32.mrb[30].mxu0  ;;  %v3064_v25 = vpop.f32.mrb[30].mxu1  ;;  %3684 = vmatprep.mubr.bf16.mxu0 %v3302_v14  ;;  %3845 = vmatprep.mubr.bf16.mxu1 %v3304_v15 }
 0x2d0   :  { %v4777_v26 = vadd.f32 %v2292_v24, %v7198_v60  ;;  %v4841_v27 = vadd.f32 %v3064_v25, %v7200_v61  ;;  %v2294_v28 = vpop.f32.mrb[31].mxu0  ;;  %v3066_v29 = vpop.f32.mrb[31].mxu1  ;;  %3685 = vmatmul.mubr.bf16.gmra.mrb[88].mxu0 %v3301_v12  ;;  %3846 = vmatmul.mubr.bf16.gmra.mrb[88].mxu1 %v3303_v13  ;;  %v3205_v32 = vmax.f32 %v4775_v18, 0.0  ;;  %v3207_v33 = vmax.f32 %v4839_v19, 0.0 }
 0x2d1   :  { %v4778_v30 = vadd.f32 %v2294_v28, %v7202_v62  ;;  %v4842_v31 = vadd.f32 %v3066_v29, %v7204_v63  ;;  %v3206_v36 = vmax.f32 %v4776_v22, 0.0  ;;  %v3208_v37 = vmax.f32 %v4840_v23, 0.0 }
 0x2d2   :  { %v3209_v34 = vmax.f32 %v4777_v26, 0.0  ;;  %v3211_v35 = vmax.f32 %v4841_v27, 0.0 }
 0x2d3   :  { %v3210_v39 = vmax.f32 %v4778_v30, 0.0  ;;  %v3212_v40 = vmax.f32 %v4842_v31, 0.0 }
 0x2d4   :  { %v3305_v41 = vpack.c.bf16 %v3209_v34, %v3205_v32  ;;  %v3307_v42 = vpack.c.bf16 %v3211_v35, %v3207_v33 }
 0x2d5   :  { %v3306_v43 = vpack.c.bf16 %v3210_v39, %v3206_v36  ;;  %v3308_v44 = vpack.c.bf16 %v3212_v40, %v3208_v37  ;;  %v2298_v45 = vpop.f32.mrb[32].mxu0  ;;  %v3070_v46 = vpop.f32.mrb[32].mxu1 }
 0x2d6   :  { %v4779_v47 = vadd.f32 %v2298_v45, %v7198_v60  ;;  %v4843_v48 = vadd.f32 %v3070_v46, %v7200_v61  ;;  %v2300_v49 = vpop.f32.mrb[33].mxu0  ;;  %v3072_v50 = vpop.f32.mrb[33].mxu1 }
 0x2d7   :  { %v4780_v51 = vadd.f32 %v2300_v49, %v7202_v62  ;;  %v4844_v52 = vadd.f32 %v3072_v50, %v7204_v63  ;;  %v2302_v53 = vpop.f32.mrb[34].mxu0  ;;  %v3074_v54 = vpop.f32.mrb[34].mxu1  ;;  %3692 = vmatprep.mubr.bf16.mxu0 %v3306_v43  ;;  %3853 = vmatprep.mubr.bf16.mxu1 %v3308_v44 }
 0x2d8   :  { %v4781_v55 = vadd.f32 %v2302_v53, %v7198_v60  ;;  %v4845_v56 = vadd.f32 %v3074_v54, %v7200_v61  ;;  %v2304_v57 = vpop.f32.mrb[35].mxu0  ;;  %v3076_v38 = vpop.f32.mrb[35].mxu1  ;;  %3693 = vmatmul.mubr.bf16.gmra.mrb[92].mxu0 %v3305_v41  ;;  %3854 = vmatmul.mubr.bf16.gmra.mrb[92].mxu1 %v3307_v42  ;;  %v3213_v0 = vmax.f32 %v4779_v47, 0.0  ;;  %v3215_v1 = vmax.f32 %v4843_v48, 0.0 }
 0x2d9   :  { %v4782_v58 = vadd.f32 %v2304_v57, %v7202_v62  ;;  %v4846_v59 = vadd.f32 %v3076_v38, %v7204_v63  ;;  %v3214_v4 = vmax.f32 %v4780_v51, 0.0  ;;  %v3216_v5 = vmax.f32 %v4844_v52, 0.0 }
 0x2da   :  { %v3217_v2 = vmax.f32 %v4781_v55, 0.0  ;;  %v3219_v3 = vmax.f32 %v4845_v56, 0.0 }
 0x2db   :  { %v3218_v6 = vmax.f32 %v4782_v58, 0.0  ;;  %v3220_v7 = vmax.f32 %v4846_v59, 0.0 }
 0x2dc   :  { %v3309_v8 = vpack.c.bf16 %v3217_v2, %v3213_v0  ;;  %v3311_v9 = vpack.c.bf16 %v3219_v3, %v3215_v1 }
 0x2dd   :  { %v3310_v10 = vpack.c.bf16 %v3218_v6, %v3214_v4  ;;  %v3312_v11 = vpack.c.bf16 %v3220_v7, %v3216_v5  ;;  %v2308_v12 = vpop.f32.mrb[36].mxu0  ;;  %v3080_v13 = vpop.f32.mrb[36].mxu1 }
 0x2de   :  { %v4783_v14 = vadd.f32 %v2308_v12, %v7198_v60  ;;  %v4847_v15 = vadd.f32 %v3080_v13, %v7200_v61  ;;  %v2310_v16 = vpop.f32.mrb[37].mxu0  ;;  %v3082_v17 = vpop.f32.mrb[37].mxu1 }
 0x2df   :  { %v4784_v18 = vadd.f32 %v2310_v16, %v7202_v62  ;;  %v4848_v19 = vadd.f32 %v3082_v17, %v7204_v63  ;;  %v2312_v20 = vpop.f32.mrb[38].mxu0  ;;  %v3084_v21 = vpop.f32.mrb[38].mxu1  ;;  %3700 = vmatprep.mubr.bf16.mxu0 %v3310_v10  ;;  %3861 = vmatprep.mubr.bf16.mxu1 %v3312_v11 }
 0x2e0   :  { %v4785_v22 = vadd.f32 %v2312_v20, %v7198_v60  ;;  %v4849_v23 = vadd.f32 %v3084_v21, %v7200_v61  ;;  %v2314_v24 = vpop.f32.mrb[39].mxu0  ;;  %v3086_v25 = vpop.f32.mrb[39].mxu1  ;;  %3701 = vmatmul.mubr.bf16.gmra.mrb[96].mxu0 %v3309_v8  ;;  %3862 = vmatmul.mubr.bf16.gmra.mrb[96].mxu1 %v3311_v9  ;;  %v3221_v28 = vmax.f32 %v4783_v14, 0.0  ;;  %v3223_v29 = vmax.f32 %v4847_v15, 0.0 }
 0x2e1   :  { %v4786_v26 = vadd.f32 %v2314_v24, %v7202_v62  ;;  %v4850_v27 = vadd.f32 %v3086_v25, %v7204_v63  ;;  %v3222_v32 = vmax.f32 %v4784_v18, 0.0  ;;  %v3224_v33 = vmax.f32 %v4848_v19, 0.0 }
 0x2e2   :  { %v3225_v30 = vmax.f32 %v4785_v22, 0.0  ;;  %v3227_v31 = vmax.f32 %v4849_v23, 0.0 }
 0x2e3   :  { %v3226_v34 = vmax.f32 %v4786_v26, 0.0  ;;  %v3228_v35 = vmax.f32 %v4850_v27, 0.0 }
 0x2e4   :  { %v3313_v36 = vpack.c.bf16 %v3225_v30, %v3221_v28  ;;  %v3315_v37 = vpack.c.bf16 %v3227_v31, %v3223_v29 }
 0x2e5   :  { %v3314_v39 = vpack.c.bf16 %v3226_v34, %v3222_v32  ;;  %v3316_v40 = vpack.c.bf16 %v3228_v35, %v3224_v33  ;;  %v2318_v41 = vpop.f32.mrb[40].mxu0  ;;  %v3090_v42 = vpop.f32.mrb[40].mxu1 }
 0x2e6   :  { %v4787_v43 = vadd.f32 %v2318_v41, %v7198_v60  ;;  %v4851_v44 = vadd.f32 %v3090_v42, %v7200_v61  ;;  %v2320_v45 = vpop.f32.mrb[41].mxu0  ;;  %v3092_v46 = vpop.f32.mrb[41].mxu1 }
 0x2e7   :  { %v4788_v47 = vadd.f32 %v2320_v45, %v7202_v62  ;;  %v4852_v48 = vadd.f32 %v3092_v46, %v7204_v63  ;;  %v2322_v49 = vpop.f32.mrb[42].mxu0  ;;  %v3094_v50 = vpop.f32.mrb[42].mxu1  ;;  %3708 = vmatprep.mubr.bf16.mxu0 %v3314_v39  ;;  %3869 = vmatprep.mubr.bf16.mxu1 %v3316_v40 }
 0x2e8   :  { %v4789_v51 = vadd.f32 %v2322_v49, %v7198_v60  ;;  %v4853_v52 = vadd.f32 %v3094_v50, %v7200_v61  ;;  %v2324_v53 = vpop.f32.mrb[43].mxu0  ;;  %v3096_v54 = vpop.f32.mrb[43].mxu1  ;;  %3709 = vmatmul.mubr.bf16.gmra.mrb[100].mxu0 %v3313_v36  ;;  %3870 = vmatmul.mubr.bf16.gmra.mrb[100].mxu1 %v3315_v37  ;;  %v3229_v57 = vmax.f32 %v4787_v43, 0.0  ;;  %v3231_v38 = vmax.f32 %v4851_v44, 0.0 }
 0x2e9   :  { %v4790_v55 = vadd.f32 %v2324_v53, %v7202_v62  ;;  %v4854_v56 = vadd.f32 %v3096_v54, %v7204_v63  ;;  %v3230_v0 = vmax.f32 %v4788_v47, 0.0  ;;  %v3232_v1 = vmax.f32 %v4852_v48, 0.0 }
 0x2ea   :  { %v3233_v58 = vmax.f32 %v4789_v51, 0.0  ;;  %v3235_v59 = vmax.f32 %v4853_v52, 0.0 }
 0x2eb   :  { %v3234_v2 = vmax.f32 %v4790_v55, 0.0  ;;  %v3236_v3 = vmax.f32 %v4854_v56, 0.0 }
 0x2ec   :  { %v3317_v4 = vpack.c.bf16 %v3233_v58, %v3229_v57  ;;  %v3319_v5 = vpack.c.bf16 %v3235_v59, %v3231_v38 }
 0x2ed   :  { %v3318_v6 = vpack.c.bf16 %v3234_v2, %v3230_v0  ;;  %v3320_v7 = vpack.c.bf16 %v3236_v3, %v3232_v1  ;;  %v2328_v8 = vpop.f32.mrb[44].mxu0  ;;  %v3100_v9 = vpop.f32.mrb[44].mxu1 }
 0x2ee   :  { %v4791_v10 = vadd.f32 %v2328_v8, %v7198_v60  ;;  %v4855_v11 = vadd.f32 %v3100_v9, %v7200_v61  ;;  %v2330_v12 = vpop.f32.mrb[45].mxu0  ;;  %v3102_v13 = vpop.f32.mrb[45].mxu1 }
 0x2ef   :  { %v4792_v14 = vadd.f32 %v2330_v12, %v7202_v62  ;;  %v4856_v15 = vadd.f32 %v3102_v13, %v7204_v63  ;;  %v2332_v16 = vpop.f32.mrb[46].mxu0  ;;  %v3104_v17 = vpop.f32.mrb[46].mxu1  ;;  %3716 = vmatprep.mubr.bf16.mxu0 %v3318_v6  ;;  %3877 = vmatprep.mubr.bf16.mxu1 %v3320_v7 }
 0x2f0   :  { %v4793_v18 = vadd.f32 %v2332_v16, %v7198_v60  ;;  %v4857_v19 = vadd.f32 %v3104_v17, %v7200_v61  ;;  %v2334_v20 = vpop.f32.mrb[47].mxu0  ;;  %v3106_v21 = vpop.f32.mrb[47].mxu1  ;;  %3717 = vmatmul.mubr.bf16.gmra.mrb[104].mxu0 %v3317_v4  ;;  %3878 = vmatmul.mubr.bf16.gmra.mrb[104].mxu1 %v3319_v5  ;;  %v3237_v24 = vmax.f32 %v4791_v10, 0.0  ;;  %v3239_v25 = vmax.f32 %v4855_v11, 0.0 }
 0x2f1   :  { %v4794_v22 = vadd.f32 %v2334_v20, %v7202_v62  ;;  %v4858_v23 = vadd.f32 %v3106_v21, %v7204_v63  ;;  %v3238_v28 = vmax.f32 %v4792_v14, 0.0  ;;  %v3240_v29 = vmax.f32 %v4856_v15, 0.0 }
 0x2f2   :  { %v3241_v26 = vmax.f32 %v4793_v18, 0.0  ;;  %v3243_v27 = vmax.f32 %v4857_v19, 0.0 }
 0x2f3   :  { %v3242_v30 = vmax.f32 %v4794_v22, 0.0  ;;  %v3244_v31 = vmax.f32 %v4858_v23, 0.0 }
 0x2f4   :  { %v3321_v32 = vpack.c.bf16 %v3241_v26, %v3237_v24  ;;  %v3323_v33 = vpack.c.bf16 %v3243_v27, %v3239_v25 }
 0x2f5   :  { %v3322_v34 = vpack.c.bf16 %v3242_v30, %v3238_v28  ;;  %v3324_v35 = vpack.c.bf16 %v3244_v31, %v3240_v29  ;;  %v2338_v36 = vpop.f32.mrb[48].mxu0  ;;  %v3110_v37 = vpop.f32.mrb[48].mxu1 }
 0x2f6   :  { %v4795_v39 = vadd.f32 %v2338_v36, %v7198_v60  ;;  %v4859_v40 = vadd.f32 %v3110_v37, %v7200_v61  ;;  %v2340_v41 = vpop.f32.mrb[49].mxu0  ;;  %v3112_v42 = vpop.f32.mrb[49].mxu1 }
 0x2f7   :  { %v4796_v43 = vadd.f32 %v2340_v41, %v7202_v62  ;;  %v4860_v44 = vadd.f32 %v3112_v42, %v7204_v63  ;;  %v2342_v45 = vpop.f32.mrb[50].mxu0  ;;  %v3114_v46 = vpop.f32.mrb[50].mxu1  ;;  %3724 = vmatprep.mubr.bf16.mxu0 %v3322_v34  ;;  %3885 = vmatprep.mubr.bf16.mxu1 %v3324_v35 }
 0x2f8   :  { %v4797_v47 = vadd.f32 %v2342_v45, %v7198_v60  ;;  %v4861_v48 = vadd.f32 %v3114_v46, %v7200_v61  ;;  %v2344_v49 = vpop.f32.mrb[51].mxu0  ;;  %v3116_v50 = vpop.f32.mrb[51].mxu1  ;;  %3725 = vmatmul.mubr.bf16.gmra.mrb[108].mxu0 %v3321_v32  ;;  %3886 = vmatmul.mubr.bf16.gmra.mrb[108].mxu1 %v3323_v33  ;;  %v3245_v53 = vmax.f32 %v4795_v39, 0.0  ;;  %v3247_v54 = vmax.f32 %v4859_v40, 0.0 }
 0x2f9   :  { %v4798_v51 = vadd.f32 %v2344_v49, %v7202_v62  ;;  %v4862_v52 = vadd.f32 %v3116_v50, %v7204_v63  ;;  %v3246_v57 = vmax.f32 %v4796_v43, 0.0  ;;  %v3248_v38 = vmax.f32 %v4860_v44, 0.0 }
 0x2fa   :  { %v3249_v55 = vmax.f32 %v4797_v47, 0.0  ;;  %v3251_v56 = vmax.f32 %v4861_v48, 0.0 }
 0x2fb   :  { %v3250_v58 = vmax.f32 %v4798_v51, 0.0  ;;  %v3252_v59 = vmax.f32 %v4862_v52, 0.0 }
 0x2fc   :  { %v3325_v0 = vpack.c.bf16 %v3249_v55, %v3245_v53  ;;  %v3327_v1 = vpack.c.bf16 %v3251_v56, %v3247_v54 }
 0x2fd   :  { %v3326_v2 = vpack.c.bf16 %v3250_v58, %v3246_v57  ;;  %v3328_v3 = vpack.c.bf16 %v3252_v59, %v3248_v38  ;;  %v2348_v4 = vpop.f32.mrb[52].mxu0  ;;  %v3120_v5 = vpop.f32.mrb[52].mxu1 }
 0x2fe   :  { %v4799_v6 = vadd.f32 %v2348_v4, %v7198_v60  ;;  %v4863_v7 = vadd.f32 %v3120_v5, %v7200_v61  ;;  %v2350_v8 = vpop.f32.mrb[53].mxu0  ;;  %v3122_v9 = vpop.f32.mrb[53].mxu1 }
 0x2ff   :  { %v4800_v10 = vadd.f32 %v2350_v8, %v7202_v62  ;;  %v4864_v11 = vadd.f32 %v3122_v9, %v7204_v63  ;;  %v2352_v12 = vpop.f32.mrb[54].mxu0  ;;  %v3124_v13 = vpop.f32.mrb[54].mxu1  ;;  %3732 = vmatprep.mubr.bf16.mxu0 %v3326_v2  ;;  %3893 = vmatprep.mubr.bf16.mxu1 %v3328_v3 }
 0x300   :  { %v4801_v14 = vadd.f32 %v2352_v12, %v7198_v60  ;;  %v4865_v15 = vadd.f32 %v3124_v13, %v7200_v61  ;;  %v2354_v16 = vpop.f32.mrb[55].mxu0  ;;  %v3126_v17 = vpop.f32.mrb[55].mxu1  ;;  %3733 = vmatmul.mubr.bf16.gmra.mrb[112].mxu0 %v3325_v0  ;;  %3894 = vmatmul.mubr.bf16.gmra.mrb[112].mxu1 %v3327_v1  ;;  %v3253_v20 = vmax.f32 %v4799_v6, 0.0  ;;  %v3255_v21 = vmax.f32 %v4863_v7, 0.0 }
 0x301   :  { %v4802_v18 = vadd.f32 %v2354_v16, %v7202_v62  ;;  %v4866_v19 = vadd.f32 %v3126_v17, %v7204_v63  ;;  %v3254_v24 = vmax.f32 %v4800_v10, 0.0  ;;  %v3256_v25 = vmax.f32 %v4864_v11, 0.0 }
 0x302   :  { %v3257_v22 = vmax.f32 %v4801_v14, 0.0  ;;  %v3259_v23 = vmax.f32 %v4865_v15, 0.0 }
 0x303   :  { %v3258_v26 = vmax.f32 %v4802_v18, 0.0  ;;  %v3260_v27 = vmax.f32 %v4866_v19, 0.0 }
 0x304   :  { %v3329_v28 = vpack.c.bf16 %v3257_v22, %v3253_v20  ;;  %v3331_v29 = vpack.c.bf16 %v3259_v23, %v3255_v21 }
 0x305   :  { %v3330_v30 = vpack.c.bf16 %v3258_v26, %v3254_v24  ;;  %v3332_v31 = vpack.c.bf16 %v3260_v27, %v3256_v25  ;;  %v2358_v32 = vpop.f32.mrb[56].mxu0  ;;  %v3130_v33 = vpop.f32.mrb[56].mxu1 }
 0x306   :  { %v4803_v34 = vadd.f32 %v2358_v32, %v7198_v60  ;;  %v4867_v35 = vadd.f32 %v3130_v33, %v7200_v61  ;;  %v2360_v36 = vpop.f32.mrb[57].mxu0  ;;  %v3132_v37 = vpop.f32.mrb[57].mxu1 }
 0x307   :  { %v4804_v39 = vadd.f32 %v2360_v36, %v7202_v62  ;;  %v4868_v40 = vadd.f32 %v3132_v37, %v7204_v63  ;;  %v2362_v41 = vpop.f32.mrb[58].mxu0  ;;  %v3134_v42 = vpop.f32.mrb[58].mxu1  ;;  %3740 = vmatprep.mubr.bf16.mxu0 %v3330_v30  ;;  %3901 = vmatprep.mubr.bf16.mxu1 %v3332_v31 }
 0x308   :  { %v4805_v43 = vadd.f32 %v2362_v41, %v7198_v60  ;;  %v4869_v44 = vadd.f32 %v3134_v42, %v7200_v61  ;;  %v2364_v45 = vpop.f32.mrb[59].mxu0  ;;  %v3136_v46 = vpop.f32.mrb[59].mxu1  ;;  %3741 = vmatmul.mubr.bf16.gmra.mrb[116].mxu0 %v3329_v28  ;;  %3902 = vmatmul.mubr.bf16.gmra.mrb[116].mxu1 %v3331_v29  ;;  %v3261_v49 = vmax.f32 %v4803_v34, 0.0  ;;  %v3263_v50 = vmax.f32 %v4867_v35, 0.0 }
 0x309   :  { %v4806_v47 = vadd.f32 %v2364_v45, %v7202_v62  ;;  %v4870_v48 = vadd.f32 %v3136_v46, %v7204_v63  ;;  %v3262_v53 = vmax.f32 %v4804_v39, 0.0  ;;  %v3264_v54 = vmax.f32 %v4868_v40, 0.0 }
 0x30a   :  { %v3265_v51 = vmax.f32 %v4805_v43, 0.0  ;;  %v3267_v52 = vmax.f32 %v4869_v44, 0.0 }
 0x30b   :  { %v3266_v55 = vmax.f32 %v4806_v47, 0.0  ;;  %v3268_v56 = vmax.f32 %v4870_v48, 0.0 }
 0x30c   :  { %v3333_v57 = vpack.c.bf16 %v3265_v51, %v3261_v49  ;;  %v3335_v38 = vpack.c.bf16 %v3267_v52, %v3263_v50 }
 0x30d   :  { %v3334_v58 = vpack.c.bf16 %v3266_v55, %v3262_v53  ;;  %v3336_v59 = vpack.c.bf16 %v3268_v56, %v3264_v54  ;;  %v2368_v0 = vpop.f32.mrb[60].mxu0  ;;  %v3140_v1 = vpop.f32.mrb[60].mxu1 }
 0x30e   :  { %v4807_v2 = vadd.f32 %v2368_v0, %v7198_v60  ;;  %v4871_v3 = vadd.f32 %v3140_v1, %v7200_v61  ;;  %v2370_v4 = vpop.f32.mrb[61].mxu0  ;;  %v3142_v5 = vpop.f32.mrb[61].mxu1 }
 0x30f   :  { %v4808_v6 = vadd.f32 %v2370_v4, %v7202_v62  ;;  %v4872_v7 = vadd.f32 %v3142_v5, %v7204_v63  ;;  %v2372_v8 = vpop.f32.mrb[62].mxu0  ;;  %v3144_v9 = vpop.f32.mrb[62].mxu1  ;;  %3748 = vmatprep.mubr.bf16.mxu0 %v3334_v58  ;;  %3909 = vmatprep.mubr.bf16.mxu1 %v3336_v59 }
 0x310   :  { %v4809_v10 = vadd.f32 %v2372_v8, %v7198_v60  ;;  %v4873_v11 = vadd.f32 %v3144_v9, %v7200_v61  ;;  %v2374_v12 = vpop.f32.mrb[63].mxu0  ;;  %v3146_v13 = vpop.f32.mrb[63].mxu1  ;;  %3749 = vmatmul.mubr.bf16.gmra.mrb[120].mxu0 %v3333_v57  ;;  %3910 = vmatmul.mubr.bf16.gmra.mrb[120].mxu1 %v3335_v38  ;;  %v3269_v16 = vmax.f32 %v4807_v2, 0.0  ;;  %v3271_v17 = vmax.f32 %v4871_v3, 0.0 }
 0x311   :  { %v4810_v14 = vadd.f32 %v2374_v12, %v7202_v62  ;;  %v4874_v15 = vadd.f32 %v3146_v13, %v7204_v63  ;;  %v3270_v20 = vmax.f32 %v4808_v6, 0.0  ;;  %v3272_v21 = vmax.f32 %v4872_v7, 0.0  ;;  %v7337_v63 = vld [vmem:[%s7643_s4] ss:$0 sm:$0xff]  ;;  %s5742_s4 = smov [#allocation2]  }
 0x312   :  { %v3273_v18 = vmax.f32 %v4809_v10, 0.0  ;;  %v3275_v19 = vmax.f32 %v4873_v11, 0.0  ;;  %s4251_s12 = sshll.u32 %s5742_s4, 4  ;;  %s4252_s12 = int_to_ptr.vmem [resolvable:$true] %s4251_s12 }
 0x313   :  { %v3274_v22 = vmax.f32 %v4810_v14, 0.0  ;;  %v3276_v23 = vmax.f32 %v4874_v15, 0.0  ;;  %s5717_s13 = scalar_lea.vmem %s4252_s12, 4096  ;;  %p5722_p1 = scmp.lt.s32.totalorder %s4252_s12, %s4252_s12 }
 0x314   :  { %v3337_v24 = vpack.c.bf16 %v3273_v18, %v3269_v16  ;;  %v3339_v60 = vpack.c.bf16 %v3275_v19, %v3271_v17  ;;  %p5718_p0 = scmp.ne.s32.totalorder %s4252_s12, %s5717_s13  ;;  %p5723_p2 = scmp.lt.s32.totalorder %s5717_s13, %s5717_s13 }
 0x315   :  { %v3338_v25 = vpack.c.bf16 %v3274_v22, %v3270_v20  ;;  %v3340_v61 = vpack.c.bf16 %v3276_v23, %v3272_v21 }
 0x316   :  { %p5724_p3 = por %p5723_p2, %p5722_p1 }
 0x317   :  { %3756 = vmatprep.mubr.bf16.mxu0 %v3338_v25  ;;  %3917 = vmatprep.mubr.bf16.mxu1 %v3340_v61 }
 0x318   :  { %3757 = vmatmul.mubr.bf16.gmra.mrb[124].mxu0 %v3337_v24  ;;  %3918 = vmatmul.mubr.bf16.gmra.mrb[124].mxu1 %v3339_v60  ;;  %p5725_p4 = pnand %p5724_p3, %p5718_p0 }
 0x373   :  { %v4539_v26 = vpop.f32.mrb[64].mxu0  ;;  %v4651_v62 = vpop.f32.mrb[64].mxu1 }
 0x374   :  { %v4540_v27 = vpop.f32.mrb[65].mxu0  ;;  %v4652_v28 = vpop.f32.mrb[65].mxu1 }
 0x375   :  { %v4541_v29 = vadd.f32 %v4540_v27, %v4539_v26  ;;  %v4653_v30 = vadd.f32 %v4652_v28, %v4651_v62  ;;  %v4542_v31 = vpop.f32.mrb[66].mxu0  ;;  %v4654_v32 = vpop.f32.mrb[66].mxu1 }
 0x376   :  { %v4543_v33 = vpop.f32.mrb[67].mxu0  ;;  %v4655_v34 = vpop.f32.mrb[67].mxu1 }
 0x377   :  { %v3639_v35 = vadd.f32 %v4541_v29, %v7337_v63  ;;  %v4544_v36 = vadd.f32 %v4543_v33, %v4542_v31  ;;  %v4656_v37 = vadd.f32 %v4655_v34, %v4654_v32 }
 0x379   :  { %v3642_v39 = vadd.f32 %v4544_v36, %v7337_v63  ;;  %v7341_v40 = vadd.f32 %v4653_v30, %v3639_v35 }
 0x37b   :  { %v4545_v41 = vpop.f32.mrb[68].mxu0  ;;  %v4657_v42 = vpop.f32.mrb[68].mxu1  ;;  %3926 = vmax.xlane.f32.xlu0 %v7341_v40  ;;  %v7344_v43 = vadd.f32 %v4656_v37, %v3642_v39 }
 0x37c   :  { %v4546_v44 = vpop.f32.mrb[69].mxu0  ;;  %v4658_v45 = vpop.f32.mrb[69].mxu1 }
 0x37d   :  { %v4547_v46 = vadd.f32 %v4546_v44, %v4545_v41  ;;  %v4659_v47 = vadd.f32 %v4658_v45, %v4657_v42  ;;  %v4548_v48 = vpop.f32.mrb[70].mxu0  ;;  %v4660_v49 = vpop.f32.mrb[70].mxu1 }
 0x37e   :  { %v4549_v50 = vpop.f32.mrb[71].mxu0  ;;  %v4661_v51 = vpop.f32.mrb[71].mxu1 }
 0x37f   :  { %v3647_v52 = vadd.f32 %v4547_v46, %v7337_v63  ;;  %v4550_v53 = vadd.f32 %v4549_v50, %v4548_v48  ;;  %v4662_v54 = vadd.f32 %v4661_v51, %v4660_v49  ;;  %3928 = vmax.xlane.f32.xlu0 %v7344_v43 }
 0x381   :  { %v3650_v55 = vadd.f32 %v4550_v53, %v7337_v63  ;;  %v7349_v56 = vadd.f32 %v4659_v47, %v3647_v52 }
 0x383   :  { %v4551_v57 = vpop.f32.mrb[72].mxu0  ;;  %v4663_v38 = vpop.f32.mrb[72].mxu1  ;;  %3930 = vmax.xlane.f32.xlu1 %v7349_v56  ;;  %v7352_v58 = vadd.f32 %v4662_v54, %v3650_v55 }
 0x384   :  { %v4552_v59 = vpop.f32.mrb[73].mxu0  ;;  %v4664_v0 = vpop.f32.mrb[73].mxu1 }
 0x385   :  { %v4553_v1 = vadd.f32 %v4552_v59, %v4551_v57  ;;  %v4665_v2 = vadd.f32 %v4664_v0, %v4663_v38  ;;  %v4554_v3 = vpop.f32.mrb[74].mxu0  ;;  %v4666_v4 = vpop.f32.mrb[74].mxu1 }
 0x386   :  { %v4555_v5 = vpop.f32.mrb[75].mxu0  ;;  %v4667_v6 = vpop.f32.mrb[75].mxu1 }
 0x387   :  { %v3655_v7 = vadd.f32 %v4553_v1, %v7337_v63  ;;  %v4556_v8 = vadd.f32 %v4555_v5, %v4554_v3  ;;  %v4668_v9 = vadd.f32 %v4667_v6, %v4666_v4  ;;  %3932 = vmax.xlane.f32.xlu1 %v7352_v58 }
 0x389   :  { %v3658_v10 = vadd.f32 %v4556_v8, %v7337_v63  ;;  %v7357_v11 = vadd.f32 %v4665_v2, %v3655_v7 }
 0x38b   :  { %v4557_v12 = vpop.f32.mrb[76].mxu0  ;;  %v4669_v13 = vpop.f32.mrb[76].mxu1  ;;  %3934 = vmax.xlane.f32.xlu0 %v7357_v11  ;;  %v7360_v14 = vadd.f32 %v4668_v9, %v3658_v10 }
 0x38c   :  { %v4558_v15 = vpop.f32.mrb[77].mxu0  ;;  %v4670_v16 = vpop.f32.mrb[77].mxu1 }
 0x38d   :  { %v4559_v17 = vadd.f32 %v4558_v15, %v4557_v12  ;;  %v4671_v18 = vadd.f32 %v4670_v16, %v4669_v13  ;;  %v4560_v19 = vpop.f32.mrb[78].mxu0  ;;  %v4672_v20 = vpop.f32.mrb[78].mxu1  ;;  %3936 = vmax.xlane.f32.xlu1 %v7360_v14 }
 0x38e   :  { %v4561_v21 = vpop.f32.mrb[79].mxu0  ;;  %v4673_v22 = vpop.f32.mrb[79].mxu1 }
 0x38f   :  { %v3663_v23 = vadd.f32 %v4559_v17, %v7337_v63  ;;  %v4562_v24 = vadd.f32 %v4561_v21, %v4560_v19  ;;  %v4674_v60 = vadd.f32 %v4673_v22, %v4672_v20 }
 0x391   :  { %v3666_v25 = vadd.f32 %v4562_v24, %v7337_v63  ;;  %v7365_v61 = vadd.f32 %v4671_v18, %v3663_v23 }
 0x393   :  { %v4563_v26 = vpop.f32.mrb[80].mxu0  ;;  %v4675_v62 = vpop.f32.mrb[80].mxu1  ;;  %3938 = vmax.xlane.f32.xlu0 %v7365_v61  ;;  %v7368_v27 = vadd.f32 %v4674_v60, %v3666_v25 }
 0x394   :  { %v4564_v28 = vpop.f32.mrb[81].mxu0  ;;  %v4676_v29 = vpop.f32.mrb[81].mxu1 }
 0x395   :  { %v4565_v30 = vadd.f32 %v4564_v28, %v4563_v26  ;;  %v4677_v31 = vadd.f32 %v4676_v29, %v4675_v62  ;;  %v4566_v32 = vpop.f32.mrb[82].mxu0  ;;  %v4678_v33 = vpop.f32.mrb[82].mxu1  ;;  %3940 = vmax.xlane.f32.xlu1 %v7368_v27 }
 0x396   :  { %v4567_v34 = vpop.f32.mrb[83].mxu0  ;;  %v4679_v35 = vpop.f32.mrb[83].mxu1 }
 0x397   :  { %v3671_v36 = vadd.f32 %v4565_v30, %v7337_v63  ;;  %v4568_v37 = vadd.f32 %v4567_v34, %v4566_v32  ;;  %v4680_v39 = vadd.f32 %v4679_v35, %v4678_v33 }
 0x399   :  { %v3674_v41 = vadd.f32 %v4568_v37, %v7337_v63  ;;  %v7373_v42 = vadd.f32 %v4677_v31, %v3671_v36 }
 0x39b   :  { %v4569_v44 = vpop.f32.mrb[84].mxu0  ;;  %v4681_v45 = vpop.f32.mrb[84].mxu1  ;;  %3942 = vmax.xlane.f32.xlu0 %v7373_v42  ;;  %v7376_v46 = vadd.f32 %v4680_v39, %v3674_v41 }
 0x39c   :  { %v4570_v47 = vpop.f32.mrb[85].mxu0  ;;  %v4682_v48 = vpop.f32.mrb[85].mxu1 }
 0x39d   :  { %v4571_v49 = vadd.f32 %v4570_v47, %v4569_v44  ;;  %v4683_v50 = vadd.f32 %v4682_v48, %v4681_v45  ;;  %v4572_v51 = vpop.f32.mrb[86].mxu0  ;;  %v4684_v52 = vpop.f32.mrb[86].mxu1  ;;  %3944 = vmax.xlane.f32.xlu1 %v7376_v46 }
 0x39e   :  { %v4573_v53 = vpop.f32.mrb[87].mxu0  ;;  %v4685_v54 = vpop.f32.mrb[87].mxu1 }
 0x39f   :  { %v3679_v55 = vadd.f32 %v4571_v49, %v7337_v63  ;;  %v4574_v57 = vadd.f32 %v4573_v53, %v4572_v51  ;;  %v4686_v38 = vadd.f32 %v4685_v54, %v4684_v52 }
 0x3a1   :  { %v3682_v59 = vadd.f32 %v4574_v57, %v7337_v63  ;;  %v7381_v0 = vadd.f32 %v4683_v50, %v3679_v55 }
 0x3a3   :  { %v4575_v1 = vpop.f32.mrb[88].mxu0  ;;  %v4687_v2 = vpop.f32.mrb[88].mxu1  ;;  %3946 = vmax.xlane.f32.xlu0 %v7381_v0  ;;  %v7384_v3 = vadd.f32 %v4686_v38, %v3682_v59 }
 0x3a4   :  { %v4576_v4 = vpop.f32.mrb[89].mxu0  ;;  %v4688_v5 = vpop.f32.mrb[89].mxu1 }
 0x3a5   :  { %v4577_v6 = vadd.f32 %v4576_v4, %v4575_v1  ;;  %v4689_v7 = vadd.f32 %v4688_v5, %v4687_v2  ;;  %v4578_v8 = vpop.f32.mrb[90].mxu0  ;;  %v4690_v9 = vpop.f32.mrb[90].mxu1  ;;  %3948 = vmax.xlane.f32.xlu1 %v7384_v3 }
 0x3a6   :  { %v4579_v10 = vpop.f32.mrb[91].mxu0  ;;  %v4691_v12 = vpop.f32.mrb[91].mxu1 }
 0x3a7   :  { %v3687_v13 = vadd.f32 %v4577_v6, %v7337_v63  ;;  %v4580_v15 = vadd.f32 %v4579_v10, %v4578_v8  ;;  %v4692_v16 = vadd.f32 %v4691_v12, %v4690_v9 }
 0x3a9   :  { %v3690_v17 = vadd.f32 %v4580_v15, %v7337_v63  ;;  %v7389_v18 = vadd.f32 %v4689_v7, %v3687_v13 }
 0x3ab   :  { %v4581_v19 = vpop.f32.mrb[92].mxu0  ;;  %v4693_v20 = vpop.f32.mrb[92].mxu1  ;;  %3950 = vmax.xlane.f32.xlu0 %v7389_v18  ;;  %v7392_v21 = vadd.f32 %v4692_v16, %v3690_v17 }
 0x3ac   :  { %v4582_v22 = vpop.f32.mrb[93].mxu0  ;;  %v4694_v23 = vpop.f32.mrb[93].mxu1 }
 0x3ad   :  { %v4583_v24 = vadd.f32 %v4582_v22, %v4581_v19  ;;  %v4695_v60 = vadd.f32 %v4694_v23, %v4693_v20  ;;  %v4584_v25 = vpop.f32.mrb[94].mxu0  ;;  %v4696_v26 = vpop.f32.mrb[94].mxu1  ;;  %3952 = vmax.xlane.f32.xlu1 %v7392_v21 }
 0x3ae   :  { %v4585_v62 = vpop.f32.mrb[95].mxu0  ;;  %v4697_v28 = vpop.f32.mrb[95].mxu1 }
 0x3af   :  { %v3695_v29 = vadd.f32 %v4583_v24, %v7337_v63  ;;  %v4586_v30 = vadd.f32 %v4585_v62, %v4584_v25  ;;  %v4698_v31 = vadd.f32 %v4697_v28, %v4696_v26 }
 0x3b1   :  { %v3698_v32 = vadd.f32 %v4586_v30, %v7337_v63  ;;  %v7397_v33 = vadd.f32 %v4695_v60, %v3695_v29 }
 0x3b3   :  { %v4587_v34 = vpop.f32.mrb[96].mxu0  ;;  %v4699_v35 = vpop.f32.mrb[96].mxu1  ;;  %3954 = vmax.xlane.f32.xlu0 %v7397_v33  ;;  %v7400_v36 = vadd.f32 %v4698_v31, %v3698_v32 }
 0x3b4   :  { %v4588_v37 = vpop.f32.mrb[97].mxu0  ;;  %v4700_v39 = vpop.f32.mrb[97].mxu1 }
 0x3b5   :  { %v4589_v41 = vadd.f32 %v4588_v37, %v4587_v34  ;;  %v4701_v44 = vadd.f32 %v4700_v39, %v4699_v35  ;;  %v4590_v45 = vpop.f32.mrb[98].mxu0  ;;  %v4702_v47 = vpop.f32.mrb[98].mxu1  ;;  %3956 = vmax.xlane.f32.xlu1 %v7400_v36 }
 0x3b6   :  { %v4591_v48 = vpop.f32.mrb[99].mxu0  ;;  %v4703_v49 = vpop.f32.mrb[99].mxu1 }
 0x3b7   :  { %v3703_v50 = vadd.f32 %v4589_v41, %v7337_v63  ;;  %v4592_v51 = vadd.f32 %v4591_v48, %v4590_v45  ;;  %v4704_v52 = vadd.f32 %v4703_v49, %v4702_v47 }
 0x3b9   :  { %v3706_v53 = vadd.f32 %v4592_v51, %v7337_v63  ;;  %v7405_v54 = vadd.f32 %v4701_v44, %v3703_v50 }
 0x3bb   :  { %v4593_v55 = vpop.f32.mrb[100].mxu0  ;;  %v4705_v57 = vpop.f32.mrb[100].mxu1  ;;  %3958 = vmax.xlane.f32.xlu0 %v7405_v54  ;;  %v7408_v38 = vadd.f32 %v4704_v52, %v3706_v53 }
 0x3bc   :  { %v4594_v59 = vpop.f32.mrb[101].mxu0  ;;  %v4706_v1 = vpop.f32.mrb[101].mxu1 }
 0x3bd   :  { %v4595_v2 = vadd.f32 %v4594_v59, %v4593_v55  ;;  %v4707_v4 = vadd.f32 %v4706_v1, %v4705_v57  ;;  %v4596_v5 = vpop.f32.mrb[102].mxu0  ;;  %v4708_v6 = vpop.f32.mrb[102].mxu1  ;;  %3960 = vmax.xlane.f32.xlu1 %v7408_v38 }
 0x3be   :  { %v4597_v7 = vpop.f32.mrb[103].mxu0  ;;  %v4709_v8 = vpop.f32.mrb[103].mxu1 }
 0x3bf   :  { %v3711_v9 = vadd.f32 %v4595_v2, %v7337_v63  ;;  %v4598_v10 = vadd.f32 %v4597_v7, %v4596_v5  ;;  %v4710_v12 = vadd.f32 %v4709_v8, %v4708_v6 }
 0x3c1   :  { %v3714_v13 = vadd.f32 %v4598_v10, %v7337_v63  ;;  %v7413_v15 = vadd.f32 %v4707_v4, %v3711_v9 }
 0x3c3   :  { %v4599_v16 = vpop.f32.mrb[104].mxu0  ;;  %v4711_v17 = vpop.f32.mrb[104].mxu1  ;;  %3962 = vmax.xlane.f32.xlu0 %v7413_v15  ;;  %v7416_v19 = vadd.f32 %v4710_v12, %v3714_v13 }
 0x3c4   :  { %v4600_v20 = vpop.f32.mrb[105].mxu0  ;;  %v4712_v22 = vpop.f32.mrb[105].mxu1 }
 0x3c5   :  { %v4601_v23 = vadd.f32 %v4600_v20, %v4599_v16  ;;  %v4713_v24 = vadd.f32 %v4712_v22, %v4711_v17  ;;  %v4602_v60 = vpop.f32.mrb[106].mxu0  ;;  %v4714_v25 = vpop.f32.mrb[106].mxu1  ;;  %3964 = vmax.xlane.f32.xlu1 %v7416_v19 }
 0x3c6   :  { %v4603_v26 = vpop.f32.mrb[107].mxu0  ;;  %v4715_v62 = vpop.f32.mrb[107].mxu1 }
 0x3c7   :  { %v3719_v28 = vadd.f32 %v4601_v23, %v7337_v63  ;;  %v4604_v29 = vadd.f32 %v4603_v26, %v4602_v60  ;;  %v4716_v30 = vadd.f32 %v4715_v62, %v4714_v25 }
 0x3c9   :  { %v3722_v31 = vadd.f32 %v4604_v29, %v7337_v63  ;;  %v7421_v32 = vadd.f32 %v4713_v24, %v3719_v28 }
 0x3cb   :  { %v4605_v34 = vpop.f32.mrb[108].mxu0  ;;  %v4717_v35 = vpop.f32.mrb[108].mxu1  ;;  %3966 = vmax.xlane.f32.xlu0 %v7421_v32  ;;  %v7424_v37 = vadd.f32 %v4716_v30, %v3722_v31 }
 0x3cc   :  { %v4606_v39 = vpop.f32.mrb[109].mxu0  ;;  %v4718_v41 = vpop.f32.mrb[109].mxu1 }
 0x3cd   :  { %v4607_v44 = vadd.f32 %v4606_v39, %v4605_v34  ;;  %v4719_v45 = vadd.f32 %v4718_v41, %v4717_v35  ;;  %v4608_v47 = vpop.f32.mrb[110].mxu0  ;;  %v4720_v48 = vpop.f32.mrb[110].mxu1  ;;  %3968 = vmax.xlane.f32.xlu1 %v7424_v37 }
 0x3ce   :  { %v4609_v49 = vpop.f32.mrb[111].mxu0  ;;  %v4721_v50 = vpop.f32.mrb[111].mxu1 }
 0x3cf   :  { %v3727_v51 = vadd.f32 %v4607_v44, %v7337_v63  ;;  %v4610_v52 = vadd.f32 %v4609_v49, %v4608_v47  ;;  %v4722_v53 = vadd.f32 %v4721_v50, %v4720_v48 }
 0x3d1   :  { %v3730_v55 = vadd.f32 %v4610_v52, %v7337_v63  ;;  %v7429_v57 = vadd.f32 %v4719_v45, %v3727_v51 }
 0x3d3   :  { %v4611_v59 = vpop.f32.mrb[112].mxu0  ;;  %v4723_v1 = vpop.f32.mrb[112].mxu1  ;;  %3970 = vmax.xlane.f32.xlu0 %v7429_v57  ;;  %v7432_v2 = vadd.f32 %v4722_v53, %v3730_v55 }
 0x3d4   :  { %v4612_v4 = vpop.f32.mrb[113].mxu0  ;;  %v4724_v5 = vpop.f32.mrb[113].mxu1 }
 0x3d5   :  { %v4613_v6 = vadd.f32 %v4612_v4, %v4611_v59  ;;  %v4725_v7 = vadd.f32 %v4724_v5, %v4723_v1  ;;  %v4614_v8 = vpop.f32.mrb[114].mxu0  ;;  %v4726_v9 = vpop.f32.mrb[114].mxu1  ;;  %3972 = vmax.xlane.f32.xlu1 %v7432_v2 }
 0x3d6   :  { %v4615_v10 = vpop.f32.mrb[115].mxu0  ;;  %v4727_v12 = vpop.f32.mrb[115].mxu1 }
 0x3d7   :  { %v3735_v13 = vadd.f32 %v4613_v6, %v7337_v63  ;;  %v4616_v16 = vadd.f32 %v4615_v10, %v4614_v8  ;;  %v4728_v17 = vadd.f32 %v4727_v12, %v4726_v9 }
 0x3d9   :  { %v3738_v20 = vadd.f32 %v4616_v16, %v7337_v63  ;;  %v7437_v22 = vadd.f32 %v4725_v7, %v3735_v13 }
 0x3db   :  { %v4617_v23 = vpop.f32.mrb[116].mxu0  ;;  %v4729_v24 = vpop.f32.mrb[116].mxu1  ;;  %3974 = vmax.xlane.f32.xlu0 %v7437_v22  ;;  %v7440_v60 = vadd.f32 %v4728_v17, %v3738_v20 }
 0x3dc   :  { %v4618_v25 = vpop.f32.mrb[117].mxu0  ;;  %v4730_v26 = vpop.f32.mrb[117].mxu1 }
 0x3dd   :  { %v4619_v62 = vadd.f32 %v4618_v25, %v4617_v23  ;;  %v4731_v28 = vadd.f32 %v4730_v26, %v4729_v24  ;;  %v4620_v29 = vpop.f32.mrb[118].mxu0  ;;  %v4732_v30 = vpop.f32.mrb[118].mxu1  ;;  %3976 = vmax.xlane.f32.xlu1 %v7440_v60 }
 0x3de   :  { %v4621_v31 = vpop.f32.mrb[119].mxu0  ;;  %v4733_v34 = vpop.f32.mrb[119].mxu1 }
 0x3df   :  { %v3743_v35 = vadd.f32 %v4619_v62, %v7337_v63  ;;  %v4622_v39 = vadd.f32 %v4621_v31, %v4620_v29  ;;  %v4734_v41 = vadd.f32 %v4733_v34, %v4732_v30 }
 0x3e1   :  { %v3746_v44 = vadd.f32 %v4622_v39, %v7337_v63  ;;  %v7445_v45 = vadd.f32 %v4731_v28, %v3743_v35 }
 0x3e3   :  { %v4623_v47 = vpop.f32.mrb[120].mxu0  ;;  %v4735_v48 = vpop.f32.mrb[120].mxu1  ;;  %3978 = vmax.xlane.f32.xlu0 %v7445_v45  ;;  %v7448_v49 = vadd.f32 %v4734_v41, %v3746_v44 }
 0x3e4   :  { %v4624_v50 = vpop.f32.mrb[121].mxu0  ;;  %v4736_v51 = vpop.f32.mrb[121].mxu1 }
 0x3e5   :  { %v4625_v52 = vadd.f32 %v4624_v50, %v4623_v47  ;;  %v4737_v53 = vadd.f32 %v4736_v51, %v4735_v48  ;;  %v4626_v55 = vpop.f32.mrb[122].mxu0  ;;  %v4738_v59 = vpop.f32.mrb[122].mxu1  ;;  %3980 = vmax.xlane.f32.xlu1 %v7448_v49 }
 0x3e6   :  { %v4627_v1 = vpop.f32.mrb[123].mxu0  ;;  %v4739_v4 = vpop.f32.mrb[123].mxu1 }
 0x3e7   :  { %v3751_v5 = vadd.f32 %v4625_v52, %v7337_v63  ;;  %v4628_v6 = vadd.f32 %v4627_v1, %v4626_v55  ;;  %v4740_v7 = vadd.f32 %v4739_v4, %v4738_v59 }
 0x3e9   :  { %v3754_v8 = vadd.f32 %v4628_v6, %v7337_v63  ;;  %v7453_v9 = vadd.f32 %v4737_v53, %v3751_v5 }
 0x3eb   :  { %v4629_v10 = vpop.f32.mrb[124].mxu0  ;;  %v4741_v12 = vpop.f32.mrb[124].mxu1  ;;  %3982 = vmax.xlane.f32.xlu0 %v7453_v9  ;;  %v7456_v13 = vadd.f32 %v4740_v7, %v3754_v8 }
 0x3ec   :  { %v4630_v16 = vpop.f32.mrb[125].mxu0  ;;  %v4742_v17 = vpop.f32.mrb[125].mxu1 }
 0x3ed   :  { %v4631_v20 = vadd.f32 %v4630_v16, %v4629_v10  ;;  %v4743_v23 = vadd.f32 %v4742_v17, %v4741_v12  ;;  %v4632_v24 = vpop.f32.mrb[126].mxu0  ;;  %v4744_v25 = vpop.f32.mrb[126].mxu1  ;;  %3984 = vmax.xlane.f32.xlu1 %v7456_v13 }
 0x3ee   :  { %v4633_v26 = vpop.f32.mrb[127].mxu0  ;;  %v4745_v62 = vpop.f32.mrb[127].mxu1 }
 0x3ef   :  { %v3759_v28 = vadd.f32 %v4631_v20, %v7337_v63  ;;  %v4634_v29 = vadd.f32 %v4633_v26, %v4632_v24  ;;  %v4746_v30 = vadd.f32 %v4745_v62, %v4744_v25 }
 0x3f1   :  { %v3762_v31 = vadd.f32 %v4634_v29, %v7337_v63  ;;  %v7461_v34 = vadd.f32 %v4743_v23, %v3759_v28 }
 0x3f3   :  { %3986 = vmax.xlane.f32.xlu0 %v7461_v34  ;;  %v7464_v35 = vadd.f32 %v4746_v30, %v3762_v31 }
 0x3f5   :  { %3988 = vmax.xlane.f32.xlu1 %v7464_v35 }
 0x408   :  { %v3927_v39 = vpop.xlane.xlu0 %3926 }
 0x409   :  { %v3990_v41 = vsub.f32 %v7341_v40, %v3927_v39 }
 0x40b   :  { %v4022_v44 = vmul.f32 1.442695, %v3990_v41 }
 0x40c   :  { %v3929_v47 = vpop.xlane.xlu0 %3928 }
 0x40d   :  { %5589 = vpow2.f32 %v4022_v44  ;;  %v3991_v48 = vsub.f32 %v7344_v43, %v3929_v47 }
 0x40f   :  { %v4024_v50 = vmul.f32 1.442695, %v3991_v48 }
 0x410   :  { %v3931_v51 = vpop.xlane.xlu1 %3930 }
 0x411   :  { %5591 = vpow2.f32 %v4024_v50  ;;  %v3992_v63 = vsub.f32 %v7349_v56, %v3931_v51 }
 0x413   :  { %v4026_v52 = vmul.f32 1.442695, %v3992_v63 }
 0x414   :  { %v3933_v53 = vpop.xlane.xlu1 %3932 }
 0x415   :  { %5593 = vpow2.f32 %v4026_v52  ;;  %v3993_v55 = vsub.f32 %v7352_v58, %v3933_v53 }
 0x417   :  { %v7471_v59 = vpop.eup %5589  ;;  %v4028_v1 = vmul.f32 1.442695, %v3993_v55 }
 0x418   :  { %4086 = vadd.xlane.f32.xlu0 %v7471_v59  ;;  %v3935_v40 = vpop.xlane.xlu0 %3934 }
 0x419   :  { %5595 = vpow2.f32 %v4028_v1  ;;  %v3994_v4 = vsub.f32 %v7357_v11, %v3935_v40 }
 0x41a   :  { %v3937_v43 = vpop.xlane.xlu1 %3936 }
 0x41b   :  { %v7475_v5 = vpop.eup %5591  ;;  %v4030_v6 = vmul.f32 1.442695, %v3994_v4  ;;  %v3995_v56 = vsub.f32 %v7360_v14, %v3937_v43 }
 0x41c   :  { %4088 = vadd.xlane.f32.xlu1 %v7475_v5 }
 0x41d   :  { %5597 = vpow2.f32 %v4030_v6  ;;  %v4032_v7 = vmul.f32 1.442695, %v3995_v56 }
 0x41f   :  { %v7479_v58 = vpop.eup %5593  ;;  %5599 = vpow2.f32 %v4032_v7 }
 0x420   :  { %4090 = vadd.xlane.f32.xlu0 %v7479_v58  ;;  %v3939_v8 = vpop.xlane.xlu0 %3938 }
 0x421   :  { %v3996_v10 = vsub.f32 %v7365_v61, %v3939_v8 }
 0x422   :  { %v3941_v12 = vpop.xlane.xlu1 %3940 }
 0x423   :  { %v7483_v11 = vpop.eup %5595  ;;  %v4034_v16 = vmul.f32 1.442695, %v3996_v10  ;;  %v3997_v17 = vsub.f32 %v7368_v27, %v3941_v12 }
 0x424   :  { %4092 = vadd.xlane.f32.xlu1 %v7483_v11 }
 0x425   :  { %5601 = vpow2.f32 %v4034_v16  ;;  %v4036_v14 = vmul.f32 1.442695, %v3997_v17 }
 0x427   :  { %v7487_v20 = vpop.eup %5597  ;;  %5603 = vpow2.f32 %v4036_v14 }
 0x428   :  { %4094 = vadd.xlane.f32.xlu0 %v7487_v20  ;;  %v3943_v23 = vpop.xlane.xlu0 %3942 }
 0x429   :  { %v7490_v24 = vpop.eup %5599  ;;  %v3998_v61 = vsub.f32 %v7373_v42, %v3943_v23 }
 0x42a   :  { %v3945_v25 = vpop.xlane.xlu1 %3944  ;;  %4096 = vadd.xlane.f32.xlu1 %v7490_v24 }
 0x42b   :  { %v4038_v26 = vmul.f32 1.442695, %v3998_v61  ;;  %v3999_v27 = vsub.f32 %v7376_v46, %v3945_v25 }
 0x42d   :  { %5605 = vpow2.f32 %v4038_v26  ;;  %v4040_v62 = vmul.f32 1.442695, %v3999_v27 }
 0x42f   :  { %v7495_v28 = vpop.eup %5601  ;;  %5607 = vpow2.f32 %v4040_v62 }
 0x430   :  { %4098 = vadd.xlane.f32.xlu0 %v7495_v28  ;;  %v3947_v29 = vpop.xlane.xlu0 %3946 }
 0x431   :  { %v7498_v30 = vpop.eup %5603  ;;  %v4000_v31 = vsub.f32 %v7381_v0, %v3947_v29 }
 0x432   :  { %v3949_v39 = vpop.xlane.xlu1 %3948  ;;  %4100 = vadd.xlane.f32.xlu1 %v7498_v30 }
 0x433   :  { %v4042_v42 = vmul.f32 1.442695, %v4000_v31  ;;  %v4001_v41 = vsub.f32 %v7384_v3, %v3949_v39 }
 0x435   :  { %5609 = vpow2.f32 %v4042_v42  ;;  %v4044_v46 = vmul.f32 1.442695, %v4001_v41 }
 0x437   :  { %v7503_v44 = vpop.eup %5605  ;;  %5611 = vpow2.f32 %v4044_v46 }
 0x438   :  { %4102 = vadd.xlane.f32.xlu0 %v7503_v44  ;;  %v3951_v47 = vpop.xlane.xlu0 %3950 }
 0x439   :  { %v7506_v48 = vpop.eup %5607  ;;  %v4002_v50 = vsub.f32 %v7389_v18, %v3951_v47 }
 0x43a   :  { %v3953_v51 = vpop.xlane.xlu1 %3952  ;;  %4104 = vadd.xlane.f32.xlu1 %v7506_v48 }
 0x43b   :  { %v4046_v0 = vmul.f32 1.442695, %v4002_v50  ;;  %v4003_v63 = vsub.f32 %v7392_v21, %v3953_v51 }
 0x43d   :  { %5613 = vpow2.f32 %v4046_v0  ;;  %v4048_v3 = vmul.f32 1.442695, %v4003_v63 }
 0x43f   :  { %v7511_v52 = vpop.eup %5609  ;;  %5615 = vpow2.f32 %v4048_v3 }
 0x440   :  { %4106 = vadd.xlane.f32.xlu0 %v7511_v52  ;;  %v3955_v53 = vpop.xlane.xlu0 %3954 }
 0x441   :  { %v7514_v55 = vpop.eup %5611  ;;  %v4004_v1 = vsub.f32 %v7397_v33, %v3955_v53 }
 0x442   :  { %v3957_v40 = vpop.xlane.xlu1 %3956  ;;  %4108 = vadd.xlane.f32.xlu1 %v7514_v55 }
 0x443   :  { %v4050_v18 = vmul.f32 1.442695, %v4004_v1  ;;  %v4005_v4 = vsub.f32 %v7400_v36, %v3957_v40 }
 0x445   :  { %5617 = vpow2.f32 %v4050_v18  ;;  %v4052_v21 = vmul.f32 1.442695, %v4005_v4 }
 0x447   :  { %v7519_v43 = vpop.eup %5613  ;;  %5619 = vpow2.f32 %v4052_v21 }
 0x448   :  { %4110 = vadd.xlane.f32.xlu0 %v7519_v43  ;;  %v3959_v6 = vpop.xlane.xlu0 %3958 }
 0x449   :  { %v7522_v56 = vpop.eup %5615  ;;  %v4006_v7 = vsub.f32 %v7405_v54, %v3959_v6 }
 0x44a   :  { %v3961_v8 = vpop.xlane.xlu1 %3960  ;;  %4112 = vadd.xlane.f32.xlu1 %v7522_v56 }
 0x44b   :  { %v4054_v33 = vmul.f32 1.442695, %v4006_v7  ;;  %v4007_v10 = vsub.f32 %v7408_v38, %v3961_v8 }
 0x44d   :  { %5621 = vpow2.f32 %v4054_v33  ;;  %v4056_v36 = vmul.f32 1.442695, %v4007_v10 }
 0x44f   :  { %v7527_v12 = vpop.eup %5617  ;;  %5623 = vpow2.f32 %v4056_v36 }
 0x450   :  { %4114 = vadd.xlane.f32.xlu0 %v7527_v12  ;;  %v3963_v16 = vpop.xlane.xlu0 %3962 }
 0x451   :  { %v7530_v17 = vpop.eup %5619  ;;  %v4008_v14 = vsub.f32 %v7413_v15, %v3963_v16 }
 0x452   :  { %v3965_v23 = vpop.xlane.xlu1 %3964  ;;  %4116 = vadd.xlane.f32.xlu1 %v7530_v17 }
 0x453   :  { %v4058_v54 = vmul.f32 1.442695, %v4008_v14  ;;  %v4009_v61 = vsub.f32 %v7416_v19, %v3965_v23 }
 0x455   :  { %5625 = vpow2.f32 %v4058_v54  ;;  %v4060_v38 = vmul.f32 1.442695, %v4009_v61 }
 0x457   :  { %v7535_v25 = vpop.eup %5621  ;;  %5627 = vpow2.f32 %v4060_v38 }
 0x458   :  { %4118 = vadd.xlane.f32.xlu0 %v7535_v25  ;;  %v3967_v26 = vpop.xlane.xlu0 %3966 }
 0x459   :  { %v7538_v27 = vpop.eup %5623  ;;  %v4010_v62 = vsub.f32 %v7421_v32, %v3967_v26 }
 0x45a   :  { %v3969_v29 = vpop.xlane.xlu1 %3968  ;;  %4120 = vadd.xlane.f32.xlu1 %v7538_v27 }
 0x45b   :  { %v4062_v15 = vmul.f32 1.442695, %v4010_v62  ;;  %v4011_v31 = vsub.f32 %v7424_v37, %v3969_v29 }
 0x45d   :  { %5629 = vpow2.f32 %v4062_v15  ;;  %v4064_v19 = vmul.f32 1.442695, %v4011_v31 }
 0x45f   :  { %v7543_v39 = vpop.eup %5625  ;;  %5631 = vpow2.f32 %v4064_v19 }
 0x460   :  { %4122 = vadd.xlane.f32.xlu0 %v7543_v39  ;;  %v3971_v42 = vpop.xlane.xlu0 %3970 }
 0x461   :  { %v7546_v41 = vpop.eup %5627  ;;  %v4012_v46 = vsub.f32 %v7429_v57, %v3971_v42 }
 0x462   :  { %v3973_v47 = vpop.xlane.xlu1 %3972  ;;  %4124 = vadd.xlane.f32.xlu1 %v7546_v41 }
 0x463   :  { %v4066_v32 = vmul.f32 1.442695, %v4012_v46  ;;  %v4013_v50 = vsub.f32 %v7432_v2, %v3973_v47 }
 0x465   :  { %5633 = vpow2.f32 %v4066_v32  ;;  %v4068_v37 = vmul.f32 1.442695, %v4013_v50 }
 0x467   :  { %v7551_v51 = vpop.eup %5629  ;;  %5635 = vpow2.f32 %v4068_v37 }
 0x468   :  { %4126 = vadd.xlane.f32.xlu0 %v7551_v51  ;;  %v3975_v0 = vpop.xlane.xlu0 %3974 }
 0x469   :  { %v7554_v63 = vpop.eup %5631  ;;  %v4014_v3 = vsub.f32 %v7437_v22, %v3975_v0 }
 0x46a   :  { %v3977_v53 = vpop.xlane.xlu1 %3976  ;;  %4128 = vadd.xlane.f32.xlu1 %v7554_v63 }
 0x46b   :  { %v4070_v57 = vmul.f32 1.442695, %v4014_v3  ;;  %v4015_v1 = vsub.f32 %v7440_v60, %v3977_v53 }
 0x46d   :  { %5637 = vpow2.f32 %v4070_v57  ;;  %v4072_v2 = vmul.f32 1.442695, %v4015_v1 }
 0x46f   :  { %v7559_v40 = vpop.eup %5633  ;;  %5639 = vpow2.f32 %v4072_v2 }
 0x470   :  { %4130 = vadd.xlane.f32.xlu0 %v7559_v40  ;;  %v3979_v18 = vpop.xlane.xlu0 %3978 }
 0x471   :  { %v7562_v4 = vpop.eup %5635  ;;  %v4016_v21 = vsub.f32 %v7445_v45, %v3979_v18 }
 0x472   :  { %v3981_v6 = vpop.xlane.xlu1 %3980  ;;  %4132 = vadd.xlane.f32.xlu1 %v7562_v4 }
 0x473   :  { %v4074_v22 = vmul.f32 1.442695, %v4016_v21  ;;  %v4017_v7 = vsub.f32 %v7448_v49, %v3981_v6 }
 0x475   :  { %5641 = vpow2.f32 %v4074_v22  ;;  %v4076_v60 = vmul.f32 1.442695, %v4017_v7 }
 0x477   :  { %v7567_v8 = vpop.eup %5637  ;;  %5643 = vpow2.f32 %v4076_v60 }
 0x478   :  { %4134 = vadd.xlane.f32.xlu0 %v7567_v8  ;;  %v3983_v33 = vpop.xlane.xlu0 %3982 }
 0x479   :  { %v7570_v10 = vpop.eup %5639  ;;  %v4018_v36 = vsub.f32 %v7453_v9, %v3983_v33 }
 0x47a   :  { %v3985_v16 = vpop.xlane.xlu1 %3984  ;;  %4136 = vadd.xlane.f32.xlu1 %v7570_v10 }
 0x47b   :  { %v4078_v45 = vmul.f32 1.442695, %v4018_v36  ;;  %v4019_v14 = vsub.f32 %v7456_v13, %v3985_v16 }
 0x47d   :  { %5645 = vpow2.f32 %v4078_v45  ;;  %v4080_v49 = vmul.f32 1.442695, %v4019_v14 }
 0x47f   :  { %v7575_v23 = vpop.eup %5641  ;;  %5647 = vpow2.f32 %v4080_v49 }
 0x480   :  { %4138 = vadd.xlane.f32.xlu0 %v7575_v23  ;;  %v3987_v54 = vpop.xlane.xlu0 %3986 }
 0x481   :  { %v7578_v61 = vpop.eup %5643  ;;  %v4020_v38 = vsub.f32 %v7461_v34, %v3987_v54 }
 0x482   :  { %v3989_v26 = vpop.xlane.xlu1 %3988  ;;  %4140 = vadd.xlane.f32.xlu1 %v7578_v61 }
 0x483   :  { %v4082_v9 = vmul.f32 1.442695, %v4020_v38  ;;  %v4021_v62 = vsub.f32 %v7464_v35, %v3989_v26 }
 0x485   :  { %5649 = vpow2.f32 %v4082_v9  ;;  %v4084_v13 = vmul.f32 1.442695, %v4021_v62 }
 0x487   :  { %v7583_v29 = vpop.eup %5645  ;;  %5651 = vpow2.f32 %v4084_v13 }
 0x488   :  { %4142 = vadd.xlane.f32.xlu0 %v7583_v29 }
 0x489   :  { %v7586_v15 = vpop.eup %5647 }
 0x48a   :  { %4144 = vadd.xlane.f32.xlu1 %v7586_v15 }
 0x48f   :  { %v7589_v31 = vpop.eup %5649 }
 0x490   :  { %4146 = vadd.xlane.f32.xlu0 %v7589_v31 }
 0x491   :  { %v7592_v34 = vpop.eup %5651 }
 0x492   :  { %4148 = vadd.xlane.f32.xlu1 %v7592_v34 }
 0x4a5   :  { %v4087_v35 = vpop.xlane.xlu0 %4086 }
 0x4a6   :  { %5653 = vrcp.f32 %v4087_v35 }
 0x4a9   :  { %v4089_v19 = vpop.xlane.xlu1 %4088 }
 0x4aa   :  { %5655 = vrcp.f32 %v4089_v19 }
 0x4ad   :  { %v4091_v42 = vpop.xlane.xlu0 %4090 }
 0x4ae   :  { %5657 = vrcp.f32 %v4091_v42 }
 0x4b0   :  { %v5654_v46 = vpop.eup %5653 }
 0x4b1   :  { %v4151_v47 = vmul.f32 %v5654_v46, %v7471_v59  ;;  %v4093_v32 = vpop.xlane.xlu1 %4092 }
 0x4b2   :  { %5659 = vrcp.f32 %v4093_v32 }
 0x4b3   :  { %4214 = vst [vmem:[#allocation2] sm:$0xff] %v4151_v47 }
 0x4b4   :  { %v5656_v50 = vpop.eup %5655 }
 0x4b5   :  { %v4153_v37 = vmul.f32 %v5656_v50, %v7475_v5  ;;  %v4095_v0 = vpop.xlane.xlu0 %4094 }
 0x4b6   :  { %5661 = vrcp.f32 %v4095_v0 }
 0x4b7   :  { %4215 = vst [vmem:[#allocation2 + $0x8] sm:$0xff] %v4153_v37  ;;  %v4097_v3 = vpop.xlane.xlu1 %4096 }
 0x4b8   :  { %v5658_v53 = vpop.eup %5657  ;;  %5663 = vrcp.f32 %v4097_v3 }
 0x4b9   :  { %v4155_v57 = vmul.f32 %v5658_v53, %v7479_v58 }
 0x4bb   :  { %4216 = vst [vmem:[#allocation2 + $0x10] sm:$0xff] %v4155_v57 }
 0x4bc   :  { %v5660_v1 = vpop.eup %5659 }
 0x4bd   :  { %v4157_v2 = vmul.f32 %v5660_v1, %v7483_v11  ;;  %v4099_v18 = vpop.xlane.xlu0 %4098 }
 0x4be   :  { %5665 = vrcp.f32 %v4099_v18 }
 0x4bf   :  { %4217 = vst [vmem:[#allocation2 + $0x18] sm:$0xff] %v4157_v2  ;;  %v4101_v59 = vpop.xlane.xlu1 %4100 }
 0x4c0   :  { %v5662_v21 = vpop.eup %5661  ;;  %5667 = vrcp.f32 %v4101_v59 }
 0x4c1   :  { %v4159_v5 = vmul.f32 %v5662_v21, %v7487_v20 }
 0x4c2   :  { %v5664_v6 = vpop.eup %5663 }
 0x4c3   :  { %4218 = vst [vmem:[#allocation2 + $0x20] sm:$0xff] %v4159_v5  ;;  %v4161_v22 = vmul.f32 %v5664_v6, %v7490_v24 }
 0x4c5   :  { %4219 = vst [vmem:[#allocation2 + $0x28] sm:$0xff] %v4161_v22  ;;  %v4103_v7 = vpop.xlane.xlu0 %4102 }
 0x4c6   :  { %5669 = vrcp.f32 %v4103_v7 }
 0x4c7   :  { %v4105_v58 = vpop.xlane.xlu1 %4104 }
 0x4c8   :  { %v5666_v60 = vpop.eup %5665  ;;  %5671 = vrcp.f32 %v4105_v58 }
 0x4c9   :  { %v4163_v11 = vmul.f32 %v5666_v60, %v7495_v28 }
 0x4ca   :  { %v5668_v33 = vpop.eup %5667 }
 0x4cb   :  { %4220 = vst [vmem:[#allocation2 + $0x30] sm:$0xff] %v4163_v11  ;;  %v4165_v36 = vmul.f32 %v5668_v33, %v7498_v30 }
 0x4cd   :  { %4221 = vst [vmem:[#allocation2 + $0x38] sm:$0xff] %v4165_v36  ;;  %v4107_v16 = vpop.xlane.xlu0 %4106 }
 0x4ce   :  { %5673 = vrcp.f32 %v4107_v16 }
 0x4cf   :  { %v4109_v20 = vpop.xlane.xlu1 %4108 }
 0x4d0   :  { %v5670_v45 = vpop.eup %5669  ;;  %5675 = vrcp.f32 %v4109_v20 }
 0x4d1   :  { %v4167_v24 = vmul.f32 %v5670_v45, %v7503_v44 }
 0x4d2   :  { %v5672_v14 = vpop.eup %5671 }
 0x4d3   :  { %4222 = vst [vmem:[#allocation2 + $0x40] sm:$0xff] %v4167_v24  ;;  %v4169_v49 = vmul.f32 %v5672_v14, %v7506_v48 }
 0x4d5   :  { %4223 = vst [vmem:[#allocation2 + $0x48] sm:$0xff] %v4169_v49  ;;  %v4111_v54 = vpop.xlane.xlu0 %4110 }
 0x4d6   :  { %5677 = vrcp.f32 %v4111_v54 }
 0x4d7   :  { %v4113_v28 = vpop.xlane.xlu1 %4112 }
 0x4d8   :  { %v5674_v38 = vpop.eup %5673  ;;  %5679 = vrcp.f32 %v4113_v28 }
 0x4d9   :  { %v4171_v30 = vmul.f32 %v5674_v38, %v7511_v52 }
 0x4da   :  { %v5676_v26 = vpop.eup %5675 }
 0x4db   :  { %4224 = vst [vmem:[#allocation2 + $0x50] sm:$0xff] %v4171_v30  ;;  %v4173_v9 = vmul.f32 %v5676_v26, %v7514_v55 }
 0x4dd   :  { %4225 = vst [vmem:[#allocation2 + $0x58] sm:$0xff] %v4173_v9  ;;  %v4115_v62 = vpop.xlane.xlu0 %4114 }
 0x4de   :  { %5681 = vrcp.f32 %v4115_v62 }
 0x4df   :  { %v4117_v44 = vpop.xlane.xlu1 %4116 }
 0x4e0   :  { %v5678_v13 = vpop.eup %5677  ;;  %5683 = vrcp.f32 %v4117_v44 }
 0x4e1   :  { %v4175_v48 = vmul.f32 %v5678_v13, %v7519_v43 }
 0x4e2   :  { %v5680_v35 = vpop.eup %5679 }
 0x4e3   :  { %4226 = vst [vmem:[#allocation2 + $0x60] sm:$0xff] %v4175_v48  ;;  %v4177_v19 = vmul.f32 %v5680_v35, %v7522_v56 }
 0x4e5   :  { %4227 = vst [vmem:[#allocation2 + $0x68] sm:$0xff] %v4177_v19  ;;  %v4119_v42 = vpop.xlane.xlu0 %4118 }
 0x4e6   :  { %5685 = vrcp.f32 %v4119_v42 }
 0x4e7   :  { %v4121_v52 = vpop.xlane.xlu1 %4120 }
 0x4e8   :  { %v5682_v46 = vpop.eup %5681  ;;  %5687 = vrcp.f32 %v4121_v52 }
 0x4e9   :  { %v4179_v55 = vmul.f32 %v5682_v46, %v7527_v12 }
 0x4ea   :  { %v5684_v47 = vpop.eup %5683 }
 0x4eb   :  { %4228 = vst [vmem:[#allocation2 + $0x70] sm:$0xff] %v4179_v55  ;;  %v4181_v32 = vmul.f32 %v5684_v47, %v7530_v17 }
 0x4ed   :  { %4229 = vst [vmem:[#allocation2 + $0x78] sm:$0xff] %v4181_v32  ;;  %v4123_v50 = vpop.xlane.xlu0 %4122 }
 0x4ee   :  { %5689 = vrcp.f32 %v4123_v50 }
 0x4ef   :  { %v4125_v43 = vpop.xlane.xlu1 %4124 }
 0x4f0   :  { %v5686_v37 = vpop.eup %5685  ;;  %5691 = vrcp.f32 %v4125_v43 }
 0x4f1   :  { %v4183_v56 = vmul.f32 %v5686_v37, %v7535_v25 }
 0x4f2   :  { %v5688_v0 = vpop.eup %5687 }
 0x4f3   :  { %4230 = vst [vmem:[#allocation2 + $0x80] sm:$0xff] %v4183_v56  ;;  %v4185_v3 = vmul.f32 %v5688_v0, %v7538_v27 }
 0x4f5   :  { %4231 = vst [vmem:[#allocation2 + $0x88] sm:$0xff] %v4185_v3  ;;  %v4127_v53 = vpop.xlane.xlu0 %4126 }
 0x4f6   :  { %5693 = vrcp.f32 %v4127_v53 }
 0x4f7   :  { %v4129_v12 = vpop.xlane.xlu1 %4128 }
 0x4f8   :  { %v5690_v57 = vpop.eup %5689  ;;  %5695 = vrcp.f32 %v4129_v12 }
 0x4f9   :  { %v4187_v17 = vmul.f32 %v5690_v57, %v7543_v39 }
 0x4fa   :  { %v5692_v1 = vpop.eup %5691 }
 0x4fb   :  { %4232 = vst [vmem:[#allocation2 + $0x90] sm:$0xff] %v4187_v17  ;;  %v4189_v2 = vmul.f32 %v5692_v1, %v7546_v41 }
 0x4fd   :  { %4233 = vst [vmem:[#allocation2 + $0x98] sm:$0xff] %v4189_v2  ;;  %v4131_v18 = vpop.xlane.xlu0 %4130 }
 0x4fe   :  { %5697 = vrcp.f32 %v4131_v18 }
 0x4ff   :  { %v4133_v25 = vpop.xlane.xlu1 %4132 }
 0x500   :  { %v5694_v59 = vpop.eup %5693  ;;  %5699 = vrcp.f32 %v4133_v25 }
 0x501   :  { %v4191_v27 = vmul.f32 %v5694_v59, %v7551_v51 }
 0x502   :  { %v5696_v21 = vpop.eup %5695 }
 0x503   :  { %4234 = vst [vmem:[#allocation2 + $0xa0] sm:$0xff] %v4191_v27  ;;  %v4193_v5 = vmul.f32 %v5696_v21, %v7554_v63 }
 0x505   :  { %4235 = vst [vmem:[#allocation2 + $0xa8] sm:$0xff] %v4193_v5  ;;  %v4135_v6 = vpop.xlane.xlu0 %4134 }
 0x506   :  { %5701 = vrcp.f32 %v4135_v6 }
 0x507   :  { %v4137_v39 = vpop.xlane.xlu1 %4136 }
 0x508   :  { %v5698_v22 = vpop.eup %5697  ;;  %5703 = vrcp.f32 %v4137_v39 }
 0x509   :  { %v4195_v41 = vmul.f32 %v5698_v22, %v7559_v40 }
 0x50a   :  { %v5700_v7 = vpop.eup %5699 }
 0x50b   :  { %4236 = vst [vmem:[#allocation2 + $0xb0] sm:$0xff] %v4195_v41  ;;  %v4197_v58 = vmul.f32 %v5700_v7, %v7562_v4 }
 0x50d   :  { %4237 = vst [vmem:[#allocation2 + $0xb8] sm:$0xff] %v4197_v58  ;;  %v4139_v60 = vpop.xlane.xlu0 %4138 }
 0x50e   :  { %5705 = vrcp.f32 %v4139_v60 }
 0x50f   :  { %v4141_v51 = vpop.xlane.xlu1 %4140 }
 0x510   :  { %v5702_v11 = vpop.eup %5701  ;;  %5707 = vrcp.f32 %v4141_v51 }
 0x511   :  { %v4199_v63 = vmul.f32 %v5702_v11, %v7567_v8 }
 0x512   :  { %v5704_v33 = vpop.eup %5703 }
 0x513   :  { %4238 = vst [vmem:[#allocation2 + $0xc0] sm:$0xff] %v4199_v63  ;;  %v4201_v36 = vmul.f32 %v5704_v33, %v7570_v10 }
 0x515   :  { %4239 = vst [vmem:[#allocation2 + $0xc8] sm:$0xff] %v4201_v36  ;;  %v4143_v16 = vpop.xlane.xlu0 %4142 }
 0x516   :  { %5709 = vrcp.f32 %v4143_v16 }
 0x517   :  { %v4145_v40 = vpop.xlane.xlu1 %4144 }
 0x518   :  { %v5706_v20 = vpop.eup %5705  ;;  %5711 = vrcp.f32 %v4145_v40 }
 0x519   :  { %v4203_v4 = vmul.f32 %v5706_v20, %v7575_v23 }
 0x51a   :  { %v5708_v45 = vpop.eup %5707 }
 0x51b   :  { %4240 = vst [vmem:[#allocation2 + $0xd0] sm:$0xff] %v4203_v4  ;;  %v4205_v24 = vmul.f32 %v5708_v45, %v7578_v61 }
 0x51d   :  { %4241 = vst [vmem:[#allocation2 + $0xd8] sm:$0xff] %v4205_v24  ;;  %v4147_v14 = vpop.xlane.xlu0 %4146 }
 0x51e   :  { %5713 = vrcp.f32 %v4147_v14 }
 0x51f   :  { %v4149_v8 = vpop.xlane.xlu1 %4148 }
 0x520   :  { %v5710_v49 = vpop.eup %5709  ;;  %5715 = vrcp.f32 %v4149_v8 }
 0x521   :  { %v4207_v10 = vmul.f32 %v5710_v49, %v7583_v29 }
 0x522   :  { %v5712_v54 = vpop.eup %5711 }
 0x523   :  { %4242 = vst [vmem:[#allocation2 + $0xe0] sm:$0xff] %v4207_v10  ;;  %v4209_v28 = vmul.f32 %v5712_v54, %v7586_v15 }
 0x525   :  { %4243 = vst [vmem:[#allocation2 + $0xe8] sm:$0xff] %v4209_v28 }
 0x528   :  { %v5714_v23 = vpop.eup %5713 }
 0x529   :  { %v4211_v38 = vmul.f32 %v5714_v23, %v7589_v31 }
 0x52a   :  { %v5716_v30 = vpop.eup %5715 }
 0x52b   :  { %4244 = vst [vmem:[#allocation2 + $0xf0] sm:$0xff] %v4211_v38  ;;  %v4213_v61 = vmul.f32 %v5716_v30, %v7592_v34 }
 0x52d   :  { %4245 = vst [vmem:[#allocation2 + $0xf8] sm:$0xff] %v4213_v61 }
 0x52e   :  { %5728 = shalt.err (!%p5725_p4)
}
 0x52f   :  { %s5729_s16 = scalar_lea.hbm %s7644_s5, 4096 }
 0x530   :  { %p5730_p5 = scmp.ne.s32.totalorder %s7644_s5, %s5729_s16  ;;  %p5733_p6 = scmp.lt.u32.totalorder %s5729_s16, %s7644_s5 }
 0x532   :  { %p5735_p7 = pnand %p5733_p6, %p5730_p5 }
 0x534   :  { %5738 = shalt.err (!%p5735_p7)
}
 0x535   :  { %s5743_s21 = smov 128   ;;  %s5744_s22 = smov 8  }
 0x536   :  { %4257 = dma.vmem_to_hbm [thread:$0]  %s4252_s12, 4096, %s7644_s5, [#allocation3], %s5743_s21, %s5743_s21, %s5744_s22  }
 0x537   :  { %5739 = dma.done.wait [#allocation3], 4096  }
 0x538   :  { %5740 = vsyncadd [#allocation3], 4294963200 }
 0x539   :  { %4261 = vsyncpa [#allocation3], 1 }

</bundles_post_ra>
